<compile_context>
chip_gen: v6e
topology: v6e:2x2x1
jax: 0.10.0
libtpu: 0.0.40
codegen_flags: <defaults>
</compile_context>

<pallas_src>
import functools

import jax
import jax.numpy as jnp
from jax.experimental import pallas as pl
from jax.experimental.pallas import tpu as pltpu


def _round_up(a: int, m: int) -> int:
    return (a + m - 1) // m * m


def gru_chunk_kernel(blkmax_ref,                 # SMEM (n_bb,) int32 (scalar prefetch)
                     x_ref,                      # (Bc, Tc, D)    f32
                     len_ref,                    # (Bc, 1)        int32
                     wih_ref,                    # (D, 3*Hp)      bf16
                     whh_ref,                    # (Hp, 3*Hp)     bf16
                     bih_ref,                    # (1, 3*Hp)      f32
                     bhh_ref,                    # (1, 3*Hp)      f32
                     out_ref,                    # (Tc, Bc, Hp)   f32 (time-major block)
                     last_ref,                   # (Bc, Hp)       f32
                     h_sc,                       # (Bc, Hp)       f32 hidden carry
                     last_sc,                    # (Bc, Hp)       f32 last-output accum
                     gi_sc,                      # (Tc, Bc, 3*Hp) f32 hoisted projection
                     *, hp: int, tc: int):
    bb = pl.program_id(0)          # batch block (parallel)
    c = pl.program_id(1)           # time chunk  (sequential carry)
    bc = x_ref.shape[0]

    @pl.when(c == 0)
    def _init():
        h_sc[...] = jnp.zeros_like(h_sc)
        last_sc[...] = jnp.zeros_like(last_sc)

    t0 = c * tc
    active = t0 < blkmax_ref[bb]   # skip chunks that are entirely past max length

    @pl.when(active)
    def _compute():
        lengths = len_ref[...]                              # (Bc, 1) int32

        # ---- hoisted input projection: one MXU matmul per chunk (bf16 in, f32 acc)
        xc = x_ref[...].astype(jnp.bfloat16)                # (Bc, Tc, D)
        gi_flat = jax.lax.dot_general(
            xc.reshape(bc * tc, xc.shape[-1]), wih_ref[...],
            dimension_numbers=(((1,), (0,)), ((), ())),
            preferred_element_type=jnp.float32)             # (Bc*Tc, 3*Hp)
        gi_btg = gi_flat.reshape(bc, tc, 3 * hp) + bih_ref[...]
        gi_sc[...] = jnp.transpose(gi_btg, (1, 0, 2))       # time-major (Tc, Bc, 3*Hp)

        bhh = bhh_ref[...]                                  # (1, 3*Hp) f32

        # ---- serial recurrence over the chunk (statically unrolled):
        #      only h_prev @ W_hh remains on the per-step critical path.
        for t in range(tc):
            h_prev = h_sc[...]                              # (Bc, Hp) f32
            gi = gi_sc[t]                                   # (Bc, 3*Hp) f32
            gh = jnp.dot(h_prev.astype(jnp.bfloat16), whh_ref[...],
                         preferred_element_type=jnp.float32) + bhh
            # gate slabs are 128-lane aligned (Hp multiples) -> no lane shuffles
            r = jax.nn.sigmoid(gi[:, 0:hp] + gh[:, 0:hp])
            z = jax.nn.sigmoid(gi[:, hp:2 * hp] + gh[:, hp:2 * hp])
            n = jnp.tanh(gi[:, 2 * hp:] + r * gh[:, 2 * hp:])
            h_new = (1.0 - z) * n + z * h_prev              # (Bc, Hp)

            tg = t0 + t
            valid = tg < lengths                            # (Bc, 1) bool
            is_last = tg == lengths - 1                     # (Bc, 1) bool
            h_sc[...] = jnp.where(valid, h_new, h_prev)     # freeze past length
            out_ref[t] = jnp.where(valid, h_new, 0.0).astype(out_ref.dtype)
            last_sc[...] = last_sc[...] + jnp.where(is_last, h_new, 0.0)

    @pl.when(jnp.logical_not(active))
    def _skip():
        out_ref[...] = jnp.zeros_like(out_ref)              # fully padded time chunk

    @pl.when(c == pl.num_programs(1) - 1)
    def _finalize():
        last_ref[...] = last_sc[...].astype(last_ref.dtype)


def rnn_layer_forward(x, mask, w_ih, w_hh, b_ih, b_hh,
                      *, time_chunk: int = 8, batch_block: int = 8):
    """GRU RNNLayer forward (batch-first), torch.nn.GRU gate order (r, z, n).

    Args:
      x:    [B, T, D] float (batch-first, like the PyTorch module).
      mask: [B, T] {0,1} (1 = valid), or None.
      w_ih: [3H, D], w_hh: [3H, H], b_ih/b_hh: [3H].

    Returns:
      outputs [B, T, H] float32, last_outputs [B, H] float32.
    """
    B, T, D = x.shape
    H = w_hh.shape[1]
    Hp = _round_up(max(H, 1), 128)        # lane-dense hidden width
    G = 3 * Hp
    Tc = time_chunk
    Bc = batch_block
    Bp = _round_up(B, Bc)
    Tp = _round_up(T, Tc)
    n_bb = Bp // Bc
    n_tc = Tp // Tc

    if mask is None:
        lengths = jnp.full((B,), T, dtype=jnp.int32)
    else:
        lengths = jnp.sum(mask.astype(jnp.int32), axis=-1)
    lengths_p = jnp.pad(lengths.astype(jnp.int32), (0, Bp - B))        # (Bp,)
    len2d = lengths_p.reshape(Bp, 1)
    blk_max = jnp.max(lengths_p.reshape(n_bb, Bc), axis=1)             # (n_bb,) int32

    x_p = jnp.pad(x.astype(jnp.float32), ((0, Bp - B), (0, Tp - T), (0, 0)))

    def pad_gates(a):
        # (..., 3H) -> (..., 3Hp): each gate lands in its own 128-aligned slab.
        segs = []
        for g in range(3):
            seg = a[..., g * H:(g + 1) * H]
            segs.append(jnp.pad(seg, [(0, 0)] * (a.ndim - 1) + [(0, Hp - H)]))
        return jnp.concatenate(segs, axis=-1)

    # bf16 weights for the MXU (halves weight DMA/VMEM); f32 biases / gate math.
    wih_p = pad_gates(jnp.transpose(w_ih).astype(jnp.float32)).astype(jnp.bfloat16)   # (D, 3Hp)
    whh_p = jnp.pad(pad_gates(jnp.transpose(w_hh).astype(jnp.float32)),
                    ((0, Hp - H), (0, 0))).astype(jnp.bfloat16)                        # (Hp, 3Hp)
    bih_p = pad_gates(b_ih.astype(jnp.float32)[None, :])                               # (1, 3Hp)
    bhh_p = pad_gates(b_hh.astype(jnp.float32)[None, :])                               # (1, 3Hp)

    kernel = functools.partial(gru_chunk_kernel, hp=Hp, tc=Tc)

    out_tm, last_p = pl.pallas_call(
        kernel,
        out_shape=(
            jax.ShapeDtypeStruct((Tp, Bp, Hp), jnp.float32),
            jax.ShapeDtypeStruct((Bp, Hp), jnp.float32),
        ),
        grid_spec=pltpu.PrefetchScalarGridSpec(
            num_scalar_prefetch=1,                       # per-batch-block max length
            grid=(n_bb, n_tc),
            in_specs=[
                pl.BlockSpec((Bc, Tc, D), lambda bb, c, m: (bb, c, 0)),   # x (batch-first)
                pl.BlockSpec((Bc, 1), lambda bb, c, m: (bb, 0)),          # lengths
                pl.BlockSpec((D, G), lambda bb, c, m: (0, 0)),            # W_ih^T (padded)
                pl.BlockSpec((Hp, G), lambda bb, c, m: (0, 0)),           # W_hh^T (padded)
                pl.BlockSpec((1, G), lambda bb, c, m: (0, 0)),            # b_ih
                pl.BlockSpec((1, G), lambda bb, c, m: (0, 0)),            # b_hh
            ],
            out_specs=[
                pl.BlockSpec((Tc, Bc, Hp), lambda bb, c, m: (c, bb, 0)),  # outputs (time-major)
                pl.BlockSpec((Bc, Hp), lambda bb, c, m: (bb, 0)),         # last outputs
            ],
            scratch_shapes=[
                pltpu.VMEM((Bc, Hp), jnp.float32),        # hidden-state carry
                pltpu.VMEM((Bc, Hp), jnp.float32),        # last-output accumulator
                pltpu.VMEM((Tc, Bc, G), jnp.float32),     # hoisted x @ W_ih for the chunk
            ],
        ),
        compiler_params=pltpu.CompilerParams(
            dimension_semantics=("parallel", "arbitrary"),
        ),
    )(blk_max, x_p, len2d, wih_p, whh_p, bih_p, bhh_p)

    # Single XLA copy: transpose back to batch-first fused with the Hp->H slice.
    outputs = jnp.transpose(out_tm[:T, :B, :H], (1, 0, 2))               # (B, T, H)
    last_outputs = last_p[:B, :H]                                        # (B, H)
    return outputs, last_outputs


def _reference_gru(x, mask, w_ih, w_hh, b_ih, b_hh):
    """Pure-JAX f32 reference with the same packed-sequence semantics."""
    B, T, D = x.shape
    H = w_hh.shape[1]
    lengths = jnp.sum(mask.astype(jnp.int32), axis=-1)
    valid = (jnp.arange(T)[None, :] < lengths[:, None]).astype(jnp.float32)  # (B, T)

    def step(h, inp):
        xt, vt = inp                                   # (B, D), (B,)
        gi = xt @ w_ih.T + b_ih
        gh = h @ w_hh.T + b_hh
        r = jax.nn.sigmoid(gi[:, 0:H] + gh[:, 0:H])
        z = jax.nn.sigmoid(gi[:, H:2 * H] + gh[:, H:2 * H])
        n = jnp.tanh(gi[:, 2 * H:] + r * gh[:, 2 * H:])
        h_new = (1.0 - z) * n + z * h
        v = vt[:, None]
        return v * h_new + (1.0 - v) * h, v * h_new

    h0 = jnp.zeros((B, H), jnp.float32)
    _, outs = jax.lax.scan(step, h0, (jnp.transpose(x, (1, 0, 2)), jnp.transpose(valid)))
    outputs = jnp.transpose(outs, (1, 0, 2))
    last_outputs = outputs[jnp.arange(B), lengths - 1, :]
    return outputs, last_outputs


if __name__ == "__main__":
    # small shapes consistent with the module's forward: [batch, seq, input_size]
    B, T, D, H = 16, 16, 8, 32

    key = jax.random.PRNGKey(0)
    k_x, k_wih, k_whh, k_bih, k_bhh = jax.random.split(key, 5)

    x = jax.random.normal(k_x, (B, T, D), dtype=jnp.float32)

    # torch.nn.GRU default init: U(-1/sqrt(H), 1/sqrt(H)), gate order (r, z, n)
    scale = 1.0 / jnp.sqrt(jnp.float32(H))
    w_ih = jax.random.uniform(k_wih, (3 * H, D), jnp.float32, -scale, scale)
    w_hh = jax.random.uniform(k_whh, (3 * H, H), jnp.float32, -scale, scale)
    b_ih = jax.random.uniform(k_bih, (3 * H,), jnp.float32, -scale, scale)
    b_hh = jax.random.uniform(k_bhh, (3 * H,), jnp.float32, -scale, scale)

    fwd = jax.jit(rnn_layer_forward)

    length_cases = [
        # ragged, uses both time chunks and both batch blocks
        jnp.array([16, 12, 8, 5, 3, 1, 9, 7, 16, 15, 2, 4, 6, 10, 14, 13], dtype=jnp.int32),
        # all lengths <= 8: second time chunk is skipped entirely (dead-step path)
        jnp.array([8, 5, 3, 1, 2, 4, 6, 7, 8, 8, 1, 2, 3, 4, 5, 6], dtype=jnp.int32),
    ]

    for lengths in length_cases:
        mask = (jnp.arange(T)[None, :] < lengths[:, None]).astype(jnp.float32)   # (B, T)

        outputs, last_outputs = fwd(x, mask, w_ih, w_hh, b_ih, b_hh)
        jax.block_until_ready((outputs, last_outputs))

        ref_outputs, ref_last = _reference_gru(x, mask, w_ih, w_hh, b_ih, b_hh)

        assert outputs.shape == (B, T, H)
        assert last_outputs.shape == (B, H)
        # bf16 MXU inputs (f32 accumulation + f32 gate math) => loosened tolerance vs f32 ref
        assert jnp.allclose(outputs, ref_outputs, atol=5e-2, rtol=5e-2)
        assert jnp.allclose(last_outputs, ref_last, atol=5e-2, rtol=5e-2)

    print("KERNEL_OK")
</pallas_src>

<mosaic_0001>
module attributes {stable_mosaic.version = 11 : i64} {
  func.func @gru_chunk_kernel(%arg0: i32, %arg1: i32, %arg2: memref<2xi32, #tpu.memory_space<smem>>, %arg3: memref<8x8x8xf32, #tpu.memory_space<vmem>>, %arg4: memref<8x1xi32, #tpu.memory_space<vmem>>, %arg5: memref<8x384xbf16, #tpu.memory_space<vmem>>, %arg6: memref<128x384xbf16, #tpu.memory_space<vmem>>, %arg7: memref<1x384xf32, #tpu.memory_space<vmem>>, %arg8: memref<1x384xf32, #tpu.memory_space<vmem>>, %arg9: memref<8x8x128xf32, #tpu.memory_space<vmem>>, %arg10: memref<8x128xf32, #tpu.memory_space<vmem>>, %arg11: memref<8x128xf32, #tpu.memory_space<vmem>>, %arg12: memref<8x128xf32, #tpu.memory_space<vmem>>, %arg13: memref<8x8x384xf32, #tpu.memory_space<vmem>>) attributes {dimension_semantics = [#tpu.dimension_semantics<parallel>, #tpu.dimension_semantics<arbitrary>], iteration_bounds = array<i64: 2, 2>, scalar_prefetch = 1 : i64, scratch_operands = 3 : i64, tpu.core_type = #tpu.core_type<tc>, window_params = [{transform_indices = @transform_0, window_bounds = array<i64: 8, 8, 8>}, {transform_indices = @transform_1, window_bounds = array<i64: 8, 1>}, {pipeline_mode = #tpu.pipeline_mode<synchronous>, transform_indices = @transform_2, window_bounds = array<i64: 8, 384>}, {pipeline_mode = #tpu.pipeline_mode<synchronous>, transform_indices = @transform_3, window_bounds = array<i64: 128, 384>}, {pipeline_mode = #tpu.pipeline_mode<synchronous>, transform_indices = @transform_4, window_bounds = array<i64: 1, 384>}, {pipeline_mode = #tpu.pipeline_mode<synchronous>, transform_indices = @transform_5, window_bounds = array<i64: 1, 384>}, {transform_indices = @transform_6, window_bounds = array<i64: 8, 8, 128>}, {transform_indices = @transform_7, window_bounds = array<i64: 8, 128>}]} {
    %c0_i32 = arith.constant 0 : i32
    %0 = arith.cmpi eq, %arg1, %c0_i32 : i32
    %1 = arith.extui %0 : i1 to i32
    %c0_i32_0 = arith.constant 0 : i32
    %2 = arith.cmpi ne, %1, %c0_i32_0 : i32
    scf.if %2 {
      %cst = arith.constant 0.000000e+00 : f32
      %15 = vector.broadcast %cst : f32 to vector<8x128xf32>
      %c0 = arith.constant 0 : index
      %c0_4 = arith.constant 0 : index
      %16 = vector.load %arg11[%c0, %c0_4] : memref<8x128xf32, #tpu.memory_space<vmem>>, vector<8x128xf32>
      tpu.vector_store %arg11[%c0, %c0_4], %15 {strides = array<i32>} : memref<8x128xf32, #tpu.memory_space<vmem>>, vector<8x128xf32>,
      %cst_5 = arith.constant 0.000000e+00 : f32
      %17 = vector.broadcast %cst_5 : f32 to vector<8x128xf32>
      %c0_6 = arith.constant 0 : index
      %c0_7 = arith.constant 0 : index
      %18 = vector.load %arg12[%c0_6, %c0_7] : memref<8x128xf32, #tpu.memory_space<vmem>>, vector<8x128xf32>
      tpu.vector_store %arg12[%c0_6, %c0_7], %17 {strides = array<i32>} : memref<8x128xf32, #tpu.memory_space<vmem>>, vector<8x128xf32>,
    } else {
    }
    %c8_i32 = arith.constant 8 : i32
    %3 = arith.muli %arg1, %c8_i32 : i32
    %4 = arith.index_cast %arg0 : i32 to index
    %5 = memref.load %arg2[%4] : memref<2xi32, #tpu.memory_space<smem>>
    %6 = arith.cmpi slt, %3, %5 : i32
    %7 = arith.extui %6 : i1 to i32
    %c0_i32_1 = arith.constant 0 : i32
    %8 = arith.cmpi ne, %7, %c0_i32_1 : i32
    scf.if %8 {
      %c0 = arith.constant 0 : index
      %c0_4 = arith.constant 0 : index
      %15 = vector.load %arg4[%c0, %c0_4] : memref<8x1xi32, #tpu.memory_space<vmem>>, vector<8x1xi32>
      %c0_5 = arith.constant 0 : index
      %c0_6 = arith.constant 0 : index
      %c0_7 = arith.constant 0 : index
      %16 = vector.load %arg3[%c0_5, %c0_6, %c0_7] : memref<8x8x8xf32, #tpu.memory_space<vmem>>, vector<8x8x8xf32>
      %17 = arith.truncf %16 : vector<8x8x8xf32> to vector<8x8x8xbf16>
      %18 = vector.shape_cast %17 : vector<8x8x8xbf16> to vector<64x8xbf16>
      %c0_8 = arith.constant 0 : index
      %c0_9 = arith.constant 0 : index
      %19 = vector.load %arg5[%c0_8, %c0_9] : memref<8x384xbf16, #tpu.memory_space<vmem>>, vector<8x384xbf16>
      %cst = arith.constant dense<0.000000e+00> : vector<64x384xf32>
      %20 = tpu.matmul %18, %19, %cst {dimension_numbers = #tpu.dot_dimension_numbers<[1], [0], [0], [1], [0, 0, 1, 1], [], []>} : vector<64x8xbf16>, vector<8x384xbf16>, vector<64x384xf32> -> vector<64x384xf32>
      %21 = vector.shape_cast %20 : vector<64x384xf32> to vector<8x8x384xf32>
      %c0_10 = arith.constant 0 : index
      %c0_11 = arith.constant 0 : index
      %22 = vector.load %arg7[%c0_10, %c0_11] : memref<1x384xf32, #tpu.memory_space<vmem>>, vector<1x384xf32>
      %23 = vector.shape_cast %22 : vector<1x384xf32> to vector<1x1x384xf32>
      %24 = vector.broadcast %23 : vector<1x1x384xf32> to vector<8x8x384xf32>
      %25 = arith.addf %21, %24 : vector<8x8x384xf32>
      %26 = tpu.transpose %25, [1, 0, 2] : vector<8x8x384xf32> -> vector<8x8x384xf32>
      %c0_12 = arith.constant 0 : index
      %c0_13 = arith.constant 0 : index
      %c0_14 = arith.constant 0 : index
      %27 = vector.load %arg13[%c0_12, %c0_13, %c0_14] : memref<8x8x384xf32, #tpu.memory_space<vmem>>, vector<8x8x384xf32>
      tpu.vector_store %arg13[%c0_12, %c0_13, %c0_14], %26 {strides = array<i32>} : memref<8x8x384xf32, #tpu.memory_space<vmem>>, vector<8x8x384xf32>,
      %c0_15 = arith.constant 0 : index
      %c0_16 = arith.constant 0 : index
      %28 = vector.load %arg8[%c0_15, %c0_16] : memref<1x384xf32, #tpu.memory_space<vmem>>, vector<1x384xf32>
      %c0_17 = arith.constant 0 : index
      %c0_18 = arith.constant 0 : index
      %29 = vector.load %arg11[%c0_17, %c0_18] : memref<8x128xf32, #tpu.memory_space<vmem>>, vector<8x128xf32>
      %c0_19 = arith.constant 0 : index
      %c0_20 = arith.constant 0 : index
      %c0_21 = arith.constant 0 : index
      %30 = vector.load %arg13[%c0_19, %c0_20, %c0_21] : memref<8x8x384xf32, #tpu.memory_space<vmem>>, vector<1x8x384xf32>
      %31 = vector.shape_cast %30 : vector<1x8x384xf32> to vector<8x384xf32>
      %32 = arith.truncf %29 : vector<8x128xf32> to vector<8x128xbf16>
      %c0_22 = arith.constant 0 : index
      %c0_23 = arith.constant 0 : index
      %33 = vector.load %arg6[%c0_22, %c0_23] : memref<128x384xbf16, #tpu.memory_space<vmem>>, vector<128x384xbf16>
      %cst_24 = arith.constant dense<0.000000e+00> : vector<8x384xf32>
      %34 = tpu.matmul %32, %33, %cst_24 {dimension_numbers = #tpu.dot_dimension_numbers<[1], [0], [0], [1], [0, 0, 1, 1], [], []>} : vector<8x128xbf16>, vector<128x384xbf16>, vector<8x384xf32> -> vector<8x384xf32>
      %35 = vector.broadcast %28 : vector<1x384xf32> to vector<8x384xf32>
      %36 = arith.addf %34, %35 : vector<8x384xf32>
      %37 = vector.extract_strided_slice %31 {offsets = [0, 0], sizes = [8, 128], strides = [1, 1]} : vector<8x384xf32> to vector<8x128xf32>
      %38 = vector.extract_strided_slice %36 {offsets = [0, 0], sizes = [8, 128], strides = [1, 1]} : vector<8x384xf32> to vector<8x128xf32>
      %39 = arith.addf %37, %38 : vector<8x128xf32>
      %40 = arith.negf %39 : vector<8x128xf32>
      %41 = math.exp %40 : vector<8x128xf32>
      %cst_25 = arith.constant 1.000000e+00 : f32
      %42 = vector.broadcast %cst_25 : f32 to vector<8x128xf32>
      %43 = arith.addf %42, %41 : vector<8x128xf32>
      %44 = arith.divf %42, %43 : vector<8x128xf32>
      %45 = vector.extract_strided_slice %31 {offsets = [0, 128], sizes = [8, 128], strides = [1, 1]} : vector<8x384xf32> to vector<8x128xf32>
      %46 = vector.extract_strided_slice %36 {offsets = [0, 128], sizes = [8, 128], strides = [1, 1]} : vector<8x384xf32> to vector<8x128xf32>
      %47 = arith.addf %45, %46 : vector<8x128xf32>
      %48 = arith.negf %47 : vector<8x128xf32>
      %49 = math.exp %48 : vector<8x128xf32>
      %cst_26 = arith.constant 1.000000e+00 : f32
      %50 = vector.broadcast %cst_26 : f32 to vector<8x128xf32>
      %51 = arith.addf %50, %49 : vector<8x128xf32>
      %52 = arith.divf %50, %51 : vector<8x128xf32>
      %53 = vector.extract_strided_slice %31 {offsets = [0, 256], sizes = [8, 128], strides = [1, 1]} : vector<8x384xf32> to vector<8x128xf32>
      %54 = vector.extract_strided_slice %36 {offsets = [0, 256], sizes = [8, 128], strides = [1, 1]} : vector<8x384xf32> to vector<8x128xf32>
      %55 = arith.mulf %44, %54 : vector<8x128xf32>
      %56 = arith.addf %53, %55 : vector<8x128xf32>
      %57 = math.tanh %56 : vector<8x128xf32>
      %cst_27 = arith.constant 1.000000e+00 : f32
      %58 = vector.broadcast %cst_27 : f32 to vector<8x128xf32>
      %59 = arith.subf %58, %52 : vector<8x128xf32>
      %60 = arith.mulf %59, %57 : vector<8x128xf32>
      %61 = arith.mulf %52, %29 : vector<8x128xf32>
      %62 = arith.addf %60, %61 : vector<8x128xf32>
      %c0_i32_28 = arith.constant 0 : i32
      %63 = arith.addi %3, %c0_i32_28 : i32
      %64 = vector.broadcast %63 : i32 to vector<8x1xi32>
      %65 = arith.cmpi slt, %64, %15 : vector<8x1xi32>
      %c1_i32_29 = arith.constant 1 : i32
      %66 = vector.broadcast %c1_i32_29 : i32 to vector<8x1xi32>
      %67 = arith.subi %15, %66 : vector<8x1xi32>
      %68 = vector.broadcast %63 : i32 to vector<8x1xi32>
      %69 = arith.cmpi eq, %68, %67 : vector<8x1xi32>
      %70 = vector.shape_cast %65 : vector<8x1xi1> to vector<8x1xi1>
      %71 = vector.broadcast %70 : vector<8x1xi1> to vector<8x128xi1>
      %72 = arith.select %71, %62, %29 : vector<8x128xi1>, vector<8x128xf32>
      %c0_30 = arith.constant 0 : index
      %c0_31 = arith.constant 0 : index
      %73 = vector.load %arg11[%c0_30, %c0_31] : memref<8x128xf32, #tpu.memory_space<vmem>>, vector<8x128xf32>
      tpu.vector_store %arg11[%c0_30, %c0_31], %72 {strides = array<i32>} : memref<8x128xf32, #tpu.memory_space<vmem>>, vector<8x128xf32>,
      %cst_32 = arith.constant 0.000000e+00 : f32
      %74 = vector.shape_cast %65 : vector<8x1xi1> to vector<8x1xi1>
      %75 = vector.broadcast %74 : vector<8x1xi1> to vector<8x128xi1>
      %76 = vector.broadcast %cst_32 : f32 to vector<8x128xf32>
      %77 = arith.select %75, %62, %76 : vector<8x128xi1>, vector<8x128xf32>
      %c0_33 = arith.constant 0 : index
      %c0_34 = arith.constant 0 : index
      %c0_35 = arith.constant 0 : index
      %78 = vector.load %arg9[%c0_33, %c0_34, %c0_35] : memref<8x8x128xf32, #tpu.memory_space<vmem>>, vector<1x8x128xf32>
      %79 = vector.shape_cast %78 : vector<1x8x128xf32> to vector<8x128xf32>
      %80 = vector.shape_cast %77 : vector<8x128xf32> to vector<1x8x128xf32>
      tpu.vector_store %arg9[%c0_33, %c0_34, %c0_35], %80 {strides = array<i32>} : memref<8x8x128xf32, #tpu.memory_space<vmem>>, vector<1x8x128xf32>,
      %c0_36 = arith.constant 0 : index
      %c0_37 = arith.constant 0 : index
      %81 = vector.load %arg12[%c0_36, %c0_37] : memref<8x128xf32, #tpu.memory_space<vmem>>, vector<8x128xf32>
      %cst_38 = arith.constant 0.000000e+00 : f32
      %82 = vector.shape_cast %69 : vector<8x1xi1> to vector<8x1xi1>
      %83 = vector.broadcast %82 : vector<8x1xi1> to vector<8x128xi1>
      %84 = vector.broadcast %cst_38 : f32 to vector<8x128xf32>
      %85 = arith.select %83, %62, %84 : vector<8x128xi1>, vector<8x128xf32>
      %86 = arith.addf %81, %85 : vector<8x128xf32>
      %c0_39 = arith.constant 0 : index
      %c0_40 = arith.constant 0 : index
      %87 = vector.load %arg12[%c0_39, %c0_40] : memref<8x128xf32, #tpu.memory_space<vmem>>, vector<8x128xf32>
      tpu.vector_store %arg12[%c0_39, %c0_40], %86 {strides = array<i32>} : memref<8x128xf32, #tpu.memory_space<vmem>>, vector<8x128xf32>,
      %c0_41 = arith.constant 0 : index
      %c0_42 = arith.constant 0 : index
      %88 = vector.load %arg11[%c0_41, %c0_42] : memref<8x128xf32, #tpu.memory_space<vmem>>, vector<8x128xf32>
      %c1 = arith.constant 1 : index
      %c0_43 = arith.constant 0 : index
      %c0_44 = arith.constant 0 : index
      %89 = vector.load %arg13[%c1, %c0_43, %c0_44] : memref<8x8x384xf32, #tpu.memory_space<vmem>>, vector<1x8x384xf32>
      %90 = vector.shape_cast %89 : vector<1x8x384xf32> to vector<8x384xf32>
      %91 = arith.truncf %88 : vector<8x128xf32> to vector<8x128xbf16>
      %c0_45 = arith.constant 0 : index
      %c0_46 = arith.constant 0 : index
      %92 = vector.load %arg6[%c0_45, %c0_46] : memref<128x384xbf16, #tpu.memory_space<vmem>>, vector<128x384xbf16>
      %cst_47 = arith.constant dense<0.000000e+00> : vector<8x384xf32>
      %93 = tpu.matmul %91, %92, %cst_47 {dimension_numbers = #tpu.dot_dimension_numbers<[1], [0], [0], [1], [0, 0, 1, 1], [], []>} : vector<8x128xbf16>, vector<128x384xbf16>, vector<8x384xf32> -> vector<8x384xf32>
      %94 = vector.broadcast %28 : vector<1x384xf32> to vector<8x384xf32>
      %95 = arith.addf %93, %94 : vector<8x384xf32>
      %96 = vector.extract_strided_slice %90 {offsets = [0, 0], sizes = [8, 128], strides = [1, 1]} : vector<8x384xf32> to vector<8x128xf32>
      %97 = vector.extract_strided_slice %95 {offsets = [0, 0], sizes = [8, 128], strides = [1, 1]} : vector<8x384xf32> to vector<8x128xf32>
      %98 = arith.addf %96, %97 : vector<8x128xf32>
      %99 = arith.negf %98 : vector<8x128xf32>
      %100 = math.exp %99 : vector<8x128xf32>
      %cst_48 = arith.constant 1.000000e+00 : f32
      %101 = vector.broadcast %cst_48 : f32 to vector<8x128xf32>
      %102 = arith.addf %101, %100 : vector<8x128xf32>
      %103 = arith.divf %101, %102 : vector<8x128xf32>
      %104 = vector.extract_strided_slice %90 {offsets = [0, 128], sizes = [8, 128], strides = [1, 1]} : vector<8x384xf32> to vector<8x128xf32>
      %105 = vector.extract_strided_slice %95 {offsets = [0, 128], sizes = [8, 128], strides = [1, 1]} : vector<8x384xf32> to vector<8x128xf32>
      %106 = arith.addf %104, %105 : vector<8x128xf32>
      %107 = arith.negf %106 : vector<8x128xf32>
      %108 = math.exp %107 : vector<8x128xf32>
      %cst_49 = arith.constant 1.000000e+00 : f32
      %109 = vector.broadcast %cst_49 : f32 to vector<8x128xf32>
      %110 = arith.addf %109, %108 : vector<8x128xf32>
      %111 = arith.divf %109, %110 : vector<8x128xf32>
      %112 = vector.extract_strided_slice %90 {offsets = [0, 256], sizes = [8, 128], strides = [1, 1]} : vector<8x384xf32> to vector<8x128xf32>
      %113 = vector.extract_strided_slice %95 {offsets = [0, 256], sizes = [8, 128], strides = [1, 1]} : vector<8x384xf32> to vector<8x128xf32>
      %114 = arith.mulf %103, %113 : vector<8x128xf32>
      %115 = arith.addf %112, %114 : vector<8x128xf32>
      %116 = math.tanh %115 : vector<8x128xf32>
      %cst_50 = arith.constant 1.000000e+00 : f32
      %117 = vector.broadcast %cst_50 : f32 to vector<8x128xf32>
      %118 = arith.subf %117, %111 : vector<8x128xf32>
      %119 = arith.mulf %118, %116 : vector<8x128xf32>
      %120 = arith.mulf %111, %88 : vector<8x128xf32>
      %121 = arith.addf %119, %120 : vector<8x128xf32>
      %c1_i32_51 = arith.constant 1 : i32
      %122 = arith.addi %3, %c1_i32_51 : i32
      %123 = vector.broadcast %122 : i32 to vector<8x1xi32>
      %124 = arith.cmpi slt, %123, %15 : vector<8x1xi32>
      %c1_i32_52 = arith.constant 1 : i32
      %125 = vector.broadcast %c1_i32_52 : i32 to vector<8x1xi32>
      %126 = arith.subi %15, %125 : vector<8x1xi32>
      %127 = vector.broadcast %122 : i32 to vector<8x1xi32>
      %128 = arith.cmpi eq, %127, %126 : vector<8x1xi32>
      %129 = vector.shape_cast %124 : vector<8x1xi1> to vector<8x1xi1>
      %130 = vector.broadcast %129 : vector<8x1xi1> to vector<8x128xi1>
      %131 = arith.select %130, %121, %88 : vector<8x128xi1>, vector<8x128xf32>
      %c0_53 = arith.constant 0 : index
      %c0_54 = arith.constant 0 : index
      %132 = vector.load %arg11[%c0_53, %c0_54] : memref<8x128xf32, #tpu.memory_space<vmem>>, vector<8x128xf32>
      tpu.vector_store %arg11[%c0_53, %c0_54], %131 {strides = array<i32>} : memref<8x128xf32, #tpu.memory_space<vmem>>, vector<8x128xf32>,
      %cst_55 = arith.constant 0.000000e+00 : f32
      %133 = vector.shape_cast %124 : vector<8x1xi1> to vector<8x1xi1>
      %134 = vector.broadcast %133 : vector<8x1xi1> to vector<8x128xi1>
      %135 = vector.broadcast %cst_55 : f32 to vector<8x128xf32>
      %136 = arith.select %134, %121, %135 : vector<8x128xi1>, vector<8x128xf32>
      %c1_56 = arith.constant 1 : index
      %c0_57 = arith.constant 0 : index
      %c0_58 = arith.constant 0 : index
      %137 = vector.load %arg9[%c1_56, %c0_57, %c0_58] : memref<8x8x128xf32, #tpu.memory_space<vmem>>, vector<1x8x128xf32>
      %138 = vector.shape_cast %137 : vector<1x8x128xf32> to vector<8x128xf32>
      %139 = vector.shape_cast %136 : vector<8x128xf32> to vector<1x8x128xf32>
      tpu.vector_store %arg9[%c1_56, %c0_57, %c0_58], %139 {strides = array<i32>} : memref<8x8x128xf32, #tpu.memory_space<vmem>>, vector<1x8x128xf32>,
      %c0_59 = arith.constant 0 : index
      %c0_60 = arith.constant 0 : index
      %140 = vector.load %arg12[%c0_59, %c0_60] : memref<8x128xf32, #tpu.memory_space<vmem>>, vector<8x128xf32>
      %cst_61 = arith.constant 0.000000e+00 : f32
      %141 = vector.shape_cast %128 : vector<8x1xi1> to vector<8x1xi1>
      %142 = vector.broadcast %141 : vector<8x1xi1> to vector<8x128xi1>
      %143 = vector.broadcast %cst_61 : f32 to vector<8x128xf32>
      %144 = arith.select %142, %121, %143 : vector<8x128xi1>, vector<8x128xf32>
      %145 = arith.addf %140, %144 : vector<8x128xf32>
      %c0_62 = arith.constant 0 : index
      %c0_63 = arith.constant 0 : index
      %146 = vector.load %arg12[%c0_62, %c0_63] : memref<8x128xf32, #tpu.memory_space<vmem>>, vector<8x128xf32>
      tpu.vector_store %arg12[%c0_62, %c0_63], %145 {strides = array<i32>} : memref<8x128xf32, #tpu.memory_space<vmem>>, vector<8x128xf32>,
      %c0_64 = arith.constant 0 : index
      %c0_65 = arith.constant 0 : index
      %147 = vector.load %arg11[%c0_64, %c0_65] : memref<8x128xf32, #tpu.memory_space<vmem>>, vector<8x128xf32>
      %c2 = arith.constant 2 : index
      %c0_66 = arith.constant 0 : index
      %c0_67 = arith.constant 0 : index
      %148 = vector.load %arg13[%c2, %c0_66, %c0_67] : memref<8x8x384xf32, #tpu.memory_space<vmem>>, vector<1x8x384xf32>
      %149 = vector.shape_cast %148 : vector<1x8x384xf32> to vector<8x384xf32>
      %150 = arith.truncf %147 : vector<8x128xf32> to vector<8x128xbf16>
      %c0_68 = arith.constant 0 : index
      %c0_69 = arith.constant 0 : index
      %151 = vector.load %arg6[%c0_68, %c0_69] : memref<128x384xbf16, #tpu.memory_space<vmem>>, vector<128x384xbf16>
      %cst_70 = arith.constant dense<0.000000e+00> : vector<8x384xf32>
      %152 = tpu.matmul %150, %151, %cst_70 {dimension_numbers = #tpu.dot_dimension_numbers<[1], [0], [0], [1], [0, 0, 1, 1], [], []>} : vector<8x128xbf16>, vector<128x384xbf16>, vector<8x384xf32> -> vector<8x384xf32>
      %153 = vector.broadcast %28 : vector<1x384xf32> to vector<8x384xf32>
      %154 = arith.addf %152, %153 : vector<8x384xf32>
      %155 = vector.extract_strided_slice %149 {offsets = [0, 0], sizes = [8, 128], strides = [1, 1]} : vector<8x384xf32> to vector<8x128xf32>
      %156 = vector.extract_strided_slice %154 {offsets = [0, 0], sizes = [8, 128], strides = [1, 1]} : vector<8x384xf32> to vector<8x128xf32>
      %157 = arith.addf %155, %156 : vector<8x128xf32>
      %158 = arith.negf %157 : vector<8x128xf32>
      %159 = math.exp %158 : vector<8x128xf32>
      %cst_71 = arith.constant 1.000000e+00 : f32
      %160 = vector.broadcast %cst_71 : f32 to vector<8x128xf32>
      %161 = arith.addf %160, %159 : vector<8x128xf32>
      %162 = arith.divf %160, %161 : vector<8x128xf32>
      %163 = vector.extract_strided_slice %149 {offsets = [0, 128], sizes = [8, 128], strides = [1, 1]} : vector<8x384xf32> to vector<8x128xf32>
      %164 = vector.extract_strided_slice %154 {offsets = [0, 128], sizes = [8, 128], strides = [1, 1]} : vector<8x384xf32> to vector<8x128xf32>
      %165 = arith.addf %163, %164 : vector<8x128xf32>
      %166 = arith.negf %165 : vector<8x128xf32>
      %167 = math.exp %166 : vector<8x128xf32>
      %cst_72 = arith.constant 1.000000e+00 : f32
      %168 = vector.broadcast %cst_72 : f32 to vector<8x128xf32>
      %169 = arith.addf %168, %167 : vector<8x128xf32>
      %170 = arith.divf %168, %169 : vector<8x128xf32>
      %171 = vector.extract_strided_slice %149 {offsets = [0, 256], sizes = [8, 128], strides = [1, 1]} : vector<8x384xf32> to vector<8x128xf32>
      %172 = vector.extract_strided_slice %154 {offsets = [0, 256], sizes = [8, 128], strides = [1, 1]} : vector<8x384xf32> to vector<8x128xf32>
      %173 = arith.mulf %162, %172 : vector<8x128xf32>
      %174 = arith.addf %171, %173 : vector<8x128xf32>
      %175 = math.tanh %174 : vector<8x128xf32>
      %cst_73 = arith.constant 1.000000e+00 : f32
      %176 = vector.broadcast %cst_73 : f32 to vector<8x128xf32>
      %177 = arith.subf %176, %170 : vector<8x128xf32>
      %178 = arith.mulf %177, %175 : vector<8x128xf32>
      %179 = arith.mulf %170, %147 : vector<8x128xf32>
      %180 = arith.addf %178, %179 : vector<8x128xf32>
      %c2_i32 = arith.constant 2 : i32
      %181 = arith.addi %3, %c2_i32 : i32
      %182 = vector.broadcast %181 : i32 to vector<8x1xi32>
      %183 = arith.cmpi slt, %182, %15 : vector<8x1xi32>
      %c1_i32_74 = arith.constant 1 : i32
      %184 = vector.broadcast %c1_i32_74 : i32 to vector<8x1xi32>
      %185 = arith.subi %15, %184 : vector<8x1xi32>
      %186 = vector.broadcast %181 : i32 to vector<8x1xi32>
      %187 = arith.cmpi eq, %186, %185 : vector<8x1xi32>
      %188 = vector.shape_cast %183 : vector<8x1xi1> to vector<8x1xi1>
      %189 = vector.broadcast %188 : vector<8x1xi1> to vector<8x128xi1>
      %190 = arith.select %189, %180, %147 : vector<8x128xi1>, vector<8x128xf32>
      %c0_75 = arith.constant 0 : index
      %c0_76 = arith.constant 0 : index
      %191 = vector.load %arg11[%c0_75, %c0_76] : memref<8x128xf32, #tpu.memory_space<vmem>>, vector<8x128xf32>
      tpu.vector_store %arg11[%c0_75, %c0_76], %190 {strides = array<i32>} : memref<8x128xf32, #tpu.memory_space<vmem>>, vector<8x128xf32>,
      %cst_77 = arith.constant 0.000000e+00 : f32
      %192 = vector.shape_cast %183 : vector<8x1xi1> to vector<8x1xi1>
      %193 = vector.broadcast %192 : vector<8x1xi1> to vector<8x128xi1>
      %194 = vector.broadcast %cst_77 : f32 to vector<8x128xf32>
      %195 = arith.select %193, %180, %194 : vector<8x128xi1>, vector<8x128xf32>
      %c2_78 = arith.constant 2 : index
      %c0_79 = arith.constant 0 : index
      %c0_80 = arith.constant 0 : index
      %196 = vector.load %arg9[%c2_78, %c0_79, %c0_80] : memref<8x8x128xf32, #tpu.memory_space<vmem>>, vector<1x8x128xf32>
      %197 = vector.shape_cast %196 : vector<1x8x128xf32> to vector<8x128xf32>
      %198 = vector.shape_cast %195 : vector<8x128xf32> to vector<1x8x128xf32>
      tpu.vector_store %arg9[%c2_78, %c0_79, %c0_80], %198 {strides = array<i32>} : memref<8x8x128xf32, #tpu.memory_space<vmem>>, vector<1x8x128xf32>,
      %c0_81 = arith.constant 0 : index
      %c0_82 = arith.constant 0 : index
      %199 = vector.load %arg12[%c0_81, %c0_82] : memref<8x128xf32, #tpu.memory_space<vmem>>, vector<8x128xf32>
      %cst_83 = arith.constant 0.000000e+00 : f32
      %200 = vector.shape_cast %187 : vector<8x1xi1> to vector<8x1xi1>
      %201 = vector.broadcast %200 : vector<8x1xi1> to vector<8x128xi1>
      %202 = vector.broadcast %cst_83 : f32 to vector<8x128xf32>
      %203 = arith.select %201, %180, %202 : vector<8x128xi1>, vector<8x128xf32>
      %204 = arith.addf %199, %203 : vector<8x128xf32>
      %c0_84 = arith.constant 0 : index
      %c0_85 = arith.constant 0 : index
      %205 = vector.load %arg12[%c0_84, %c0_85] : memref<8x128xf32, #tpu.memory_space<vmem>>, vector<8x128xf32>
      tpu.vector_store %arg12[%c0_84, %c0_85], %204 {strides = array<i32>} : memref<8x128xf32, #tpu.memory_space<vmem>>, vector<8x128xf32>,
      %c0_86 = arith.constant 0 : index
      %c0_87 = arith.constant 0 : index
      %206 = vector.load %arg11[%c0_86, %c0_87] : memref<8x128xf32, #tpu.memory_space<vmem>>, vector<8x128xf32>
      %c3 = arith.constant 3 : index
      %c0_88 = arith.constant 0 : index
      %c0_89 = arith.constant 0 : index
      %207 = vector.load %arg13[%c3, %c0_88, %c0_89] : memref<8x8x384xf32, #tpu.memory_space<vmem>>, vector<1x8x384xf32>
      %208 = vector.shape_cast %207 : vector<1x8x384xf32> to vector<8x384xf32>
      %209 = arith.truncf %206 : vector<8x128xf32> to vector<8x128xbf16>
      %c0_90 = arith.constant 0 : index
      %c0_91 = arith.constant 0 : index
      %210 = vector.load %arg6[%c0_90, %c0_91] : memref<128x384xbf16, #tpu.memory_space<vmem>>, vector<128x384xbf16>
      %cst_92 = arith.constant dense<0.000000e+00> : vector<8x384xf32>
      %211 = tpu.matmul %209, %210, %cst_92 {dimension_numbers = #tpu.dot_dimension_numbers<[1], [0], [0], [1], [0, 0, 1, 1], [], []>} : vector<8x128xbf16>, vector<128x384xbf16>, vector<8x384xf32> -> vector<8x384xf32>
      %212 = vector.broadcast %28 : vector<1x384xf32> to vector<8x384xf32>
      %213 = arith.addf %211, %212 : vector<8x384xf32>
      %214 = vector.extract_strided_slice %208 {offsets = [0, 0], sizes = [8, 128], strides = [1, 1]} : vector<8x384xf32> to vector<8x128xf32>
      %215 = vector.extract_strided_slice %213 {offsets = [0, 0], sizes = [8, 128], strides = [1, 1]} : vector<8x384xf32> to vector<8x128xf32>
      %216 = arith.addf %214, %215 : vector<8x128xf32>
      %217 = arith.negf %216 : vector<8x128xf32>
      %218 = math.exp %217 : vector<8x128xf32>
      %cst_93 = arith.constant 1.000000e+00 : f32
      %219 = vector.broadcast %cst_93 : f32 to vector<8x128xf32>
      %220 = arith.addf %219, %218 : vector<8x128xf32>
      %221 = arith.divf %219, %220 : vector<8x128xf32>
      %222 = vector.extract_strided_slice %208 {offsets = [0, 128], sizes = [8, 128], strides = [1, 1]} : vector<8x384xf32> to vector<8x128xf32>
      %223 = vector.extract_strided_slice %213 {offsets = [0, 128], sizes = [8, 128], strides = [1, 1]} : vector<8x384xf32> to vector<8x128xf32>
      %224 = arith.addf %222, %223 : vector<8x128xf32>
      %225 = arith.negf %224 : vector<8x128xf32>
      %226 = math.exp %225 : vector<8x128xf32>
      %cst_94 = arith.constant 1.000000e+00 : f32
      %227 = vector.broadcast %cst_94 : f32 to vector<8x128xf32>
      %228 = arith.addf %227, %226 : vector<8x128xf32>
      %229 = arith.divf %227, %228 : vector<8x128xf32>
      %230 = vector.extract_strided_slice %208 {offsets = [0, 256], sizes = [8, 128], strides = [1, 1]} : vector<8x384xf32> to vector<8x128xf32>
      %231 = vector.extract_strided_slice %213 {offsets = [0, 256], sizes = [8, 128], strides = [1, 1]} : vector<8x384xf32> to vector<8x128xf32>
      %232 = arith.mulf %221, %231 : vector<8x128xf32>
      %233 = arith.addf %230, %232 : vector<8x128xf32>
      %234 = math.tanh %233 : vector<8x128xf32>
      %cst_95 = arith.constant 1.000000e+00 : f32
      %235 = vector.broadcast %cst_95 : f32 to vector<8x128xf32>
      %236 = arith.subf %235, %229 : vector<8x128xf32>
      %237 = arith.mulf %236, %234 : vector<8x128xf32>
      %238 = arith.mulf %229, %206 : vector<8x128xf32>
      %239 = arith.addf %237, %238 : vector<8x128xf32>
      %c3_i32 = arith.constant 3 : i32
      %240 = arith.addi %3, %c3_i32 : i32
      %241 = vector.broadcast %240 : i32 to vector<8x1xi32>
      %242 = arith.cmpi slt, %241, %15 : vector<8x1xi32>
      %c1_i32_96 = arith.constant 1 : i32
      %243 = vector.broadcast %c1_i32_96 : i32 to vector<8x1xi32>
      %244 = arith.subi %15, %243 : vector<8x1xi32>
      %245 = vector.broadcast %240 : i32 to vector<8x1xi32>
      %246 = arith.cmpi eq, %245, %244 : vector<8x1xi32>
      %247 = vector.shape_cast %242 : vector<8x1xi1> to vector<8x1xi1>
      %248 = vector.broadcast %247 : vector<8x1xi1> to vector<8x128xi1>
      %249 = arith.select %248, %239, %206 : vector<8x128xi1>, vector<8x128xf32>
      %c0_97 = arith.constant 0 : index
      %c0_98 = arith.constant 0 : index
      %250 = vector.load %arg11[%c0_97, %c0_98] : memref<8x128xf32, #tpu.memory_space<vmem>>, vector<8x128xf32>
      tpu.vector_store %arg11[%c0_97, %c0_98], %249 {strides = array<i32>} : memref<8x128xf32, #tpu.memory_space<vmem>>, vector<8x128xf32>,
      %cst_99 = arith.constant 0.000000e+00 : f32
      %251 = vector.shape_cast %242 : vector<8x1xi1> to vector<8x1xi1>
      %252 = vector.broadcast %251 : vector<8x1xi1> to vector<8x128xi1>
      %253 = vector.broadcast %cst_99 : f32 to vector<8x128xf32>
      %254 = arith.select %252, %239, %253 : vector<8x128xi1>, vector<8x128xf32>
      %c3_100 = arith.constant 3 : index
      %c0_101 = arith.constant 0 : index
      %c0_102 = arith.constant 0 : index
      %255 = vector.load %arg9[%c3_100, %c0_101, %c0_102] : memref<8x8x128xf32, #tpu.memory_space<vmem>>, vector<1x8x128xf32>
      %256 = vector.shape_cast %255 : vector<1x8x128xf32> to vector<8x128xf32>
      %257 = vector.shape_cast %254 : vector<8x128xf32> to vector<1x8x128xf32>
      tpu.vector_store %arg9[%c3_100, %c0_101, %c0_102], %257 {strides = array<i32>} : memref<8x8x128xf32, #tpu.memory_space<vmem>>, vector<1x8x128xf32>,
      %c0_103 = arith.constant 0 : index
      %c0_104 = arith.constant 0 : index
      %258 = vector.load %arg12[%c0_103, %c0_104] : memref<8x128xf32, #tpu.memory_space<vmem>>, vector<8x128xf32>
      %cst_105 = arith.constant 0.000000e+00 : f32
      %259 = vector.shape_cast %246 : vector<8x1xi1> to vector<8x1xi1>
      %260 = vector.broadcast %259 : vector<8x1xi1> to vector<8x128xi1>
      %261 = vector.broadcast %cst_105 : f32 to vector<8x128xf32>
      %262 = arith.select %260, %239, %261 : vector<8x128xi1>, vector<8x128xf32>
      %263 = arith.addf %258, %262 : vector<8x128xf32>
      %c0_106 = arith.constant 0 : index
      %c0_107 = arith.constant 0 : index
      %264 = vector.load %arg12[%c0_106, %c0_107] : memref<8x128xf32, #tpu.memory_space<vmem>>, vector<8x128xf32>
      tpu.vector_store %arg12[%c0_106, %c0_107], %263 {strides = array<i32>} : memref<8x128xf32, #tpu.memory_space<vmem>>, vector<8x128xf32>,
      %c0_108 = arith.constant 0 : index
      %c0_109 = arith.constant 0 : index
      %265 = vector.load %arg11[%c0_108, %c0_109] : memref<8x128xf32, #tpu.memory_space<vmem>>, vector<8x128xf32>
      %c4 = arith.constant 4 : index
      %c0_110 = arith.constant 0 : index
      %c0_111 = arith.constant 0 : index
      %266 = vector.load %arg13[%c4, %c0_110, %c0_111] : memref<8x8x384xf32, #tpu.memory_space<vmem>>, vector<1x8x384xf32>
      %267 = vector.shape_cast %266 : vector<1x8x384xf32> to vector<8x384xf32>
      %268 = arith.truncf %265 : vector<8x128xf32> to vector<8x128xbf16>
      %c0_112 = arith.constant 0 : index
      %c0_113 = arith.constant 0 : index
      %269 = vector.load %arg6[%c0_112, %c0_113] : memref<128x384xbf16, #tpu.memory_space<vmem>>, vector<128x384xbf16>
      %cst_114 = arith.constant dense<0.000000e+00> : vector<8x384xf32>
      %270 = tpu.matmul %268, %269, %cst_114 {dimension_numbers = #tpu.dot_dimension_numbers<[1], [0], [0], [1], [0, 0, 1, 1], [], []>} : vector<8x128xbf16>, vector<128x384xbf16>, vector<8x384xf32> -> vector<8x384xf32>
      %271 = vector.broadcast %28 : vector<1x384xf32> to vector<8x384xf32>
      %272 = arith.addf %270, %271 : vector<8x384xf32>
      %273 = vector.extract_strided_slice %267 {offsets = [0, 0], sizes = [8, 128], strides = [1, 1]} : vector<8x384xf32> to vector<8x128xf32>
      %274 = vector.extract_strided_slice %272 {offsets = [0, 0], sizes = [8, 128], strides = [1, 1]} : vector<8x384xf32> to vector<8x128xf32>
      %275 = arith.addf %273, %274 : vector<8x128xf32>
      %276 = arith.negf %275 : vector<8x128xf32>
      %277 = math.exp %276 : vector<8x128xf32>
      %cst_115 = arith.constant 1.000000e+00 : f32
      %278 = vector.broadcast %cst_115 : f32 to vector<8x128xf32>
      %279 = arith.addf %278, %277 : vector<8x128xf32>
      %280 = arith.divf %278, %279 : vector<8x128xf32>
      %281 = vector.extract_strided_slice %267 {offsets = [0, 128], sizes = [8, 128], strides = [1, 1]} : vector<8x384xf32> to vector<8x128xf32>
      %282 = vector.extract_strided_slice %272 {offsets = [0, 128], sizes = [8, 128], strides = [1, 1]} : vector<8x384xf32> to vector<8x128xf32>
      %283 = arith.addf %281, %282 : vector<8x128xf32>
      %284 = arith.negf %283 : vector<8x128xf32>
      %285 = math.exp %284 : vector<8x128xf32>
      %cst_116 = arith.constant 1.000000e+00 : f32
      %286 = vector.broadcast %cst_116 : f32 to vector<8x128xf32>
      %287 = arith.addf %286, %285 : vector<8x128xf32>
      %288 = arith.divf %286, %287 : vector<8x128xf32>
      %289 = vector.extract_strided_slice %267 {offsets = [0, 256], sizes = [8, 128], strides = [1, 1]} : vector<8x384xf32> to vector<8x128xf32>
      %290 = vector.extract_strided_slice %272 {offsets = [0, 256], sizes = [8, 128], strides = [1, 1]} : vector<8x384xf32> to vector<8x128xf32>
      %291 = arith.mulf %280, %290 : vector<8x128xf32>
      %292 = arith.addf %289, %291 : vector<8x128xf32>
      %293 = math.tanh %292 : vector<8x128xf32>
      %cst_117 = arith.constant 1.000000e+00 : f32
      %294 = vector.broadcast %cst_117 : f32 to vector<8x128xf32>
      %295 = arith.subf %294, %288 : vector<8x128xf32>
      %296 = arith.mulf %295, %293 : vector<8x128xf32>
      %297 = arith.mulf %288, %265 : vector<8x128xf32>
      %298 = arith.addf %296, %297 : vector<8x128xf32>
      %c4_i32 = arith.constant 4 : i32
      %299 = arith.addi %3, %c4_i32 : i32
      %300 = vector.broadcast %299 : i32 to vector<8x1xi32>
      %301 = arith.cmpi slt, %300, %15 : vector<8x1xi32>
      %c1_i32_118 = arith.constant 1 : i32
      %302 = vector.broadcast %c1_i32_118 : i32 to vector<8x1xi32>
      %303 = arith.subi %15, %302 : vector<8x1xi32>
      %304 = vector.broadcast %299 : i32 to vector<8x1xi32>
      %305 = arith.cmpi eq, %304, %303 : vector<8x1xi32>
      %306 = vector.shape_cast %301 : vector<8x1xi1> to vector<8x1xi1>
      %307 = vector.broadcast %306 : vector<8x1xi1> to vector<8x128xi1>
      %308 = arith.select %307, %298, %265 : vector<8x128xi1>, vector<8x128xf32>
      %c0_119 = arith.constant 0 : index
      %c0_120 = arith.constant 0 : index
      %309 = vector.load %arg11[%c0_119, %c0_120] : memref<8x128xf32, #tpu.memory_space<vmem>>, vector<8x128xf32>
      tpu.vector_store %arg11[%c0_119, %c0_120], %308 {strides = array<i32>} : memref<8x128xf32, #tpu.memory_space<vmem>>, vector<8x128xf32>,
      %cst_121 = arith.constant 0.000000e+00 : f32
      %310 = vector.shape_cast %301 : vector<8x1xi1> to vector<8x1xi1>
      %311 = vector.broadcast %310 : vector<8x1xi1> to vector<8x128xi1>
      %312 = vector.broadcast %cst_121 : f32 to vector<8x128xf32>
      %313 = arith.select %311, %298, %312 : vector<8x128xi1>, vector<8x128xf32>
      %c4_122 = arith.constant 4 : index
      %c0_123 = arith.constant 0 : index
      %c0_124 = arith.constant 0 : index
      %314 = vector.load %arg9[%c4_122, %c0_123, %c0_124] : memref<8x8x128xf32, #tpu.memory_space<vmem>>, vector<1x8x128xf32>
      %315 = vector.shape_cast %314 : vector<1x8x128xf32> to vector<8x128xf32>
      %316 = vector.shape_cast %313 : vector<8x128xf32> to vector<1x8x128xf32>
      tpu.vector_store %arg9[%c4_122, %c0_123, %c0_124], %316 {strides = array<i32>} : memref<8x8x128xf32, #tpu.memory_space<vmem>>, vector<1x8x128xf32>,
      %c0_125 = arith.constant 0 : index
      %c0_126 = arith.constant 0 : index
      %317 = vector.load %arg12[%c0_125, %c0_126] : memref<8x128xf32, #tpu.memory_space<vmem>>, vector<8x128xf32>
      %cst_127 = arith.constant 0.000000e+00 : f32
      %318 = vector.shape_cast %305 : vector<8x1xi1> to vector<8x1xi1>
      %319 = vector.broadcast %318 : vector<8x1xi1> to vector<8x128xi1>
      %320 = vector.broadcast %cst_127 : f32 to vector<8x128xf32>
      %321 = arith.select %319, %298, %320 : vector<8x128xi1>, vector<8x128xf32>
      %322 = arith.addf %317, %321 : vector<8x128xf32>
      %c0_128 = arith.constant 0 : index
      %c0_129 = arith.constant 0 : index
      %323 = vector.load %arg12[%c0_128, %c0_129] : memref<8x128xf32, #tpu.memory_space<vmem>>, vector<8x128xf32>
      tpu.vector_store %arg12[%c0_128, %c0_129], %322 {strides = array<i32>} : memref<8x128xf32, #tpu.memory_space<vmem>>, vector<8x128xf32>,
      %c0_130 = arith.constant 0 : index
      %c0_131 = arith.constant 0 : index
      %324 = vector.load %arg11[%c0_130, %c0_131] : memref<8x128xf32, #tpu.memory_space<vmem>>, vector<8x128xf32>
      %c5 = arith.constant 5 : index
      %c0_132 = arith.constant 0 : index
      %c0_133 = arith.constant 0 : index
      %325 = vector.load %arg13[%c5, %c0_132, %c0_133] : memref<8x8x384xf32, #tpu.memory_space<vmem>>, vector<1x8x384xf32>
      %326 = vector.shape_cast %325 : vector<1x8x384xf32> to vector<8x384xf32>
      %327 = arith.truncf %324 : vector<8x128xf32> to vector<8x128xbf16>
      %c0_134 = arith.constant 0 : index
      %c0_135 = arith.constant 0 : index
      %328 = vector.load %arg6[%c0_134, %c0_135] : memref<128x384xbf16, #tpu.memory_space<vmem>>, vector<128x384xbf16>
      %cst_136 = arith.constant dense<0.000000e+00> : vector<8x384xf32>
      %329 = tpu.matmul %327, %328, %cst_136 {dimension_numbers = #tpu.dot_dimension_numbers<[1], [0], [0], [1], [0, 0, 1, 1], [], []>} : vector<8x128xbf16>, vector<128x384xbf16>, vector<8x384xf32> -> vector<8x384xf32>
      %330 = vector.broadcast %28 : vector<1x384xf32> to vector<8x384xf32>
      %331 = arith.addf %329, %330 : vector<8x384xf32>
      %332 = vector.extract_strided_slice %326 {offsets = [0, 0], sizes = [8, 128], strides = [1, 1]} : vector<8x384xf32> to vector<8x128xf32>
      %333 = vector.extract_strided_slice %331 {offsets = [0, 0], sizes = [8, 128], strides = [1, 1]} : vector<8x384xf32> to vector<8x128xf32>
      %334 = arith.addf %332, %333 : vector<8x128xf32>
      %335 = arith.negf %334 : vector<8x128xf32>
      %336 = math.exp %335 : vector<8x128xf32>
      %cst_137 = arith.constant 1.000000e+00 : f32
      %337 = vector.broadcast %cst_137 : f32 to vector<8x128xf32>
      %338 = arith.addf %337, %336 : vector<8x128xf32>
      %339 = arith.divf %337, %338 : vector<8x128xf32>
      %340 = vector.extract_strided_slice %326 {offsets = [0, 128], sizes = [8, 128], strides = [1, 1]} : vector<8x384xf32> to vector<8x128xf32>
      %341 = vector.extract_strided_slice %331 {offsets = [0, 128], sizes = [8, 128], strides = [1, 1]} : vector<8x384xf32> to vector<8x128xf32>
      %342 = arith.addf %340, %341 : vector<8x128xf32>
      %343 = arith.negf %342 : vector<8x128xf32>
      %344 = math.exp %343 : vector<8x128xf32>
      %cst_138 = arith.constant 1.000000e+00 : f32
      %345 = vector.broadcast %cst_138 : f32 to vector<8x128xf32>
      %346 = arith.addf %345, %344 : vector<8x128xf32>
      %347 = arith.divf %345, %346 : vector<8x128xf32>
      %348 = vector.extract_strided_slice %326 {offsets = [0, 256], sizes = [8, 128], strides = [1, 1]} : vector<8x384xf32> to vector<8x128xf32>
      %349 = vector.extract_strided_slice %331 {offsets = [0, 256], sizes = [8, 128], strides = [1, 1]} : vector<8x384xf32> to vector<8x128xf32>
      %350 = arith.mulf %339, %349 : vector<8x128xf32>
      %351 = arith.addf %348, %350 : vector<8x128xf32>
      %352 = math.tanh %351 : vector<8x128xf32>
      %cst_139 = arith.constant 1.000000e+00 : f32
      %353 = vector.broadcast %cst_139 : f32 to vector<8x128xf32>
      %354 = arith.subf %353, %347 : vector<8x128xf32>
      %355 = arith.mulf %354, %352 : vector<8x128xf32>
      %356 = arith.mulf %347, %324 : vector<8x128xf32>
      %357 = arith.addf %355, %356 : vector<8x128xf32>
      %c5_i32 = arith.constant 5 : i32
      %358 = arith.addi %3, %c5_i32 : i32
      %359 = vector.broadcast %358 : i32 to vector<8x1xi32>
      %360 = arith.cmpi slt, %359, %15 : vector<8x1xi32>
      %c1_i32_140 = arith.constant 1 : i32
      %361 = vector.broadcast %c1_i32_140 : i32 to vector<8x1xi32>
      %362 = arith.subi %15, %361 : vector<8x1xi32>
      %363 = vector.broadcast %358 : i32 to vector<8x1xi32>
      %364 = arith.cmpi eq, %363, %362 : vector<8x1xi32>
      %365 = vector.shape_cast %360 : vector<8x1xi1> to vector<8x1xi1>
      %366 = vector.broadcast %365 : vector<8x1xi1> to vector<8x128xi1>
      %367 = arith.select %366, %357, %324 : vector<8x128xi1>, vector<8x128xf32>
      %c0_141 = arith.constant 0 : index
      %c0_142 = arith.constant 0 : index
      %368 = vector.load %arg11[%c0_141, %c0_142] : memref<8x128xf32, #tpu.memory_space<vmem>>, vector<8x128xf32>
      tpu.vector_store %arg11[%c0_141, %c0_142], %367 {strides = array<i32>} : memref<8x128xf32, #tpu.memory_space<vmem>>, vector<8x128xf32>,
      %cst_143 = arith.constant 0.000000e+00 : f32
      %369 = vector.shape_cast %360 : vector<8x1xi1> to vector<8x1xi1>
      %370 = vector.broadcast %369 : vector<8x1xi1> to vector<8x128xi1>
      %371 = vector.broadcast %cst_143 : f32 to vector<8x128xf32>
      %372 = arith.select %370, %357, %371 : vector<8x128xi1>, vector<8x128xf32>
      %c5_144 = arith.constant 5 : index
      %c0_145 = arith.constant 0 : index
      %c0_146 = arith.constant 0 : index
      %373 = vector.load %arg9[%c5_144, %c0_145, %c0_146] : memref<8x8x128xf32, #tpu.memory_space<vmem>>, vector<1x8x128xf32>
      %374 = vector.shape_cast %373 : vector<1x8x128xf32> to vector<8x128xf32>
      %375 = vector.shape_cast %372 : vector<8x128xf32> to vector<1x8x128xf32>
      tpu.vector_store %arg9[%c5_144, %c0_145, %c0_146], %375 {strides = array<i32>} : memref<8x8x128xf32, #tpu.memory_space<vmem>>, vector<1x8x128xf32>,
      %c0_147 = arith.constant 0 : index
      %c0_148 = arith.constant 0 : index
      %376 = vector.load %arg12[%c0_147, %c0_148] : memref<8x128xf32, #tpu.memory_space<vmem>>, vector<8x128xf32>
      %cst_149 = arith.constant 0.000000e+00 : f32
      %377 = vector.shape_cast %364 : vector<8x1xi1> to vector<8x1xi1>
      %378 = vector.broadcast %377 : vector<8x1xi1> to vector<8x128xi1>
      %379 = vector.broadcast %cst_149 : f32 to vector<8x128xf32>
      %380 = arith.select %378, %357, %379 : vector<8x128xi1>, vector<8x128xf32>
      %381 = arith.addf %376, %380 : vector<8x128xf32>
      %c0_150 = arith.constant 0 : index
      %c0_151 = arith.constant 0 : index
      %382 = vector.load %arg12[%c0_150, %c0_151] : memref<8x128xf32, #tpu.memory_space<vmem>>, vector<8x128xf32>
      tpu.vector_store %arg12[%c0_150, %c0_151], %381 {strides = array<i32>} : memref<8x128xf32, #tpu.memory_space<vmem>>, vector<8x128xf32>,
      %c0_152 = arith.constant 0 : index
      %c0_153 = arith.constant 0 : index
      %383 = vector.load %arg11[%c0_152, %c0_153] : memref<8x128xf32, #tpu.memory_space<vmem>>, vector<8x128xf32>
      %c6 = arith.constant 6 : index
      %c0_154 = arith.constant 0 : index
      %c0_155 = arith.constant 0 : index
      %384 = vector.load %arg13[%c6, %c0_154, %c0_155] : memref<8x8x384xf32, #tpu.memory_space<vmem>>, vector<1x8x384xf32>
      %385 = vector.shape_cast %384 : vector<1x8x384xf32> to vector<8x384xf32>
      %386 = arith.truncf %383 : vector<8x128xf32> to vector<8x128xbf16>
      %c0_156 = arith.constant 0 : index
      %c0_157 = arith.constant 0 : index
      %387 = vector.load %arg6[%c0_156, %c0_157] : memref<128x384xbf16, #tpu.memory_space<vmem>>, vector<128x384xbf16>
      %cst_158 = arith.constant dense<0.000000e+00> : vector<8x384xf32>
      %388 = tpu.matmul %386, %387, %cst_158 {dimension_numbers = #tpu.dot_dimension_numbers<[1], [0], [0], [1], [0, 0, 1, 1], [], []>} : vector<8x128xbf16>, vector<128x384xbf16>, vector<8x384xf32> -> vector<8x384xf32>
      %389 = vector.broadcast %28 : vector<1x384xf32> to vector<8x384xf32>
      %390 = arith.addf %388, %389 : vector<8x384xf32>
      %391 = vector.extract_strided_slice %385 {offsets = [0, 0], sizes = [8, 128], strides = [1, 1]} : vector<8x384xf32> to vector<8x128xf32>
      %392 = vector.extract_strided_slice %390 {offsets = [0, 0], sizes = [8, 128], strides = [1, 1]} : vector<8x384xf32> to vector<8x128xf32>
      %393 = arith.addf %391, %392 : vector<8x128xf32>
      %394 = arith.negf %393 : vector<8x128xf32>
      %395 = math.exp %394 : vector<8x128xf32>
      %cst_159 = arith.constant 1.000000e+00 : f32
      %396 = vector.broadcast %cst_159 : f32 to vector<8x128xf32>
      %397 = arith.addf %396, %395 : vector<8x128xf32>
      %398 = arith.divf %396, %397 : vector<8x128xf32>
      %399 = vector.extract_strided_slice %385 {offsets = [0, 128], sizes = [8, 128], strides = [1, 1]} : vector<8x384xf32> to vector<8x128xf32>
      %400 = vector.extract_strided_slice %390 {offsets = [0, 128], sizes = [8, 128], strides = [1, 1]} : vector<8x384xf32> to vector<8x128xf32>
      %401 = arith.addf %399, %400 : vector<8x128xf32>
      %402 = arith.negf %401 : vector<8x128xf32>
      %403 = math.exp %402 : vector<8x128xf32>
      %cst_160 = arith.constant 1.000000e+00 : f32
      %404 = vector.broadcast %cst_160 : f32 to vector<8x128xf32>
      %405 = arith.addf %404, %403 : vector<8x128xf32>
      %406 = arith.divf %404, %405 : vector<8x128xf32>
      %407 = vector.extract_strided_slice %385 {offsets = [0, 256], sizes = [8, 128], strides = [1, 1]} : vector<8x384xf32> to vector<8x128xf32>
      %408 = vector.extract_strided_slice %390 {offsets = [0, 256], sizes = [8, 128], strides = [1, 1]} : vector<8x384xf32> to vector<8x128xf32>
      %409 = arith.mulf %398, %408 : vector<8x128xf32>
      %410 = arith.addf %407, %409 : vector<8x128xf32>
      %411 = math.tanh %410 : vector<8x128xf32>
      %cst_161 = arith.constant 1.000000e+00 : f32
      %412 = vector.broadcast %cst_161 : f32 to vector<8x128xf32>
      %413 = arith.subf %412, %406 : vector<8x128xf32>
      %414 = arith.mulf %413, %411 : vector<8x128xf32>
      %415 = arith.mulf %406, %383 : vector<8x128xf32>
      %416 = arith.addf %414, %415 : vector<8x128xf32>
      %c6_i32 = arith.constant 6 : i32
      %417 = arith.addi %3, %c6_i32 : i32
      %418 = vector.broadcast %417 : i32 to vector<8x1xi32>
      %419 = arith.cmpi slt, %418, %15 : vector<8x1xi32>
      %c1_i32_162 = arith.constant 1 : i32
      %420 = vector.broadcast %c1_i32_162 : i32 to vector<8x1xi32>
      %421 = arith.subi %15, %420 : vector<8x1xi32>
      %422 = vector.broadcast %417 : i32 to vector<8x1xi32>
      %423 = arith.cmpi eq, %422, %421 : vector<8x1xi32>
      %424 = vector.shape_cast %419 : vector<8x1xi1> to vector<8x1xi1>
      %425 = vector.broadcast %424 : vector<8x1xi1> to vector<8x128xi1>
      %426 = arith.select %425, %416, %383 : vector<8x128xi1>, vector<8x128xf32>
      %c0_163 = arith.constant 0 : index
      %c0_164 = arith.constant 0 : index
      %427 = vector.load %arg11[%c0_163, %c0_164] : memref<8x128xf32, #tpu.memory_space<vmem>>, vector<8x128xf32>
      tpu.vector_store %arg11[%c0_163, %c0_164], %426 {strides = array<i32>} : memref<8x128xf32, #tpu.memory_space<vmem>>, vector<8x128xf32>,
      %cst_165 = arith.constant 0.000000e+00 : f32
      %428 = vector.shape_cast %419 : vector<8x1xi1> to vector<8x1xi1>
      %429 = vector.broadcast %428 : vector<8x1xi1> to vector<8x128xi1>
      %430 = vector.broadcast %cst_165 : f32 to vector<8x128xf32>
      %431 = arith.select %429, %416, %430 : vector<8x128xi1>, vector<8x128xf32>
      %c6_166 = arith.constant 6 : index
      %c0_167 = arith.constant 0 : index
      %c0_168 = arith.constant 0 : index
      %432 = vector.load %arg9[%c6_166, %c0_167, %c0_168] : memref<8x8x128xf32, #tpu.memory_space<vmem>>, vector<1x8x128xf32>
      %433 = vector.shape_cast %432 : vector<1x8x128xf32> to vector<8x128xf32>
      %434 = vector.shape_cast %431 : vector<8x128xf32> to vector<1x8x128xf32>
      tpu.vector_store %arg9[%c6_166, %c0_167, %c0_168], %434 {strides = array<i32>} : memref<8x8x128xf32, #tpu.memory_space<vmem>>, vector<1x8x128xf32>,
      %c0_169 = arith.constant 0 : index
      %c0_170 = arith.constant 0 : index
      %435 = vector.load %arg12[%c0_169, %c0_170] : memref<8x128xf32, #tpu.memory_space<vmem>>, vector<8x128xf32>
      %cst_171 = arith.constant 0.000000e+00 : f32
      %436 = vector.shape_cast %423 : vector<8x1xi1> to vector<8x1xi1>
      %437 = vector.broadcast %436 : vector<8x1xi1> to vector<8x128xi1>
      %438 = vector.broadcast %cst_171 : f32 to vector<8x128xf32>
      %439 = arith.select %437, %416, %438 : vector<8x128xi1>, vector<8x128xf32>
      %440 = arith.addf %435, %439 : vector<8x128xf32>
      %c0_172 = arith.constant 0 : index
      %c0_173 = arith.constant 0 : index
      %441 = vector.load %arg12[%c0_172, %c0_173] : memref<8x128xf32, #tpu.memory_space<vmem>>, vector<8x128xf32>
      tpu.vector_store %arg12[%c0_172, %c0_173], %440 {strides = array<i32>} : memref<8x128xf32, #tpu.memory_space<vmem>>, vector<8x128xf32>,
      %c0_174 = arith.constant 0 : index
      %c0_175 = arith.constant 0 : index
      %442 = vector.load %arg11[%c0_174, %c0_175] : memref<8x128xf32, #tpu.memory_space<vmem>>, vector<8x128xf32>
      %c7 = arith.constant 7 : index
      %c0_176 = arith.constant 0 : index
      %c0_177 = arith.constant 0 : index
      %443 = vector.load %arg13[%c7, %c0_176, %c0_177] : memref<8x8x384xf32, #tpu.memory_space<vmem>>, vector<1x8x384xf32>
      %444 = vector.shape_cast %443 : vector<1x8x384xf32> to vector<8x384xf32>
      %445 = arith.truncf %442 : vector<8x128xf32> to vector<8x128xbf16>
      %c0_178 = arith.constant 0 : index
      %c0_179 = arith.constant 0 : index
      %446 = vector.load %arg6[%c0_178, %c0_179] : memref<128x384xbf16, #tpu.memory_space<vmem>>, vector<128x384xbf16>
      %cst_180 = arith.constant dense<0.000000e+00> : vector<8x384xf32>
      %447 = tpu.matmul %445, %446, %cst_180 {dimension_numbers = #tpu.dot_dimension_numbers<[1], [0], [0], [1], [0, 0, 1, 1], [], []>} : vector<8x128xbf16>, vector<128x384xbf16>, vector<8x384xf32> -> vector<8x384xf32>
      %448 = vector.broadcast %28 : vector<1x384xf32> to vector<8x384xf32>
      %449 = arith.addf %447, %448 : vector<8x384xf32>
      %450 = vector.extract_strided_slice %444 {offsets = [0, 0], sizes = [8, 128], strides = [1, 1]} : vector<8x384xf32> to vector<8x128xf32>
      %451 = vector.extract_strided_slice %449 {offsets = [0, 0], sizes = [8, 128], strides = [1, 1]} : vector<8x384xf32> to vector<8x128xf32>
      %452 = arith.addf %450, %451 : vector<8x128xf32>
      %453 = arith.negf %452 : vector<8x128xf32>
      %454 = math.exp %453 : vector<8x128xf32>
      %cst_181 = arith.constant 1.000000e+00 : f32
      %455 = vector.broadcast %cst_181 : f32 to vector<8x128xf32>
      %456 = arith.addf %455, %454 : vector<8x128xf32>
      %457 = arith.divf %455, %456 : vector<8x128xf32>
      %458 = vector.extract_strided_slice %444 {offsets = [0, 128], sizes = [8, 128], strides = [1, 1]} : vector<8x384xf32> to vector<8x128xf32>
      %459 = vector.extract_strided_slice %449 {offsets = [0, 128], sizes = [8, 128], strides = [1, 1]} : vector<8x384xf32> to vector<8x128xf32>
      %460 = arith.addf %458, %459 : vector<8x128xf32>
      %461 = arith.negf %460 : vector<8x128xf32>
      %462 = math.exp %461 : vector<8x128xf32>
      %cst_182 = arith.constant 1.000000e+00 : f32
      %463 = vector.broadcast %cst_182 : f32 to vector<8x128xf32>
      %464 = arith.addf %463, %462 : vector<8x128xf32>
      %465 = arith.divf %463, %464 : vector<8x128xf32>
      %466 = vector.extract_strided_slice %444 {offsets = [0, 256], sizes = [8, 128], strides = [1, 1]} : vector<8x384xf32> to vector<8x128xf32>
      %467 = vector.extract_strided_slice %449 {offsets = [0, 256], sizes = [8, 128], strides = [1, 1]} : vector<8x384xf32> to vector<8x128xf32>
      %468 = arith.mulf %457, %467 : vector<8x128xf32>
      %469 = arith.addf %466, %468 : vector<8x128xf32>
      %470 = math.tanh %469 : vector<8x128xf32>
      %cst_183 = arith.constant 1.000000e+00 : f32
      %471 = vector.broadcast %cst_183 : f32 to vector<8x128xf32>
      %472 = arith.subf %471, %465 : vector<8x128xf32>
      %473 = arith.mulf %472, %470 : vector<8x128xf32>
      %474 = arith.mulf %465, %442 : vector<8x128xf32>
      %475 = arith.addf %473, %474 : vector<8x128xf32>
      %c7_i32 = arith.constant 7 : i32
      %476 = arith.addi %3, %c7_i32 : i32
      %477 = vector.broadcast %476 : i32 to vector<8x1xi32>
      %478 = arith.cmpi slt, %477, %15 : vector<8x1xi32>
      %c1_i32_184 = arith.constant 1 : i32
      %479 = vector.broadcast %c1_i32_184 : i32 to vector<8x1xi32>
      %480 = arith.subi %15, %479 : vector<8x1xi32>
      %481 = vector.broadcast %476 : i32 to vector<8x1xi32>
      %482 = arith.cmpi eq, %481, %480 : vector<8x1xi32>
      %483 = vector.shape_cast %478 : vector<8x1xi1> to vector<8x1xi1>
      %484 = vector.broadcast %483 : vector<8x1xi1> to vector<8x128xi1>
      %485 = arith.select %484, %475, %442 : vector<8x128xi1>, vector<8x128xf32>
      %c0_185 = arith.constant 0 : index
      %c0_186 = arith.constant 0 : index
      %486 = vector.load %arg11[%c0_185, %c0_186] : memref<8x128xf32, #tpu.memory_space<vmem>>, vector<8x128xf32>
      tpu.vector_store %arg11[%c0_185, %c0_186], %485 {strides = array<i32>} : memref<8x128xf32, #tpu.memory_space<vmem>>, vector<8x128xf32>,
      %cst_187 = arith.constant 0.000000e+00 : f32
      %487 = vector.shape_cast %478 : vector<8x1xi1> to vector<8x1xi1>
      %488 = vector.broadcast %487 : vector<8x1xi1> to vector<8x128xi1>
      %489 = vector.broadcast %cst_187 : f32 to vector<8x128xf32>
      %490 = arith.select %488, %475, %489 : vector<8x128xi1>, vector<8x128xf32>
      %c7_188 = arith.constant 7 : index
      %c0_189 = arith.constant 0 : index
      %c0_190 = arith.constant 0 : index
      %491 = vector.load %arg9[%c7_188, %c0_189, %c0_190] : memref<8x8x128xf32, #tpu.memory_space<vmem>>, vector<1x8x128xf32>
      %492 = vector.shape_cast %491 : vector<1x8x128xf32> to vector<8x128xf32>
      %493 = vector.shape_cast %490 : vector<8x128xf32> to vector<1x8x128xf32>
      tpu.vector_store %arg9[%c7_188, %c0_189, %c0_190], %493 {strides = array<i32>} : memref<8x8x128xf32, #tpu.memory_space<vmem>>, vector<1x8x128xf32>,
      %c0_191 = arith.constant 0 : index
      %c0_192 = arith.constant 0 : index
      %494 = vector.load %arg12[%c0_191, %c0_192] : memref<8x128xf32, #tpu.memory_space<vmem>>, vector<8x128xf32>
      %cst_193 = arith.constant 0.000000e+00 : f32
      %495 = vector.shape_cast %482 : vector<8x1xi1> to vector<8x1xi1>
      %496 = vector.broadcast %495 : vector<8x1xi1> to vector<8x128xi1>
      %497 = vector.broadcast %cst_193 : f32 to vector<8x128xf32>
      %498 = arith.select %496, %475, %497 : vector<8x128xi1>, vector<8x128xf32>
      %499 = arith.addf %494, %498 : vector<8x128xf32>
      %c0_194 = arith.constant 0 : index
      %c0_195 = arith.constant 0 : index
      %500 = vector.load %arg12[%c0_194, %c0_195] : memref<8x128xf32, #tpu.memory_space<vmem>>, vector<8x128xf32>
      tpu.vector_store %arg12[%c0_194, %c0_195], %499 {strides = array<i32>} : memref<8x128xf32, #tpu.memory_space<vmem>>, vector<8x128xf32>,
    } else {
    }
    %true = arith.constant true
    %9 = arith.xori %6, %true : i1
    %10 = arith.extui %9 : i1 to i32
    %c0_i32_2 = arith.constant 0 : i32
    %11 = arith.cmpi ne, %10, %c0_i32_2 : i32
    scf.if %11 {
      %cst = arith.constant 0.000000e+00 : f32
      %15 = vector.broadcast %cst : f32 to vector<8x8x128xf32>
      %c0 = arith.constant 0 : index
      %c0_4 = arith.constant 0 : index
      %c0_5 = arith.constant 0 : index
      %16 = vector.load %arg9[%c0, %c0_4, %c0_5] : memref<8x8x128xf32, #tpu.memory_space<vmem>>, vector<8x8x128xf32>
      tpu.vector_store %arg9[%c0, %c0_4, %c0_5], %15 {strides = array<i32>} : memref<8x8x128xf32, #tpu.memory_space<vmem>>, vector<8x8x128xf32>,
    } else {
    }
    %c1_i32 = arith.constant 1 : i32
    %12 = arith.cmpi eq, %arg1, %c1_i32 : i32
    %13 = arith.extui %12 : i1 to i32
    %c0_i32_3 = arith.constant 0 : i32
    %14 = arith.cmpi ne, %13, %c0_i32_3 : i32
    scf.if %14 {
      %c0 = arith.constant 0 : index
      %c0_4 = arith.constant 0 : index
      %15 = vector.load %arg12[%c0, %c0_4] : memref<8x128xf32, #tpu.memory_space<vmem>>, vector<8x128xf32>
      %c0_5 = arith.constant 0 : index
      %c0_6 = arith.constant 0 : index
      %16 = vector.load %arg10[%c0_5, %c0_6] : memref<8x128xf32, #tpu.memory_space<vmem>>, vector<8x128xf32>
      tpu.vector_store %arg10[%c0_5, %c0_6], %15 {strides = array<i32>} : memref<8x128xf32, #tpu.memory_space<vmem>>, vector<8x128xf32>,
    } else {
    }
    return
  }
  func.func @transform_0(%arg0: i32, %arg1: i32, %arg2: memref<2xi32, #tpu.memory_space<smem>>) -> (i32, i32, i32) {
    %c0_i32 = arith.constant 0 : i32
    %c0_i32_0 = arith.constant 0 : i32
    return %arg0, %arg1, %c0_i32 : i32, i32, i32
  }
  func.func @transform_1(%arg0: i32, %arg1: i32, %arg2: memref<2xi32, #tpu.memory_space<smem>>) -> (i32, i32) {
    %c0_i32 = arith.constant 0 : i32
    %c0_i32_0 = arith.constant 0 : i32
    return %arg0, %c0_i32 : i32, i32
  }
  func.func @transform_2(%arg0: i32, %arg1: i32, %arg2: memref<2xi32, #tpu.memory_space<smem>>) -> (i32, i32) {
    %c0_i32 = arith.constant 0 : i32
    %c0_i32_0 = arith.constant 0 : i32
    %c0_i32_1 = arith.constant 0 : i32
    return %c0_i32, %c0_i32_0 : i32, i32
  }
  func.func @transform_3(%arg0: i32, %arg1: i32, %arg2: memref<2xi32, #tpu.memory_space<smem>>) -> (i32, i32) {
    %c0_i32 = arith.constant 0 : i32
    %c0_i32_0 = arith.constant 0 : i32
    %c0_i32_1 = arith.constant 0 : i32
    return %c0_i32, %c0_i32_0 : i32, i32
  }
  func.func @transform_4(%arg0: i32, %arg1: i32, %arg2: memref<2xi32, #tpu.memory_space<smem>>) -> (i32, i32) {
    %c0_i32 = arith.constant 0 : i32
    %c0_i32_0 = arith.constant 0 : i32
    %c0_i32_1 = arith.constant 0 : i32
    return %c0_i32, %c0_i32_0 : i32, i32
  }
  func.func @transform_5(%arg0: i32, %arg1: i32, %arg2: memref<2xi32, #tpu.memory_space<smem>>) -> (i32, i32) {
    %c0_i32 = arith.constant 0 : i32
    %c0_i32_0 = arith.constant 0 : i32
    %c0_i32_1 = arith.constant 0 : i32
    return %c0_i32, %c0_i32_0 : i32, i32
  }
  func.func @transform_6(%arg0: i32, %arg1: i32, %arg2: memref<2xi32, #tpu.memory_space<smem>>) -> (i32, i32, i32) {
    %c0_i32 = arith.constant 0 : i32
    %c0_i32_0 = arith.constant 0 : i32
    return %arg1, %arg0, %c0_i32 : i32, i32, i32
  }
  func.func @transform_7(%arg0: i32, %arg1: i32, %arg2: memref<2xi32, #tpu.memory_space<smem>>) -> (i32, i32) {
    %c0_i32 = arith.constant 0 : i32
    %c0_i32_0 = arith.constant 0 : i32
    return %arg0, %c0_i32 : i32, i32
  }
}

</mosaic_0001>

<bundles_post_ra>
// kernel: rnn_layer_forward.1
= control target key start
LH: loop header
LB: loop body
LE: loop exit
PB: predicated region body
PF: predicated region fallthrough
CT: control target
= control target key end

     0   :  { %s6075_s0 = inlined_call_operand.vmem [shape: s32[2], index: 0, kind: input, shape index: {}]   ;;  %s6076_s1 = inlined_call_operand.vmem [shape: f32[16,16,8], index: 1, kind: input, shape index: {}]   ;;  %s6077_s2 = inlined_call_operand.vmem [shape: s32[16,1], index: 2, kind: input, shape index: {}]   ;;  %s6078_s3 = inlined_call_operand.vmem [shape: bf16[8,384], index: 3, kind: input, shape index: {}]   ;;  %s6079_s4 = inlined_call_operand.vmem [shape: bf16[128,384], index: 4, kind: input, shape index: {}]   ;;  %s6080_s5 = inlined_call_operand.vmem [shape: f32[1,384], index: 5, kind: input, shape index: {}]   ;;  %s6081_s6 = inlined_call_operand.vmem [shape: f32[1,384], index: 6, kind: input, shape index: {}]   ;;  %s6082_s7 = inlined_call_operand.vmem [shape: f32[16,16,128], index: 7, kind: output, shape index: {0}]   ;;  %s6083_s8 = inlined_call_operand.hbm [shape: f32[16,128], index: 8, kind: output, shape index: {1}]  }
   0x1   :  { %6090 = sst [smem:[#allocation18_spill]] %s6076_s1  ;;  %s14_s29 = sshll.u32 %s6075_s0, 4  ;;  %s15_s29 = int_to_ptr.vmem [resolvable:$true] %s14_s29 }
   0x2   :  { %6091 = sst [smem:[#allocation19_spill]] %s6077_s2  ;;  %s4483_s30 = scalar_lea.vmem %s15_s29, 16 }
   0x3   :  { %6092 = sst [smem:[#allocation20_spill]] %s6078_s3  ;;  %p4484_p0 = scmp.ne.s32.totalorder %s15_s29, %s4483_s30 }
   0x4   :  { %p4488_p1 = scmp.lt.s32.totalorder %s15_s29, %s15_s29  ;;  %p4489_p2 = scmp.lt.s32.totalorder %s4483_s30, %s4483_s30 }
   0x6   :  { %p4490_p3 = por %p4489_p2, %p4488_p1 }
   0x8   :  { %p4491_p4 = pnand %p4490_p3, %p4484_p0 }
   0xa   :  { %4494 = shalt.err (!%p4491_p4)  }
   0xb   :  { %s4607_s9 = smov [#allocation6]  }
   0xc   :  { %17 = dma.vmem_to_smem %s15_s29, 16, %s4607_s9, [#allocation5] }
   0xd   :  { %4561 = dma.done.wait [#allocation5], 16 }
   0xe   :  { %4562 = vsyncadd [#allocation5], 4294967280 }
   0xf   :  { %19 = sfence }
  0x10   :  { %20 = vsyncpa [#allocation10], 0 }
  0x11   :  { %22 = vsyncpa [#allocation10 + $0x1], 0  ;;  %s4664_s10 = smov 0   ;;  %s4666_s11 = smov 0  }
  0x12   :  { %s4668_s0 = smov 0   ;;  %s4670_s12 = smov 0  }
  0x13   :  { %s4672_s13 = smov 0   ;;  %s4674_s14 = smov 0  }
  0x14   :  { %s4676_s15 = smov 0   ;;  %s4678_s16 = smov 0  }
  0x15   :  { %s4680_s17 = smov 0   ;;  %s4682_s18 = smov 0  }
  0x16 LB: > { %6093 = sst [smem:[#allocation13_spill]] %s4601_s17  ;;  %s3654_s19 = sadd.s32 4294967295, %s4605_s18   ;;  %s4605_s18 = sphi %s4682_s18, %s28_s18   ;;  %s4601_s17 = sphi %s4680_s17, %s6131_s17   ;;  %s4597_s16 = sphi %s4678_s16, %s6138_s16   ;;  %s4593_s15 = sphi %s4676_s15, %s6129_s15   ;;  %s4589_s14 = sphi %s4674_s14, %s6137_s14   ;;  %s4585_s13 = sphi %s4672_s13, %s6136_s13   ;;  %s4581_s12 = sphi %s4670_s12, %s6135_s12   ;;  %s4577_s0 = sphi %s4668_s0, %s6134_s0   ;;  %s4573_s11 = sphi %s4666_s11, %s6133_s11   ;;  %s4569_s10 = sphi %s4664_s10, %s6132_s10  }
  0x17   : > { %s3655_s20 = sadd.s32 4294967294, %s4605_s18   ;;  %s37_s21 = sadd.s32 1, %s4597_s16 }
  0x18   : > { %s40_s22 = sadd.s32 1, %s4601_s17  ;;  %p38_p5 = scmp.ge.s32.totalorder %s37_s21, 2 }
  0x19   : > { %s49_s23 = sadd.s32 1, %s4585_s13  ;;  %p56_p6 = scmp.ne.s32.totalorder %s4585_s13, %s4581_s12 }
  0x1a   : > { %p57_p7 = scmp.eq.s32.totalorder %s4605_s18, 0  ;;  %s6140_s21 = smov (%p38_p5, %s37_s21), 0 }
  0x1b   : > { %6094 = sst [smem:[#allocation14_spill]] %s6140_s21  ;;  %s6142_s22 = smov (!%p38_p5, %s40_s22), %s4601_s17 }
  0x1c   : > { %s45_s24 = ssub.s32 %s4597_s16, %s6140_s21  ;;  %p4727_p8 = por %p57_p7, %p56_p6 }
  0x1d   : > { %p42_p9 = scmp.ge.s32.totalorder %s6142_s22, 2  ;;  %p198_p10 = scmp.eq.s32.totalorder %s3654_s19, 3 }
  0x1e   : > { %s213_s26 = sadd.s32 1, %s4577_s0  ;;  %p223_p11 = scmp.ne.s32.totalorder %s4577_s0, %s4573_s11 }
  0x1f   : > { %s6144_s22 = smov (%p42_p9, %s6142_s22), 0  ;;  %p4736_p12 = por %p198_p10, %p56_p6 }
  0x20   : > { %6096 = sst [smem:[#allocation15_spill]] %s6144_s22  ;;  %p4740_p13 = por %p223_p11, %p198_p10 }
  0x21   : > { %s44_s29 = ssub.s32 %s4601_s17, %s6144_s22  ;;  %p229_p0 = scmp.ne.s32.totalorder %s4573_s11, %s4569_s10 }
  0x22   : > { %s46_s30 = sor.u32 %s45_s24, %s44_s29  ;;  %p211_p1 = scmp.eq.s32.totalorder %s44_s29, 0 }
  0x23   : > { %p47_p2 = scmp.eq.s32.totalorder %s46_s30, 0  ;;  %p230_p3 = scmp.eq.s32.totalorder %s3655_s20, 3 }
  0x24   : > { %s4749_s9 = scalar_select %p211_p1, %s4577_s0, %s213_s26  }
  0x25   : > { %s4752_s19 = scalar_select %p47_p2, %s4585_s13, %s49_s23  }
  0x26   : > { %6099 = sst [smem:[#allocation16_spill]] %s4749_s9  ;;  %p4754_p4 = por %p230_p3, %p229_p0 }
  0x27   : > { %6100 = sst [smem:[#allocation17_spill]] %s4752_s19  ;;  %p3657_p5 = scmp.ge.s32.totalorder %s4605_s18, 4 }
  0x29   : > { %258 = sbr.rel (%p3657_p5) target bundleno = 60 (0x3c), region = 32 }
  0x2e   : > { %261 = sbr.rel (!%p4727_p8) target bundleno = 60 (0x3c), region = 36  ;;  %s263_s24 = sand.u32 (%p4727_p8), 1, %s4585_s13  }
  0x2f   : > { %s3912_s29 = sshll.u32 (%p4727_p8), %s4601_s17, 4  ;;  %s3658_s20 = sshll.u32 (%p4727_p8), %s263_s24, 6 }
  0x30   : > { %s268_s26 = sadd.s32 (%p4727_p8), %s4597_s16, %s3912_s29  ;;  %s6102_s1 = sld [smem:[#allocation18_spill]] (%p4727_p8) }
  0x31   : > { %s3661_s30 = sshll.u32 (%p4727_p8), %s268_s26, 3  ;;  %s265_s9 = scalar_lea.vmem (%p4727_p8), [#allocation7], %s3658_s20 }
  0x36   : > { %s270_s19 = scalar_lea.vmem %s6102_s1, %s3661_s30 }
  0x37   : > { %v313_v0 = vld [vmem:[%s270_s19] sm:$0xff]  ;;  %v315_v1 = vld [vmem:[%s270_s19 + $0x10] sm:$0xff] }
  0x38   : > { %v317_v2 = vld [vmem:[%s270_s19 + $0x20] sm:$0xff]  ;;  %314 = vst [vmem:[%s265_s9] sm:$0xff] %v313_v0  ;;  %316 = vst [vmem:[%s265_s9 + $0x8] sm:$0xff] %v315_v1  ;;  %v319_v3 = vld [vmem:[%s270_s19 + $0x30] sm:$0xff] }
  0x39   : > { %318 = vst [vmem:[%s265_s9 + $0x10] sm:$0xff] %v317_v2  ;;  %v321_v4 = vld [vmem:[%s270_s19 + $0x40] sm:$0xff]  ;;  %v323_v5 = vld [vmem:[%s270_s19 + $0x50] sm:$0xff]  ;;  %320 = vst [vmem:[%s265_s9 + $0x18] sm:$0xff] %v319_v3 }
  0x3a   : > { %322 = vst [vmem:[%s265_s9 + $0x20] sm:$0xff] %v321_v4  ;;  %324 = vst [vmem:[%s265_s9 + $0x28] sm:$0xff] %v323_v5  ;;  %v325_v6 = vld [vmem:[%s270_s19 + $0x60] sm:$0xff]  ;;  %v327_v7 = vld [vmem:[%s270_s19 + $0x70] sm:$0xff] }
  0x3b   : > { %326 = vst [vmem:[%s265_s9 + $0x30] sm:$0xff] %v325_v6  ;;  %328 = vst [vmem:[%s265_s9 + $0x38] sm:$0xff] %v327_v7 }
  0x3c PF: > { %p3662_p6 = scmp.ge.s32.totalorder %s4605_s18, 1  ;;  %p340_p7 = scmp.lt.s32.totalorder %s4605_s18, 5 }
  0x3e   : > { %p341_p8 = pnand %p3662_p6, %p340_p7 }
  0x3f   : > { %s347_s22 = sand.u32 (!%p341_p8), 1, %s4581_s12   ;;  %s6087_s25 = sand.u32 (!%p341_p8), 1, %s4573_s11  }
  0x40   : > { %344 = sbr.rel (%p341_p8) target bundleno = 2222 (0x8ae), region = 78  ;;  %s3663_s24 = sshll.u32 (!%p341_p8), %s347_s22, 6 }
  0x41   : > { %s4773_s19 = sshll.u32 (!%p341_p8), %s6087_s25, 3  ;;  %p387_p9 = scmp.lt.s32.totalorder (!%p341_p8), %s4593_s15, 1 }
  0x42   : > { %s6103_s2 = sld [smem:[#allocation19_spill]] (!%p341_p8)  ;;  %s4782_s23 = scalar_lea.vmem (!%p341_p8), [#allocation7], %s3663_s24 }
  0x43   : > { %s4784_s1 = scalar_lea.vmem (!%p341_p8), [#allocation8], %s3663_s24  ;;  %p3667_p10 = scmp.ne.s32.totalorder (!%p341_p8), %s4589_s14, 0 }
  0x45   : > { %s388_s9 = scalar_select %p387_p9, %s4593_s15, 1 }
  0x46   : > { %396 = sbr.rel (%p3667_p10) target bundleno = 77 (0x4d), region = 86 }
  0x47   : > { %s3666_s29 = sshll.u32 %s388_s9, 3 }
  0x48   : > { %s4780_s30 = scalar_lea.vmem %s6103_s2, %s3666_s29 }
  0x4b   : > { %v4608_v8 = vmov 0.0  }
  0x4c   : > { %397 = vst [vmem:[#allocation2] sm:$0xff] %v4608_v8  ;;  %398 = vst [vmem:[#allocation3] sm:$0xff] %v4608_v8 }
  0x4d PF: > { %s4789_s12 = sshll.u32 %s4589_s14, 3  ;;  %s4792_s22 = sld [smem:[#allocation6 + %s4593_s15]] }
  0x53   : > { %p3669_p11 = scmp.ge.s32.totalorder %s4789_s12, %s4792_s22 }
  0x54   : > { %s6104_s3 = sld [smem:[#allocation20_spill]] (!%p3669_p11)  ;;  %s1660_s26 = sadd.s32 (!%p3669_p11), 1, %s4789_s12 }
  0x55   : > { %404 = sbr.rel (%p3669_p11) target bundleno = 2169 (0x879), region = 90  ;;  %s1951_s9 = sadd.s32 (!%p3669_p11), 2, %s4789_s12 }
  0x56   : > { %s2242_s29 = sadd.s32 (!%p3669_p11), 3, %s4789_s12  ;;  %s3406_s25 = sadd.s32 (!%p3669_p11), 7, %s4789_s12 }
  0x5a   : > { %v422_v9 = vld [vmem:[%s6104_s3] sm:$0xff]  ;;  %vm465_vm0 = vcmask 1043456   ;;  %v406_v10 = vld [vmem:[%s4782_s23] sm:$0xff]  ;;  %v407_v11 = vld [vmem:[%s4782_s23 + $0x8] sm:$0xff]  ;;  %v4609_v14 = vmov 0   ;;  %vm452_vm1 = vcmask 64512   ;;  %v1370_v40 = vstv %s4789_s12 }
  0x5b   : > { %v3675_v12 = vcombine.high %v422_v9, %v422_v9  ;;  %v3674_v13 = vcombine.low %v422_v9, %v422_v9  ;;  %507 = vmatprep.mubr.bf16.mxu0 %v4609_v14  ;;  %v3913_v15 = vpack.c.bf16 %v407_v11, %v406_v10  ;;  %4261 = vset.pattern.permute.xlu0 %v4609_v14  ;;  %v4806_v16 = vld [vmem:[%s6079_s4 + $0xac] ss:$12 sps:$4 sm:$0xff]   ;;  %v4815_v18 = vld [vmem:[%s6079_s4 + $0xa8] ss:$12 sps:$4 sm:$0xff]   ;;  %v4827_v20 = vld [vmem:[%s6079_s4 + $0x90] ss:$12 sps:$4 sm:$0xff]   ;;  %v4900_v42 = vstv %s1660_s26 }
  0x5c   : > { %4262 = vset.pattern.permute.xlu1 %v4609_v14  ;;  %v4821_v19 = vld [vmem:[%s6079_s4 + $0x94] ss:$12 sps:$4 sm:$0xff]   ;;  %v409_v22 = vld [vmem:[%s4782_s23 + $0x18] sm:$0xff]  ;;  %v4845_v26 = vld [vmem:[%s6079_s4 + $0x78] ss:$12 sps:$4 sm:$0xff]   ;;  %v6088_v31 = vmov 0.0   ;;  %v4913_v46 = vstv %s1951_s9 }
  0x5d   : > { %3677 = vmatprep.subr.msk.bf16.mxu0 %vm465_vm0, %v3675_v12  ;;  %v467_v17 = vsel %vm465_vm0, %v3674_v13, 0  ;;  %3997 = vmatprep.mubr.msk.bf16.mxu1 %vm452_vm1, %v3913_v15  ;;  %v408_v21 = vld [vmem:[%s4782_s23 + $0x10] sm:$0xff]  ;;  %v4837_v23 = vld [vmem:[%s6079_s4 + $0x7c] ss:$12 sps:$4 sm:$0xff]   ;;  %v410_v28 = vld [vmem:[%s4782_s23 + $0x20] sm:$0xff]  ;;  %v4921_v48 = vstv %s2242_s29  ;;  %s2824_s9 = sadd.s32 5, %s4789_s12 }
  0x5e   : > { %490 = vmatpush1.bf16.msra.mxu0 %v467_v17  ;;  %v4283_v24 = vld [vmem:[%s6104_s3 + $0x8] ss:$0 sps:$4 sm:$0xff]   ;;  %v3914_v25 = vpack.c.bf16 %v409_v22, %v408_v21  ;;  %v4851_v27 = vld [vmem:[%s6079_s4 + $0x64] ss:$12 sps:$4 sm:$0xff]   ;;  %v411_v30 = vld [vmem:[%s4782_s23 + $0x28] sm:$0xff]  ;;  %vm4611_vm5 = vmmov 0   ;;  %v2825_v60 = vstv %s2824_s9  ;;  %v615_v22 = vlaneseq }
  0x5f   : > { %1268 = vmatprep.subr.bf16.mxu0 %v4806_v16  ;;  %4165 = vmatprep.subr.msk.bf16.mxu1 %vm465_vm0, %v4283_v24  ;;  %v473_v29 = vsel %vm465_vm0, %v4283_v24, 0  ;;  %v4290_v32 = vld [vmem:[%s6079_s4 + $0xb0] ss:$12 sps:$4 sm:$0xff]   ;;  %v4868_v33 = vld [vmem:[%s6079_s4 + $0x60] ss:$12 sps:$4 sm:$0xff]   ;;  %v3915_v34 = vpack.c.bf16 %v411_v30, %v410_v28  ;;  %s3115_s3 = sadd.s32 6, %s4789_s12  ;;  %v4998_v1 = vstv %s3406_s25 }
  0x60   : > { %3996 = vmatpush3.bf16.msra.mxu1 %v473_v29  ;;  %v4875_v35 = vld [vmem:[%s6079_s4 + $0x4c] ss:$12 sps:$4 sm:$0xff]   ;;  %v4881_v36 = vld [vmem:[%s6079_s4 + $0x48] ss:$12 sps:$4 sm:$0xff]   ;;  %v412_v38 = vld [vmem:[%s4782_s23 + $0x30] sm:$0xff]  ;;  %v4981_v63 = vstv %s3115_s3 }
  0x61   : > { %3678 = vmatmul.mubr.msk.bf16.vlgmr.msra.gmra.mxu0 %vm452_vm1, %v3913_v15  ;;  %4005 = vmatprep.subr.bf16.mxu1 %v6088_v31  ;;  %v4291_v37 = vld [vmem:[%s6079_s4 + $0x98] ss:$12 sps:$4 sm:$0xff]   ;;  %v413_v39 = vld [vmem:[%s4782_s23 + $0x38] sm:$0xff]  ;;  %v4898_v41 = vld [vmem:[%s6079_s4 + $0x34] ss:$12 sps:$4 sm:$0xff]   ;;  %s2533_s23 = sadd.s32 4, %s4789_s12 }
  0x62   : > { %1269 = vmatpush1.bf16.msra.mxu0 %v4815_v18  ;;  %517 = vmatprep.mubr.bf16.mxu0 %v4609_v14  ;;  %v4905_v43 = vld [vmem:[%s6079_s4 + $0x30] ss:$12 sps:$4 sm:$0xff]   ;;  %v4292_v44 = vld [vmem:[%s6079_s4 + $0x80] ss:$12 sps:$4 sm:$0xff]   ;;  %v3916_v47 = vpack.c.bf16 %v413_v39, %v412_v38  ;;  %v4941_v51 = vld [vmem:[%s6079_s4 + $0x18] ss:$12 sps:$4 sm:$0xff]   ;;  %v4966_v57 = vstv %s2533_s23 }
  0x63   : > { %1270 = vmatprep.subr.bf16.mxu0 %v4821_v19  ;;  %3998 = vmatmul.mubr.msk.bf16.vlgmr.msra.gmra.mxu1 %vm452_vm1, %v3914_v25  ;;  %v4911_v45 = vld [vmem:[%s4780_s30] sm:$0xff]  ;;  %v4928_v49 = vld [vmem:[%s6079_s4 + $0x1c] ss:$12 sps:$4 sm:$0xff]  }
  0x64   : > { %4001 = vmatprep.mubr.msk.bf16.mxu1 %vm452_vm1, %v3915_v34  ;;  %4006 = vmatpush3.bf16.msra.mxu1 %v4290_v32  ;;  %vm1371_vm2 = vcmp.lt.s32.totalorder %v1370_v40, %v4911_v45  ;;  %vm1662_vm3 = vcmp.lt.s32.totalorder %v4900_v42, %v4911_v45  ;;  %vm1953_vm4 = vcmp.lt.s32.totalorder %v4913_v46, %v4911_v45  ;;  %v4293_v52 = vld [vmem:[%s6079_s4 + $0x68] ss:$12 sps:$4 sm:$0xff]   ;;  %v4954_v54 = vld [vmem:[%s6079_s4 + $0x4] ss:$12 sps:$4 sm:$0xff]   ;;  %v4969_v58 = vadd.s32 4294967295, %v4911_v45 }
  0x65   : > { %4007 = vmatprep.subr.bf16.mxu1 %v6088_v31  ;;  %v1374_v50 = vsel %vm1371_vm2, 1, %v4609_v14  ;;  %v1955_v53 = vsel %vm1953_vm4, 1, %v4609_v14  ;;  %vm2244_vm6 = vcmp.lt.s32.totalorder %v4921_v48, %v4911_v45  ;;  %v4294_v55 = vld [vmem:[%s6079_s4 + $0x50] ss:$12 sps:$4 sm:$0xff]   ;;  %v1664_v56 = vsel %vm1662_vm3, 1, %v4609_v14  ;;  %v4979_v62 = vld [vmem:[#allocation2] sm:$0xff] }
  0x66   : > { %1271 = vmatpush1.bf16.msra.mxu0 %v4827_v20  ;;  %1376 = vperm.xlu0 %4261, %v1374_v50   ;;  %v2246_v59 = vsel %vm2244_vm6, 1, %v4609_v14  ;;  %v4977_v61 = vld [vmem:[%s6079_s4] ss:$12 sps:$4 sm:$0xff]   ;;  %vm2535_vm7 = vcmp.lt.s32.totalorder %v4966_v57, %v4911_v45  ;;  %v4295_v0 = vld [vmem:[%s6079_s4 + $0x38] ss:$12 sps:$4 sm:$0xff]   ;;  %vm2826_vm8 = vcmp.lt.s32.totalorder %v2825_v60, %v4911_v45  ;;  %vm3117_vm9 = vcmp.lt.s32.totalorder %v4981_v63, %v4911_v45 }
  0x67   : > { %1272 = vmatprep.subr.bf16.mxu0 %v4837_v23  ;;  %1957 = vperm.xlu1 %4262, %v1955_v53   ;;  %vm1663_vm10 = vcmp.eq.s32.totalorder %v4900_v42, %v4969_v58  ;;  %v2537_v2 = vsel %vm2535_vm7, 1, %v4609_v14  ;;  %vm2245_vm11 = vcmp.eq.s32.totalorder %v4921_v48, %v4969_v58  ;;  %vm2827_vm12 = vcmp.eq.s32.totalorder %v2825_v60, %v4969_v58  ;;  %v4296_v5 = vld [vmem:[%s6079_s4 + $0x20] ss:$12 sps:$4 sm:$0xff]   ;;  %v4297_v12 = vld [vmem:[%s6079_s4 + $0x8] ss:$12 sps:$4 sm:$0xff]  }
  0x68   : > { %4008 = vmatpush3.bf16.msra.mxu1 %v4291_v37  ;;  %v1091_v3 = vpack.c.bf16 %v4979_v62, %v4979_v62  ;;  %v2828_v4 = vsel %vm2826_vm8, 1, %v4609_v14  ;;  %vm1373_vm13 = vcmp.eq.s32.totalorder %v1370_v40, %v4969_v58  ;;  %v3119_v6 = vsel %vm3117_vm9, 1, %v4609_v14  ;;  %v4298_v13 = vld [vmem:[%s6079_s4 + $0xb0] ss:$12 sps:$4 sm:$0xff]   ;;  %v4299_v15 = vld [vmem:[%s6079_s4 + $0x98] ss:$12 sps:$4 sm:$0xff]  }
  0x69   : > { %3679 = vmatmul.mubr.msk.bf16.gmra.mxu0 %vm452_vm1, %v3914_v25  ;;  %4009 = vmatprep.subr.bf16.mxu1 %v6088_v31  ;;  %v1675_v7 = vsel %vm1663_vm10, 1, %v4609_v14  ;;  %vm3409_vm14 = vcmp.eq.s32.totalorder %v4998_v1, %v4969_v58  ;;  %v2257_v8 = vsel %vm2245_vm11, 1, %v4609_v14  ;;  %v2839_v9 = vsel %vm2827_vm12, 1, %v4609_v14  ;;  %v4301_v17 = vld [vmem:[%s6079_s4 + $0x68] ss:$12 sps:$4 sm:$0xff]  }
  0x6a   : > { %1273 = vmatpush1.bf16.msra.mxu0 %v4845_v26  ;;  %527 = vmatprep.mubr.bf16.mxu0 %v4609_v14  ;;  %v1384_v10 = vsel %vm1373_vm13, 1, %v4609_v14  ;;  %v3421_v11 = vsel %vm3409_vm14, 1, %v4609_v14  ;;  %v4305_v21 = vld [vmem:[%s6079_s4 + $0x8] ss:$12 sps:$4 sm:$0xff]   ;;  %v613_v28 = vld [vmem:[%s6080_s5] sm:$0x7]  ;;  %vm1954_vm0 = vcmp.eq.s32.totalorder %v4913_v46, %v4969_v58  ;;  %vm3118_vm2 = vcmp.eq.s32.totalorder %v4981_v63, %v4969_v58 }
  0x6b   : > { %1274 = vmatprep.subr.bf16.mxu0 %v4851_v27  ;;  %4002 = vmatmul.mubr.msk.bf16.gmra.mxu1 %vm452_vm1, %v3916_v47  ;;  %v4613_v32 = vmov 1934713408  }
  0x6c   : > { %4010 = vmatpush3.bf16.msra.mxu1 %v4292_v44  ;;  %4021 = vmatprep.mubr.msk.bf16.mxu1 %vm4611_vm5, %v6088_v31 }
  0x6d   : > { %4011 = vmatprep.subr.bf16.mxu1 %v6088_v31  ;;  %1666 = vperm.xlu0 %4261, %v1664_v56  }
  0x6e   : > { %1275 = vmatpush1.bf16.msra.mxu0 %v4868_v33  ;;  %2248 = vperm.xlu1 %4262, %v2246_v59  }
  0x6f   : > { %1276 = vmatprep.subr.bf16.mxu0 %v4875_v35 }
  0x70   : > { %4012 = vmatpush3.bf16.msra.mxu1 %v4293_v52 }
  0x71   : > { %3680 = vmatmul.mubr.msk.bf16.gmra.mxu0 %vm452_vm1, %v3915_v34  ;;  %4013 = vmatprep.subr.bf16.mxu1 %v6088_v31 }
  0x72   : > { %1277 = vmatpush1.bf16.msra.mxu0 %v4881_v36  ;;  %537 = vmatprep.mubr.bf16.mxu0 %v4609_v14 }
  0x73   : > { %1278 = vmatprep.subr.bf16.mxu0 %v4898_v41  ;;  %2539 = vperm.xlu0 %4261, %v2537_v2  }
  0x74   : > { %4014 = vmatpush3.bf16.msra.mxu1 %v4294_v55  ;;  %2830 = vperm.xlu1 %4262, %v2828_v4  }
  0x75   : > { %4015 = vmatprep.subr.bf16.mxu1 %v6088_v31 }
  0x76   : > { %1279 = vmatpush1.bf16.msra.mxu0 %v4905_v43 }
  0x77   : > { %1280 = vmatprep.subr.bf16.mxu0 %v4928_v49  ;;  %3121 = vperm.xlu0 %4261, %v3119_v6  }
  0x78   : > { %4016 = vmatpush3.bf16.msra.mxu1 %v4295_v0  ;;  %1386 = vperm.xlu1 %4262, %v1384_v10  }
  0x79   : > { %3681 = vmatmul.mubr.msk.bf16.gmra.mxu0 %vm452_vm1, %v3916_v47  ;;  %4017 = vmatprep.subr.bf16.mxu1 %v6088_v31  ;;  %vm2536_vm1 = vcmp.eq.s32.totalorder %v4966_v57, %v4969_v58 }
  0x7a   : > { %1281 = vmatpush1.bf16.msra.mxu0 %v4941_v51  ;;  %1300 = vmatprep.mubr.bf16.mxu0 %v4609_v14 }
  0x7b   : > { %1282 = vmatprep.subr.bf16.mxu0 %v4954_v54  ;;  %1677 = vperm.xlu0 %4261, %v1675_v7  }
  0x7c   : > { %4018 = vmatpush3.bf16.msra.mxu1 %v4296_v5 }
  0x7d   : > { %4019 = vmatprep.subr.bf16.mxu1 %v6088_v31 }
  0x7e   : > { %1283 = vmatpush1.bf16.msra.mxu0 %v4977_v61 }
  0x7f   : > { %1558 = vmatprep.subr.bf16.mxu0 %v4806_v16  ;;  %2259 = vperm.xlu0 %4261, %v2257_v8   ;;  %v4300_v16 = vld [vmem:[%s6079_s4 + $0x80] ss:$12 sps:$4 sm:$0xff]  }
  0x80   : > { %4020 = vmatpush3.bf16.msra.mxu1 %v4297_v12 }
  0x81   : > { %1301 = vmatmul.mubr.bf16.vlgmr.msra.gmra.mxu0 %v1091_v3  ;;  %4025 = vmatprep.subr.bf16.mxu1 %v6088_v31 }
  0x82   : > { %1559 = vmatpush1.bf16.msra.mxu0 %v4815_v18  ;;  %1590 = vmatprep.mubr.bf16.mxu0 %v4609_v14  ;;  %v4302_v18 = vld [vmem:[%s6079_s4 + $0x50] ss:$12 sps:$4 sm:$0xff]  }
  0x83   : > { %1560 = vmatprep.subr.bf16.mxu0 %v4821_v19  ;;  %4022 = vmatmul.mubr.bf16.vlgmr.msra.gmra.mxu1 %v1091_v3  ;;  %v4303_v19 = vld [vmem:[%s6079_s4 + $0x38] ss:$12 sps:$4 sm:$0xff]  }
  0x84   : > { %4041 = vmatprep.mubr.msk.bf16.mxu1 %vm4611_vm5, %v6088_v31  ;;  %2841 = vperm.xlu0 %4261, %v2839_v9  }
  0x85   : > { %4026 = vmatpush3.bf16.msra.mxu1 %v4298_v13 }
  0x86   : > { %1561 = vmatpush1.bf16.msra.mxu0 %v4827_v20  ;;  %4027 = vmatprep.subr.bf16.mxu1 %v6088_v31  ;;  %v4304_v20 = vld [vmem:[%s6079_s4 + $0x20] ss:$12 sps:$4 sm:$0xff]  }
  0x87   : > { %1562 = vmatprep.subr.bf16.mxu0 %v4837_v23  ;;  %v5080_v23 = vshrl.u32 %v615_v22, 7 }
  0x88   : > { %3423 = vperm.xlu0 %4261, %v3421_v11  }
  0x89   : > { %4028 = vmatpush3.bf16.msra.mxu1 %v4299_v15  ;;  %v617_v25 = vsub.s32 0, %v5080_v23  ;;  %v621_v30 = vsub.s32 1, %v5080_v23 }
  0x8a   : > { %1563 = vmatpush1.bf16.msra.mxu0 %v4845_v26  ;;  %4029 = vmatprep.subr.bf16.mxu1 %v6088_v31  ;;  %v4612_v26 = vmov 1983009808  }
  0x8b   : > { %1564 = vmatprep.subr.bf16.mxu0 %v4851_v27  ;;  %v657_v27 = vunpack.c.l.s4 %v4612_v26  ;;  %v5092_v39 = vrot.slane %v613_v28, %v621_v30 }
  0x8d   : > { %4030 = vmatpush3.bf16.msra.mxu1 %v4300_v16  ;;  %v658_v37 = vunpack.c.0.s8 %v657_v27 }
  0x8e   : > { %1565 = vmatpush1.bf16.msra.mxu0 %v4868_v33  ;;  %4031 = vmatprep.subr.bf16.mxu1 %v6088_v31  ;;  %v721_v33 = vunpack.c.l.s4 %v4613_v32 }
  0x8f   : > { %1566 = vmatprep.subr.bf16.mxu0 %v4875_v35  ;;  %v625_v35 = vsub.s32 2, %v5080_v23  ;;  %v5100_v44 = vsub.s32 %v658_v37, %v5080_v23 }
  0x90   : > { %v722_v40 = vunpack.c.0.s8 %v721_v33 }
  0x91   : > { %4032 = vmatpush3.bf16.msra.mxu1 %v4301_v17  ;;  %v5096_v42 = vrot.slane %v613_v28, %v625_v35 }
  0x92   : > { %1567 = vmatpush1.bf16.msra.mxu0 %v4881_v36  ;;  %4033 = vmatprep.subr.bf16.mxu1 %v6088_v31  ;;  %v5088_v36 = vrot.slane %v613_v28, %v617_v25  ;;  %v5111_v53 = vsub.s32 %v722_v40, %v5080_v23 }
  0x93   : > { %1568 = vmatprep.subr.bf16.mxu0 %v4898_v41 }
  0x95   : > { %4034 = vmatpush3.bf16.msra.mxu1 %v4302_v18 }
  0x96   : > { %1569 = vmatpush1.bf16.msra.mxu0 %v4905_v43  ;;  %4035 = vmatprep.subr.bf16.mxu1 %v6088_v31 }
  0x97   : > { %1570 = vmatprep.subr.bf16.mxu0 %v4928_v49  ;;  %v5106_v49 = vld [vmem:[%s6081_s6] sm:$0x7] }
  0x98   : > { %v5118_v0 = vrot.slane %v5106_v49, %v617_v25 }
  0x99   : > { %4036 = vmatpush3.bf16.msra.mxu1 %v4303_v19 }
  0x9a   : > { %1571 = vmatpush1.bf16.msra.mxu0 %v4941_v51  ;;  %4037 = vmatprep.subr.bf16.mxu1 %v6088_v31 }
  0x9b   : > { %1572 = vmatprep.subr.bf16.mxu0 %v4954_v54 }
  0x9d   : > { %4038 = vmatpush3.bf16.msra.mxu1 %v4304_v20 }
  0x9e   : > { %1573 = vmatpush1.bf16.msra.mxu0 %v4977_v61  ;;  %4039 = vmatprep.subr.bf16.mxu1 %v6088_v31 }
  0xa1   : > { %4040 = vmatpush3.bf16.msra.mxu1 %v4305_v21 }
  0xa2   : > { %4045 = vmatprep.subr.bf16.mxu1 %v6088_v31 }
 0x121   : > { %v509_v24 = vpop.f32.mrf.mxu0 }
 0x122   : > { %v630_v43 = vadd.f32 %v5088_v36, %v509_v24 }
 0x123   : > { %v511_v29 = vpop.f32.mrf.mxu0  ;;  %v3999_v48 = vpop.f32.mrf.mxu1 }
 0x124   : > { %v631_v50 = vadd.f32 %v5092_v39, %v511_v29  ;;  %v638_v55 = vadd.f32 %v3999_v48, %v5096_v42 }
 0x125   : > { %v513_v34 = vpop.f32.mrf.mxu0  ;;  %v582_v56 = vpop.f32.mrf.mxu1 }
 0x126   : > { %v633_v2 = vadd.f32 %v5088_v36, %v513_v34  ;;  %v632_v6 = vadd.f32 %v5096_v42, %v582_v56 }
 0x127   : > { %v515_v38 = vpop.f32.mrf.mxu0  ;;  %v4000_v7 = vpop.f32.mrf.mxu1 }
 0x128   : > { %v634_v8 = vadd.f32 %v5092_v39, %v515_v38  ;;  %v641_v11 = vadd.f32 %v4000_v7, %v5096_v42  ;;  %v926_v16 = vcombine.low %v632_v6, %v638_v55  ;;  %v927_v17 = vcombine.high %v632_v6, %v638_v55 }
 0x129   : > { %v519_v41 = vpop.f32.mrf.mxu0  ;;  %v585_v18 = vpop.f32.mrf.mxu1 }
 0x12a   : > { %v636_v45 = vadd.f32 %v5088_v36, %v519_v41  ;;  %v635_v22 = vadd.f32 %v5096_v42, %v585_v18  ;;  %v5139_v28 = vrot.slane %v927_v17, %v5100_v44  ;;  %v934_v34 = vrot.slane %v926_v16, %v5100_v44 }
 0x12b   : > { %v521_v47 = vpop.f32.mrf.mxu0  ;;  %v4003_v29 = vpop.f32.mrf.mxu1 }
 0x12c   : > { %v655_v51 = vcombine.high %v630_v43, %v636_v45  ;;  %v637_v52 = vadd.f32 %v5092_v39, %v521_v47  ;;  %v654_v59 = vcombine.low %v630_v43, %v636_v45  ;;  %v942_v37 = vcombine.low %v635_v22, %v641_v11 }
 0x12d   : > { %v523_v54 = vpop.f32.mrf.mxu0  ;;  %v598_v47 = vpop.f32.mrf.mxu1 }
 0x12e   : > { %v5115_v60 = vrot.slane %v655_v51, %v5100_v44  ;;  %v791_v61 = vcombine.high %v631_v50, %v637_v52  ;;  %v790_v3 = vcombine.low %v631_v50, %v637_v52  ;;  %v639_v4 = vadd.f32 %v5088_v36, %v523_v54 }
 0x12f   : > { %v525_v5 = vpop.f32.mrf.mxu0  ;;  %v662_v19 = vrot.slane %v654_v59, %v5100_v44  ;;  %v943_v59 = vcombine.high %v635_v22, %v641_v11  ;;  %v644_v6 = vadd.f32 %v5096_v42, %v598_v47 }
 0x130   : > { %v5125_v9 = vrot.slane %v791_v61, %v5100_v44  ;;  %v640_v10 = vadd.f32 %v5092_v39, %v525_v5  ;;  %v670_v12 = vcombine.low %v633_v2, %v639_v4  ;;  %v671_v13 = vcombine.high %v633_v2, %v639_v4  ;;  %v4004_v2 = vpop.f32.mrf.mxu1 }
 0x131   : > { %v529_v15 = vpop.f32.mrf.mxu0  ;;  %v5132_v24 = vrot.slane %v790_v3, %v5100_v44  ;;  %v950_v61 = vrot.slane %v942_v37, %v5100_v44  ;;  %v650_v5 = vadd.f32 %v4003_v29, %v5096_v42  ;;  %v653_v11 = vadd.f32 %v4004_v2, %v5096_v42 }
 0x132   : > { %v806_v20 = vcombine.low %v634_v8, %v640_v10  ;;  %v807_v21 = vcombine.high %v634_v8, %v640_v10  ;;  %v678_v25 = vrot.slane %v670_v12, %v5100_v44  ;;  %v5136_v26 = vrot.slane %v671_v13, %v5100_v44  ;;  %v601_v13 = vpop.f32.mrf.mxu1 }
 0x133   : > { %v531_v27 = vpop.f32.mrf.mxu0  ;;  %v642_v52 = vadd.f32 %v5088_v36, %v529_v15  ;;  %v5166_v8 = vrot.slane %v943_v59, %v5100_v44  ;;  %v990_v10 = vcombine.low %v934_v34, %v950_v61  ;;  %v991_v12 = vcombine.high %v934_v34, %v950_v61 }
 0x134   : > { %v814_v32 = vrot.slane %v806_v20, %v5100_v44  ;;  %v5143_v33 = vrot.slane %v807_v21, %v5100_v44  ;;  %v718_v38 = vcombine.low %v662_v19, %v678_v25  ;;  %v719_v40 = vcombine.high %v662_v19, %v678_v25 }
 0x135   : > { %v734_v41 = vcombine.low %v5115_v60, %v5136_v26  ;;  %v735_v43 = vcombine.high %v5115_v60, %v5136_v26  ;;  %v533_v45 = vpop.f32.mrf.mxu0  ;;  %v643_v55 = vadd.f32 %v5092_v39, %v531_v27  ;;  %v958_v16 = vcombine.low %v644_v6, %v650_v5 }
 0x136   : > { %v855_v48 = vcombine.high %v5132_v24, %v814_v32  ;;  %v870_v50 = vcombine.low %v5125_v9, %v5143_v33  ;;  %v871_v51 = vcombine.high %v5125_v9, %v5143_v33  ;;  %v854_v54 = vcombine.low %v5132_v24, %v814_v32 }
 0x137   : > { %v535_v56 = vpop.f32.mrf.mxu0  ;;  %v645_v3 = vadd.f32 %v5088_v36, %v533_v45  ;;  %v5161_v4 = vrot.slane %v718_v38, %v5111_v53  ;;  %v959_v17 = vcombine.high %v644_v6, %v650_v5  ;;  %v647_v18 = vadd.f32 %v5096_v42, %v601_v13 }
 0x138   : > { %v646_v19 = vadd.f32 %v5092_v39, %v535_v56  ;;  %v1006_v21 = vcombine.low %v5139_v28, %v5166_v8  ;;  %v1007_v22 = vcombine.high %v5139_v28, %v5166_v8  ;;  %v5177_v24 = vrot.slane %v719_v40, %v5111_v53  ;;  %v4329_v28 = vld [vmem:[%s6079_s4 + $0x38] ss:$12 sps:$4 sm:$0xff]  }
 0x139   : > { %v539_v7 = vpop.f32.mrf.mxu0  ;;  %v5181_v29 = vrot.slane %v854_v54, %v5111_v53  ;;  %v966_v42 = vrot.slane %v958_v16, %v5100_v44  ;;  %v5185_v34 = vrot.slane %v959_v17, %v5100_v44  ;;  %v974_v37 = vcombine.low %v647_v18, %v653_v11  ;;  %v5470_v8 = vld [vmem:[%s6079_s4 + $0x18] ss:$12 sps:$4 sm:$0xff]  }
 0x13a   : > { %v648_v15 = vadd.f32 %v5088_v36, %v539_v7  ;;  %v975_v38 = vcombine.high %v647_v18, %v653_v11  ;;  %v5188_v45 = vrot.slane %v991_v12, %v5111_v53  ;;  %v5194_v59 = vrot.slane %v990_v10, %v5111_v53 }
 0x13b   : > { %v541_v20 = vpop.f32.mrf.mxu0  ;;  %v982_v2 = vrot.slane %v974_v37, %v5100_v44  ;;  %v5202_v6 = vrot.slane %v855_v48, %v5111_v53  ;;  %v5209_v10 = vrot.slane %v734_v41, %v5111_v53 }
 0x13c   : > { %v687_v25 = vcombine.high %v642_v52, %v648_v15  ;;  %v649_v27 = vadd.f32 %v5092_v39, %v541_v20  ;;  %v686_v47 = vcombine.low %v642_v52, %v648_v15  ;;  %v5199_v5 = vrot.slane %v975_v38, %v5100_v44 }
 0x13d   : > { %v543_v32 = vpop.f32.mrf.mxu0  ;;  %v1022_v15 = vcombine.low %v966_v42, %v982_v2  ;;  %v1023_v16 = vcombine.high %v966_v42, %v982_v2 }
 0x13e   : > { %v5191_v40 = vrot.slane %v687_v25, %v5100_v44  ;;  %v823_v56 = vcombine.high %v643_v55, %v649_v27  ;;  %v651_v54 = vadd.f32 %v5088_v36, %v543_v32  ;;  %v822_v7 = vcombine.low %v643_v55, %v649_v27 }
 0x13f   : > { %v545_v61 = vpop.f32.mrf.mxu0  ;;  %v694_v17 = vrot.slane %v686_v47, %v5100_v44  ;;  %v1038_v48 = vcombine.low %v5185_v34, %v5199_v5  ;;  %v1039_v41 = vcombine.high %v5185_v34, %v5199_v5  ;;  %v5225_v32 = vrot.slane %v1023_v16, %v5111_v53 }
 0x140   : > { %v5205_v52 = vrot.slane %v823_v56, %v5100_v44  ;;  %v652_v12 = vadd.f32 %v5092_v39, %v545_v61  ;;  %v702_v11 = vcombine.low %v645_v3, %v651_v54  ;;  %v703_v36 = vcombine.high %v645_v3, %v651_v54 }
 0x141   : > { %v1302_v13 = vpop.f32.mrf.mxu0  ;;  %v5219_v3 = vrot.slane %v1022_v15, %v5111_v53  ;;  %v830_v27 = vrot.slane %v822_v7, %v5100_v44 }
 0x142   : > { %v838_v18 = vcombine.low %v646_v19, %v652_v12  ;;  %v839_v20 = vcombine.high %v646_v19, %v652_v12  ;;  %v710_v55 = vrot.slane %v702_v11, %v5100_v44  ;;  %v717_v25 = vrot.slane %v703_v36, %v5100_v44 }
 0x143   : > { %v1304_v39 = vpop.f32.mrf.mxu0  ;;  %v1055_v11 = vcombine.high %v5194_v59, %v5219_v3  ;;  %v1054_v9 = vcombine.low %v5194_v59, %v5219_v3 }
 0x144   : > { %v846_v42 = vrot.slane %v838_v18, %v5100_v44  ;;  %v853_v19 = vrot.slane %v839_v20, %v5100_v44  ;;  %v750_v37 = vcombine.low %v694_v17, %v710_v55  ;;  %v751_v38 = vcombine.high %v694_v17, %v710_v55 }
 0x145   : > { %v766_v47 = vcombine.low %v5191_v40, %v717_v25  ;;  %v767_v56 = vcombine.high %v5191_v40, %v717_v25  ;;  %v1306_v54 = vpop.f32.mrf.mxu0  ;;  %v1303_v44 = vadd.f32 %v1302_v13, %v5118_v0  ;;  %v5261_v55 = vrot.slane %v5106_v49, %v621_v30 }
 0x146   : > { %v886_v34 = vcombine.low %v830_v27, %v846_v42  ;;  %v887_v61 = vcombine.high %v830_v27, %v846_v42  ;;  %v902_v2 = vcombine.low %v5205_v52, %v853_v19  ;;  %v903_v5 = vcombine.high %v5205_v52, %v853_v19 }
 0x147   : > { %v5232_v7 = vrot.slane %v750_v37, %v5111_v53  ;;  %v1307_v12 = vpop.f32.mrf.mxu0  ;;  %v5238_v36 = vrot.slane %v751_v38, %v5111_v53  ;;  %v1343_v37 = vpop.f32.mrf.mxu1  ;;  %v5270_v38 = vrot.slane %v766_v47, %v5111_v53  ;;  %v5276_v30 = vrot.slane %v1006_v21, %v5111_v53  ;;  %v4482_v21 = vld [vmem:[%s4780_s30] sm:$0xff] }
 0x148   : > { %v5241_v40 = vrot.slane %v886_v34, %v5111_v53  ;;  %v5246_v52 = vrot.slane %v887_v61, %v5111_v53  ;;  %v5279_v54 = vrot.slane %v1038_v48, %v5111_v53  ;;  %v5287_v61 = vrot.slane %v870_v50, %v5111_v53 }
 0x149   : > { %v782_v13 = vcombine.low %v5161_v4, %v5232_v7  ;;  %v783_v17 = vcombine.high %v5161_v4, %v5232_v7  ;;  %v5290_v47 = vrot.slane %v902_v2, %v5111_v53  ;;  %v4023_v12 = vpop.f32.mrf.mxu1  ;;  %v1305_v16 = vadd.f32 %v1304_v39, %v5261_v55  ;;  %v5515_v4 = vpop.permute.xlu1 %1957 }
 0x14a   : > { %v919_v25 = vcombine.high %v5181_v29, %v5241_v40  ;;  %v918_v34 = vcombine.low %v5181_v29, %v5241_v40  ;;  %v5309_v48 = vrot.slane %v735_v43, %v5111_v53  ;;  %v5318_v39 = vrot.slane %v1007_v22, %v5111_v53  ;;  %v4333_v22 = vld [vmem:[%s6079_s4 + $0x20] ss:$12 sps:$4 sm:$0xff]  }
 0x14b   : > { %v1349_v19 = vadd.f32 %v1303_v44, %v782_v13  ;;  %v1346_v12 = vpop.f32.mrf.mxu1  ;;  %v5312_v13 = vrot.slane %v767_v56, %v5111_v53  ;;  %v5321_v2 = vrot.slane %v1039_v41, %v5111_v53  ;;  %v5330_v60 = vrot.slane %v903_v5, %v5111_v53  ;;  %v5486_v56 = vld [vmem:[%s6079_s4] ss:$12 sps:$4 sm:$0xff]  }
 0x14c   : > { %v1356_v26 = vadd.f32 %v1305_v16, %v918_v34  ;;  %v5347_v5 = vrot.slane %v5106_v49, %v625_v35  ;;  %v1377_v49 = vpop.permute.xlu0 %1376  ;;  %v2548_v50 = vsel %vm2536_vm1, 1, %v4609_v14  ;;  %vm3408_vm3 = vcmp.lt.s32.totalorder %v4998_v1, %v4482_v21 }
 0x14d   : > { %v3710_v44 = vmul.f32 -1.442695, %v1349_v19  ;;  %v4024_v43 = vpop.f32.mrf.mxu1  ;;  %vm1378_vm15 = vcmp.eq.s32.totalorder %v1377_v49, 1  ;;  %v5422_v49 = vld [vmem:[%s6079_s4 + $0x60] ss:$12 sps:$4 sm:$0xff]   ;;  %v3410_v46 = vsel %vm3408_vm3, 1, %v4609_v14 }
 0x14e   : > { %v3711_v33 = vmul.f32 -1.442695, %v1356_v26  ;;  %v1344_v12 = vadd.f32 %v1343_v37, %v5347_v5  ;;  %v4337_v19 = vld [vmem:[%s6079_s4 + $0x8] ss:$12 sps:$4 sm:$0xff]   ;;  %vm1959_vm8 = vcmp.eq.s32.totalorder %v5515_v4, 1 }
 0x14f   : > { %4402 = vpow2.f32 %v3710_v44  ;;  %v5327_v44 = vrot.slane %v871_v51, %v5111_v53  ;;  %v4346_v4 = vld [vmem:[%s6079_s4 + $0xb0] ss:$12 sps:$4 sm:$0xff]  }
 0x150   : > { %4404 = vpow2.f32 %v3711_v33 }
 0x15c   : > { %v4403_v51 = vpop.eup %4402 }
 0x15d   : > { %v1353_v41 = vadd.f32 1.0, %v4403_v51  ;;  %v4405_v16 = vpop.eup %4404 }
 0x15e   : > { %v1360_v34 = vadd.f32 1.0, %v4405_v16 }
 0x15f   : > { %4406 = vrcp.f32 %v1353_v41 }
 0x160   : > { %4408 = vrcp.f32 %v1360_v34 }
 0x16c   : > { %v4407_v43 = vpop.eup %4406 }
 0x16d   : > { %v1363_v26 = vmul.f32 %v4407_v43, %v1344_v12  ;;  %v4409_v51 = vpop.eup %4408  ;;  %v4309_v12 = vld [vmem:[%s6079_s4 + $0xb0] ss:$12 sps:$4 sm:$0xff]   ;;  %v5384_v43 = vld [vmem:[%s6079_s4 + $0x94] ss:$12 sps:$4 sm:$0xff]  }
 0x16e   : > { %v1366_v41 = vsub.f32 1.0, %v4409_v51  ;;  %v1368_v35 = vmul.f32 %v4409_v51, %v4979_v62  ;;  %v5400_v51 = vld [vmem:[%s6079_s4 + $0x7c] ss:$12 sps:$4 sm:$0xff]  }
 0x16f   : > { %v1364_v33 = vadd.f32 %v1363_v26, %v1054_v9  ;;  %v5390_v26 = vld [vmem:[%s6079_s4 + $0x90] ss:$12 sps:$4 sm:$0xff]  }
 0x171   : > { %4410 = vtanh.f32 %v1364_v33  ;;  %v4313_v33 = vld [vmem:[%s6079_s4 + $0x98] ss:$12 sps:$4 sm:$0xff]  }
 0x17e   : > { %v4411_v53 = vpop.eup %4410 }
 0x17f   : > { %v1367_v23 = vmul.f32 %v4411_v53, %v1366_v41  ;;  %v5369_v53 = vld [vmem:[%s6079_s4 + $0xac] ss:$12 sps:$4 sm:$0xff]  }
 0x180   : > { %1849 = vmatprep.subr.bf16.mxu0 %v5369_v53  ;;  %v5406_v41 = vld [vmem:[%s6079_s4 + $0x78] ss:$12 sps:$4 sm:$0xff]  }
 0x181   : > { %v5353_v16 = vadd.f32 %v1368_v35, %v1367_v23  ;;  %v4317_v23 = vld [vmem:[%s6079_s4 + $0x80] ss:$12 sps:$4 sm:$0xff]   ;;  %v5416_v35 = vld [vmem:[%s6079_s4 + $0x64] ss:$12 sps:$4 sm:$0xff]  }
 0x183   : > { %v5357_v37 = vsel %vm1378_vm15, %v5353_v16, %v4979_v62  ;;  %v1381_v34 = vsel %vm1378_vm15, %v5353_v16, 0.0  ;;  %v5374_v62 = vld [vmem:[%s6079_s4 + $0xa8] ss:$12 sps:$4 sm:$0xff]  }
 0x184   : > { %1382 = vst [vmem:[%s4784_s1] sm:$0xff] %v1381_v34  ;;  %v1397_v9 = vpack.c.bf16 %v5357_v37, %v5357_v37  ;;  %v4321_v34 = vld [vmem:[%s6079_s4 + $0x68] ss:$12 sps:$4 sm:$0xff]  }
 0x186   : > { %1591 = vmatmul.mubr.bf16.vlgmr.msra.gmra.mxu0 %v1397_v9  ;;  %4042 = vmatmul.mubr.bf16.vlgmr.msra.gmra.mxu1 %v1397_v9  ;;  %v5432_v9 = vld [vmem:[%s6079_s4 + $0x4c] ss:$12 sps:$4 sm:$0xff]  }
 0x187   : > { %1881 = vmatprep.mubr.bf16.mxu0 %v4609_v14  ;;  %4061 = vmatprep.mubr.msk.bf16.mxu1 %vm4611_vm5, %v6088_v31 }
 0x188   : > { %1850 = vmatpush1.bf16.msra.mxu0 %v5374_v62  ;;  %4046 = vmatpush3.bf16.msra.mxu1 %v4309_v12  ;;  %v5438_v12 = vld [vmem:[%s6079_s4 + $0x48] ss:$12 sps:$4 sm:$0xff]  }
 0x189   : > { %4047 = vmatprep.subr.bf16.mxu1 %v6088_v31  ;;  %1851 = vmatprep.subr.bf16.mxu0 %v5384_v43 }
 0x18c   : > { %1852 = vmatpush1.bf16.msra.mxu0 %v5390_v26  ;;  %4048 = vmatpush3.bf16.msra.mxu1 %v4313_v33  ;;  %v4325_v33 = vld [vmem:[%s6079_s4 + $0x50] ss:$12 sps:$4 sm:$0xff]  }
 0x18d   : > { %4049 = vmatprep.subr.bf16.mxu1 %v6088_v31  ;;  %1853 = vmatprep.subr.bf16.mxu0 %v5400_v51 }
 0x190   : > { %1854 = vmatpush1.bf16.msra.mxu0 %v5406_v41  ;;  %4050 = vmatpush3.bf16.msra.mxu1 %v4317_v23  ;;  %v5448_v23 = vld [vmem:[%s6079_s4 + $0x34] ss:$12 sps:$4 sm:$0xff]  }
 0x191   : > { %4051 = vmatprep.subr.bf16.mxu1 %v6088_v31  ;;  %1855 = vmatprep.subr.bf16.mxu0 %v5416_v35 }
 0x194   : > { %1856 = vmatpush1.bf16.msra.mxu0 %v5422_v49  ;;  %4052 = vmatpush3.bf16.msra.mxu1 %v4321_v34  ;;  %v5454_v34 = vld [vmem:[%s6079_s4 + $0x30] ss:$12 sps:$4 sm:$0xff]  }
 0x195   : > { %4053 = vmatprep.subr.bf16.mxu1 %v6088_v31  ;;  %1857 = vmatprep.subr.bf16.mxu0 %v5432_v9 }
 0x198   : > { %1858 = vmatpush1.bf16.msra.mxu0 %v5438_v12  ;;  %4054 = vmatpush3.bf16.msra.mxu1 %v4325_v33  ;;  %v5464_v33 = vld [vmem:[%s6079_s4 + $0x1c] ss:$12 sps:$4 sm:$0xff]  }
 0x199   : > { %4055 = vmatprep.subr.bf16.mxu1 %v6088_v31  ;;  %1859 = vmatprep.subr.bf16.mxu0 %v5448_v23 }
 0x19c   : > { %1860 = vmatpush1.bf16.msra.mxu0 %v5454_v34  ;;  %4056 = vmatpush3.bf16.msra.mxu1 %v4329_v28  ;;  %v5480_v28 = vld [vmem:[%s6079_s4 + $0x4] ss:$12 sps:$4 sm:$0xff]  }
 0x19d   : > { %4057 = vmatprep.subr.bf16.mxu1 %v6088_v31  ;;  %1861 = vmatprep.subr.bf16.mxu0 %v5464_v33 }
 0x1a0   : > { %1862 = vmatpush1.bf16.msra.mxu0 %v5470_v8  ;;  %4058 = vmatpush3.bf16.msra.mxu1 %v4333_v22  ;;  %v1966_v22 = vsel %vm1954_vm0, 1, %v4609_v14 }
 0x1a1   : > { %4059 = vmatprep.subr.bf16.mxu1 %v6088_v31  ;;  %1863 = vmatprep.subr.bf16.mxu0 %v5480_v28 }
 0x1a2   : > { %1968 = vperm.xlu1 %4262, %v1966_v22  }
 0x1a4   : > { %1864 = vmatpush1.bf16.msra.mxu0 %v5486_v56  ;;  %4060 = vmatpush3.bf16.msra.mxu1 %v4337_v19  ;;  %v3130_v19 = vsel %vm3118_vm2, 1, %v4609_v14 }
 0x1a5   : > { %2140 = vmatprep.subr.bf16.mxu0 %v5369_v53  ;;  %4065 = vmatprep.subr.bf16.mxu1 %v6088_v31 }
 0x1a6   : > { %2550 = vperm.xlu1 %4262, %v2548_v50  }
 0x1aa   : > { %3132 = vperm.xlu1 %4262, %v3130_v19  }
 0x1ae   : > { %3412 = vperm.xlu1 %4262, %v3410_v46  }
 0x246   : > { %v1592_v42 = vpop.f32.mrf.mxu0  ;;  %v1633_v57 = vpop.f32.mrf.mxu1 }
 0x247   : > { %v1593_v20 = vadd.f32 %v1592_v42, %v5118_v0 }
 0x248   : > { %v1594_v22 = vpop.f32.mrf.mxu0  ;;  %v4043_v15 = vpop.f32.mrf.mxu1 }
 0x249   : > { %v1639_v58 = vadd.f32 %v1593_v20, %v783_v17  ;;  %v1595_v18 = vadd.f32 %v1594_v22, %v5261_v55  ;;  %v1634_v17 = vadd.f32 %v1633_v57, %v5347_v5  ;;  %v5518_v22 = vpop.permute.xlu1 %2248 }
 0x24a   : > { %v1596_v63 = vpop.f32.mrf.mxu0  ;;  %v1636_v50 = vpop.f32.mrf.mxu1  ;;  %vm2250_vm10 = vcmp.eq.s32.totalorder %v5518_v22, 1 }
 0x24b   : > { %v3737_v27 = vmul.f32 -1.442695, %v1639_v58  ;;  %v1646_v19 = vadd.f32 %v1595_v18, %v919_v25 }
 0x24c   : > { %v1597_v1 = vpop.f32.mrf.mxu0  ;;  %v4044_v21 = vpop.f32.mrf.mxu1 }
 0x24d   : > { %4412 = vpow2.f32 %v3737_v27  ;;  %v3738_v46 = vmul.f32 -1.442695, %v1646_v19  ;;  %v1667_v27 = vpop.permute.xlu0 %1666  ;;  %v5523_v40 = vpop.permute.xlu1 %2830  ;;  %v1383_v1 = vld [vmem:[#allocation3] sm:$0xff] }
 0x24e   : > { %vm1668_vm6 = vcmp.eq.s32.totalorder %v1667_v27, 1  ;;  %v4340_v27 = vld [vmem:[%s6079_s4 + $0x80] ss:$12 sps:$4 sm:$0xff]   ;;  %vm2832_vm14 = vcmp.eq.s32.totalorder %v5523_v40, 1  ;;  %v4395_v40 = vld [vmem:[%s6079_s4 + $0x98] ss:$12 sps:$4 sm:$0xff]  }
 0x24f   : > { %4414 = vpow2.f32 %v3738_v46 }
 0x251   : > { %v5525_v18 = vpop.permute.xlu0 %2539  ;;  %v1387_v25 = vpop.permute.xlu1 %1386 }
 0x252   : > { %vm1388_vm4 = vcmp.eq.s32.totalorder %v1387_v25, 1  ;;  %v4342_v25 = vld [vmem:[%s6079_s4 + $0x50] ss:$12 sps:$4 sm:$0xff]   ;;  %vm2541_vm12 = vcmp.eq.s32.totalorder %v5525_v18, 1  ;;  %v4364_v18 = vld [vmem:[%s6079_s4 + $0xac] ss:$12 sps:$4 sm:$0xff]  }
 0x253   : > { %v1389_v21 = vsel %vm1388_vm4, %v5353_v16, 0.0  ;;  %v6105_v16 = vmov 0.0  }
 0x254   : > { %v1390_v46 = vadd.f32 %v1389_v21, %v1383_v1 }
 0x25a   : > { %v4413_v42 = vpop.eup %4412 }
 0x25b   : > { %v1643_v15 = vadd.f32 1.0, %v4413_v42 }
 0x25c   : > { %v4415_v31 = vpop.eup %4414 }
 0x25d   : > { %4416 = vrcp.f32 %v1643_v15  ;;  %v1650_v7 = vadd.f32 1.0, %v4415_v31  ;;  %v5527_v31 = vpop.permute.xlu0 %3121 }
 0x25f   : > { %4418 = vrcp.f32 %v1650_v7 }
 0x261   : > { %v1678_v3 = vpop.permute.xlu0 %1677 }
 0x262   : > { %vm1679_vm7 = vcmp.eq.s32.totalorder %v1678_v3, 1 }
 0x26a   : > { %v4417_v20 = vpop.eup %4416 }
 0x26b   : > { %v1653_v58 = vmul.f32 %v4417_v20, %v1634_v17 }
 0x26c   : > { %v4419_v63 = vpop.eup %4418 }
 0x26d   : > { %v1654_v29 = vadd.f32 %v1653_v58, %v1055_v11  ;;  %v1656_v57 = vsub.f32 1.0, %v4419_v63  ;;  %v1658_v59 = vmul.f32 %v4419_v63, %v5357_v37  ;;  %v4339_v58 = vld [vmem:[%s6079_s4 + $0x98] ss:$12 sps:$4 sm:$0xff]  }
 0x26e   : > { %v4343_v63 = vld [vmem:[%s6079_s4 + $0x38] ss:$12 sps:$4 sm:$0xff]  }
 0x26f   : > { %4420 = vtanh.f32 %v1654_v29  ;;  %v4341_v29 = vld [vmem:[%s6079_s4 + $0x68] ss:$12 sps:$4 sm:$0xff]  }
 0x27c   : > { %v4421_v50 = vpop.eup %4420 }
 0x27d   : > { %v1657_v19 = vmul.f32 %v4421_v50, %v1656_v57  ;;  %v4344_v57 = vld [vmem:[%s6079_s4 + $0x20] ss:$12 sps:$4 sm:$0xff]   ;;  %v4345_v50 = vld [vmem:[%s6079_s4 + $0x8] ss:$12 sps:$4 sm:$0xff]  }
 0x27f   : > { %v1659_v11 = vadd.f32 %v1658_v59, %v1657_v19 }
 0x281   : > { %v5532_v42 = vsel %vm1668_vm6, %v1659_v11, %v5357_v37  ;;  %v1671_v15 = vsel %vm1668_vm6, %v1659_v11, 0.0  ;;  %v1680_v7 = vsel %vm1679_vm7, %v1659_v11, 0.0  ;;  %v4338_v37 = vld [vmem:[%s6079_s4 + $0xb0] ss:$12 sps:$4 sm:$0xff]   ;;  %v6106_v11 = vcombine.low %v5177_v24, %v5238_v36 }
 0x282   : > { %3739 = vst [vmem:[%s4784_s1 + $0x8] sm:$0xff] %v1671_v15  ;;  %v1688_v17 = vpack.c.bf16 %v5532_v42, %v5532_v42  ;;  %v5537_v20 = vadd.f32 %v1680_v7, %v1390_v46 }
 0x284   : > { %1882 = vmatmul.mubr.bf16.vlgmr.msra.gmra.mxu0 %v1688_v17  ;;  %4062 = vmatmul.mubr.bf16.vlgmr.msra.gmra.mxu1 %v1688_v17 }
 0x285   : > { %2141 = vmatpush1.bf16.msra.mxu0 %v5374_v62  ;;  %2172 = vmatprep.mubr.bf16.mxu0 %v4609_v14 }
 0x286   : > { %2142 = vmatprep.subr.bf16.mxu0 %v5384_v43  ;;  %4081 = vmatprep.mubr.msk.bf16.mxu1 %vm4611_vm5, %v6105_v16 }
 0x287   : > { %4066 = vmatpush3.bf16.msra.mxu1 %v4338_v37 }
 0x288   : > { %4067 = vmatprep.subr.bf16.mxu1 %v6105_v16 }
 0x289   : > { %2143 = vmatpush1.bf16.msra.mxu0 %v5390_v26 }
 0x28a   : > { %2144 = vmatprep.subr.bf16.mxu0 %v5400_v51 }
 0x28b   : > { %4068 = vmatpush3.bf16.msra.mxu1 %v4339_v58 }
 0x28c   : > { %4069 = vmatprep.subr.bf16.mxu1 %v6105_v16 }
 0x28d   : > { %2145 = vmatpush1.bf16.msra.mxu0 %v5406_v41 }
 0x28e   : > { %2146 = vmatprep.subr.bf16.mxu0 %v5416_v35 }
 0x28f   : > { %4070 = vmatpush3.bf16.msra.mxu1 %v4340_v27 }
 0x290   : > { %4071 = vmatprep.subr.bf16.mxu1 %v6105_v16 }
 0x291   : > { %2147 = vmatpush1.bf16.msra.mxu0 %v5422_v49 }
 0x292   : > { %2148 = vmatprep.subr.bf16.mxu0 %v5432_v9 }
 0x293   : > { %4072 = vmatpush3.bf16.msra.mxu1 %v4341_v29  ;;  %v6107_v29 = vcombine.low %v5202_v6, %v5246_v52 }
 0x294   : > { %4073 = vmatprep.subr.bf16.mxu1 %v6105_v16 }
 0x295   : > { %2149 = vmatpush1.bf16.msra.mxu0 %v5438_v12 }
 0x296   : > { %2150 = vmatprep.subr.bf16.mxu0 %v5448_v23 }
 0x297   : > { %4074 = vmatpush3.bf16.msra.mxu1 %v4342_v25 }
 0x298   : > { %4075 = vmatprep.subr.bf16.mxu1 %v6105_v16 }
 0x299   : > { %2151 = vmatpush1.bf16.msra.mxu0 %v5454_v34 }
 0x29a   : > { %2152 = vmatprep.subr.bf16.mxu0 %v5464_v33 }
 0x29b   : > { %4076 = vmatpush3.bf16.msra.mxu1 %v4343_v63 }
 0x29c   : > { %4077 = vmatprep.subr.bf16.mxu1 %v6105_v16 }
 0x29d   : > { %2153 = vmatpush1.bf16.msra.mxu0 %v5470_v8 }
 0x29e   : > { %2154 = vmatprep.subr.bf16.mxu0 %v5480_v28 }
 0x29f   : > { %4078 = vmatpush3.bf16.msra.mxu1 %v4344_v57 }
 0x2a0   : > { %4079 = vmatprep.subr.bf16.mxu1 %v6105_v16 }
 0x2a1   : > { %2155 = vmatpush1.bf16.msra.mxu0 %v5486_v56 }
 0x2a2   : > { %2431 = vmatprep.subr.bf16.mxu0 %v5369_v53 }
 0x2a3   : > { %4080 = vmatpush3.bf16.msra.mxu1 %v4345_v50 }
 0x2a4   : > { %4085 = vmatprep.subr.bf16.mxu1 %v6105_v16 }
 0x344   : > { %v1883_v1 = vpop.f32.mrf.mxu0  ;;  %v1924_v21 = vpop.f32.mrf.mxu1 }
 0x345   : > { %v1884_v19 = vadd.f32 %v1883_v1, %v5118_v0 }
 0x346   : > { %v1885_v59 = vpop.f32.mrf.mxu0  ;;  %v4063_v3 = vpop.f32.mrf.mxu1 }
 0x347   : > { %v1930_v46 = vadd.f32 %v1884_v19, %v6106_v11  ;;  %v1886_v37 = vadd.f32 %v1885_v59, %v5261_v55  ;;  %v1925_v19 = vadd.f32 %v1924_v21, %v5347_v5  ;;  %v6108_v59 = vcombine.low %v5188_v45, %v5225_v32 }
 0x348   : > { %v1887_v15 = vpop.f32.mrf.mxu0  ;;  %v1927_v7 = vpop.f32.mrf.mxu1 }
 0x349   : > { %v3764_v17 = vmul.f32 -1.442695, %v1930_v46  ;;  %v1937_v25 = vadd.f32 %v1886_v37, %v6107_v29 }
 0x34a   : > { %v1888_v58 = vpop.f32.mrf.mxu0  ;;  %v4064_v27 = vpop.f32.mrf.mxu1 }
 0x34b   : > { %4422 = vpow2.f32 %v3764_v17  ;;  %v3765_v63 = vmul.f32 -1.442695, %v1937_v25  ;;  %v1969_v58 = vpop.permute.xlu1 %1968 }
 0x34c   : > { %vm1970_vm9 = vcmp.eq.s32.totalorder %v1969_v58, 1  ;;  %v6109_v58 = vcombine.high %v5177_v24, %v5238_v36 }
 0x34d   : > { %4424 = vpow2.f32 %v3765_v63 }
 0x358   : > { %v4423_v57 = vpop.eup %4422 }
 0x359   : > { %v1934_v50 = vadd.f32 1.0, %v4423_v57 }
 0x35a   : > { %v4425_v1 = vpop.eup %4424 }
 0x35b   : > { %4426 = vrcp.f32 %v1934_v50  ;;  %v1941_v3 = vadd.f32 1.0, %v4425_v1 }
 0x35d   : > { %4428 = vrcp.f32 %v1941_v3  ;;  %v4350_v3 = vld [vmem:[%s6079_s4 + $0x50] ss:$12 sps:$4 sm:$0xff]  }
 0x368   : > { %v4427_v11 = vpop.eup %4426 }
 0x369   : > { %v1944_v46 = vmul.f32 %v4427_v11, %v1925_v19  ;;  %v4351_v19 = vld [vmem:[%s6079_s4 + $0x38] ss:$12 sps:$4 sm:$0xff]   ;;  %v4352_v11 = vld [vmem:[%s6079_s4 + $0x20] ss:$12 sps:$4 sm:$0xff]  }
 0x36a   : > { %v4429_v7 = vpop.eup %4428 }
 0x36b   : > { %v1945_v15 = vadd.f32 %v1944_v46, %v6108_v59  ;;  %v1947_v17 = vsub.f32 1.0, %v4429_v7  ;;  %v1949_v29 = vmul.f32 %v4429_v7, %v5532_v42  ;;  %v4353_v46 = vld [vmem:[%s6079_s4 + $0x8] ss:$12 sps:$4 sm:$0xff]  }
 0x36d   : > { %4430 = vtanh.f32 %v1945_v15 }
 0x37a   : > { %v4431_v37 = vpop.eup %4430 }
 0x37b   : > { %v1948_v27 = vmul.f32 %v4431_v37, %v1947_v17 }
 0x37d   : > { %v1950_v21 = vadd.f32 %v1949_v29, %v1948_v27 }
 0x37f   : > { %v5605_v25 = vsel %vm1959_vm8, %v1950_v21, %v5532_v42  ;;  %v1962_v63 = vsel %vm1959_vm8, %v1950_v21, 0.0  ;;  %v1971_v57 = vsel %vm1970_vm9, %v1950_v21, 0.0  ;;  %v4347_v42 = vld [vmem:[%s6079_s4 + $0x98] ss:$12 sps:$4 sm:$0xff]  }
 0x380   : > { %3766 = vst [vmem:[%s4784_s1 + $0x10] sm:$0xff] %v1962_v63  ;;  %v5609_v50 = vadd.f32 %v1971_v57, %v5537_v20  ;;  %v1979_v1 = vpack.c.bf16 %v5605_v25, %v5605_v25  ;;  %v4348_v20 = vld [vmem:[%s6079_s4 + $0x80] ss:$12 sps:$4 sm:$0xff]  }
 0x382   : > { %2173 = vmatmul.mubr.bf16.vlgmr.msra.gmra.mxu0 %v1979_v1  ;;  %4082 = vmatmul.mubr.bf16.vlgmr.msra.gmra.mxu1 %v1979_v1 }
 0x383   : > { %2432 = vmatpush1.bf16.msra.mxu0 %v5374_v62  ;;  %2463 = vmatprep.mubr.bf16.mxu0 %v4609_v14 }
 0x384   : > { %2433 = vmatprep.subr.bf16.mxu0 %v5384_v43  ;;  %4101 = vmatprep.mubr.msk.bf16.mxu1 %vm4611_vm5, %v6105_v16 }
 0x385   : > { %4086 = vmatpush3.bf16.msra.mxu1 %v4346_v4 }
 0x386   : > { %4087 = vmatprep.subr.bf16.mxu1 %v6105_v16 }
 0x387   : > { %2434 = vmatpush1.bf16.msra.mxu0 %v5390_v26 }
 0x388   : > { %2435 = vmatprep.subr.bf16.mxu0 %v5400_v51 }
 0x389   : > { %4088 = vmatpush3.bf16.msra.mxu1 %v4347_v42  ;;  %v6110_v42 = vcombine.high %v5202_v6, %v5246_v52 }
 0x38a   : > { %4089 = vmatprep.subr.bf16.mxu1 %v6105_v16 }
 0x38b   : > { %2436 = vmatpush1.bf16.msra.mxu0 %v5406_v41 }
 0x38c   : > { %2437 = vmatprep.subr.bf16.mxu0 %v5416_v35 }
 0x38d   : > { %4090 = vmatpush3.bf16.msra.mxu1 %v4348_v20 }
 0x38e   : > { %4091 = vmatprep.subr.bf16.mxu1 %v6105_v16 }
 0x38f   : > { %2438 = vmatpush1.bf16.msra.mxu0 %v5422_v49 }
 0x390   : > { %2439 = vmatprep.subr.bf16.mxu0 %v5432_v9 }
 0x393   : > { %2440 = vmatpush1.bf16.msra.mxu0 %v5438_v12 }
 0x394   : > { %2441 = vmatprep.subr.bf16.mxu0 %v5448_v23 }
 0x397   : > { %2442 = vmatpush1.bf16.msra.mxu0 %v5454_v34 }
 0x398   : > { %2443 = vmatprep.subr.bf16.mxu0 %v5464_v33 }
 0x39b   : > { %2444 = vmatpush1.bf16.msra.mxu0 %v5470_v8 }
 0x39c   : > { %2445 = vmatprep.subr.bf16.mxu0 %v5480_v28 }
 0x39f   : > { %2446 = vmatpush1.bf16.msra.mxu0 %v5486_v56 }
 0x3a0   : > { %2722 = vmatprep.subr.bf16.mxu0 %v5369_v53  ;;  %v4349_v53 = vld [vmem:[%s6079_s4 + $0x68] ss:$12 sps:$4 sm:$0xff]  }
 0x3a1   : > { %4092 = vmatpush3.bf16.msra.mxu1 %v4349_v53 }
 0x3a2   : > { %4093 = vmatprep.subr.bf16.mxu1 %v6105_v16 }
 0x3a5   : > { %4094 = vmatpush3.bf16.msra.mxu1 %v4350_v3 }
 0x3a6   : > { %4095 = vmatprep.subr.bf16.mxu1 %v6105_v16 }
 0x3a9   : > { %4096 = vmatpush3.bf16.msra.mxu1 %v4351_v19 }
 0x3aa   : > { %4097 = vmatprep.subr.bf16.mxu1 %v6105_v16 }
 0x3ad   : > { %4098 = vmatpush3.bf16.msra.mxu1 %v4352_v11 }
 0x3ae   : > { %4099 = vmatprep.subr.bf16.mxu1 %v6105_v16 }
 0x3b1   : > { %4100 = vmatpush3.bf16.msra.mxu1 %v4353_v46 }
 0x3b2   : > { %4105 = vmatprep.subr.bf16.mxu1 %v6105_v16 }
 0x442   : > { %v2174_v59 = vpop.f32.mrf.mxu0  ;;  %v2215_v15 = vpop.f32.mrf.mxu1 }
 0x443   : > { %v2175_v7 = vadd.f32 %v2174_v59, %v5118_v0  ;;  %v2216_v36 = vadd.f32 %v2215_v15, %v5347_v5 }
 0x444   : > { %v2176_v17 = vpop.f32.mrf.mxu0  ;;  %v4083_v37 = vpop.f32.mrf.mxu1 }
 0x445   : > { %v2221_v27 = vadd.f32 %v2175_v7, %v6109_v58  ;;  %v2177_v57 = vadd.f32 %v2176_v17, %v5261_v55  ;;  %v6111_v7 = vcombine.high %v5188_v45, %v5225_v32 }
 0x446   : > { %v2178_v29 = vpop.f32.mrf.mxu0  ;;  %v2218_v21 = vpop.f32.mrf.mxu1 }
 0x447   : > { %v3791_v63 = vmul.f32 -1.442695, %v2221_v27  ;;  %v2228_v20 = vadd.f32 %v2177_v57, %v6110_v42  ;;  %v2260_v29 = vpop.permute.xlu0 %2259 }
 0x448   : > { %v2179_v1 = vpop.f32.mrf.mxu0  ;;  %v4084_v4 = vpop.f32.mrf.mxu1  ;;  %vm2261_vm11 = vcmp.eq.s32.totalorder %v2260_v29, 1 }
 0x449   : > { %4432 = vpow2.f32 %v3791_v63  ;;  %v3792_v53 = vmul.f32 -1.442695, %v2228_v20  ;;  %v6113_v20 = vcombine.low %v5287_v61, %v5290_v47 }
 0x44b   : > { %4434 = vpow2.f32 %v3792_v53 }
 0x456   : > { %v4433_v3 = vpop.eup %4432 }
 0x457   : > { %v2225_v19 = vadd.f32 1.0, %v4433_v3 }
 0x458   : > { %v4435_v11 = vpop.eup %4434 }
 0x459   : > { %4436 = vrcp.f32 %v2225_v19  ;;  %v2232_v24 = vadd.f32 1.0, %v4435_v11 }
 0x45b   : > { %4438 = vrcp.f32 %v2232_v24 }
 0x466   : > { %v4437_v46 = vpop.eup %4436 }
 0x467   : > { %v2235_v59 = vmul.f32 %v4437_v46, %v2216_v36 }
 0x468   : > { %v4439_v6 = vpop.eup %4438 }
 0x469   : > { %v2236_v17 = vadd.f32 %v2235_v59, %v6111_v7  ;;  %v2238_v52 = vsub.f32 1.0, %v4439_v6  ;;  %v2240_v27 = vmul.f32 %v4439_v6, %v5605_v25 }
 0x46b   : > { %4440 = vtanh.f32 %v2236_v17  ;;  %v6114_v17 = vcombine.low %v5276_v30, %v5279_v54 }
 0x478   : > { %v4441_v37 = vpop.eup %4440 }
 0x479   : > { %v2239_v58 = vmul.f32 %v4441_v37, %v2238_v52 }
 0x47b   : > { %v2241_v21 = vadd.f32 %v2240_v27, %v2239_v58 }
 0x47d   : > { %v5679_v15 = vsel %vm2250_vm10, %v2241_v21, %v5605_v25  ;;  %v2253_v63 = vsel %vm2250_vm10, %v2241_v21, 0.0  ;;  %v2262_v57 = vsel %vm2261_vm11, %v2241_v21, 0.0  ;;  %v2551_v21 = vpop.permute.xlu1 %2550 }
 0x47e   : > { %3793 = vst [vmem:[%s4784_s1 + $0x18] sm:$0xff] %v2253_v63  ;;  %v5683_v45 = vadd.f32 %v2262_v57, %v5609_v50  ;;  %v2270_v32 = vpack.c.bf16 %v5679_v15, %v5679_v15  ;;  %vm2552_vm13 = vcmp.eq.s32.totalorder %v2551_v21, 1 }
 0x480   : > { %2464 = vmatmul.mubr.bf16.vlgmr.msra.gmra.mxu0 %v2270_v32  ;;  %4102 = vmatmul.mubr.bf16.vlgmr.msra.gmra.mxu1 %v2270_v32 }
 0x481   : > { %2723 = vmatpush1.bf16.msra.mxu0 %v5374_v62  ;;  %2754 = vmatprep.mubr.bf16.mxu0 %v4609_v14  ;;  %v4354_v62 = vld [vmem:[%s6079_s4 + $0xb0] ss:$12 sps:$4 sm:$0xff]  }
 0x482   : > { %2724 = vmatprep.subr.bf16.mxu0 %v5384_v43  ;;  %4121 = vmatprep.mubr.msk.bf16.mxu1 %vm4611_vm5, %v6105_v16  ;;  %v4355_v43 = vld [vmem:[%s6079_s4 + $0x98] ss:$12 sps:$4 sm:$0xff]  }
 0x483   : > { %4106 = vmatpush3.bf16.msra.mxu1 %v4354_v62 }
 0x484   : > { %4107 = vmatprep.subr.bf16.mxu1 %v6105_v16 }
 0x485   : > { %2725 = vmatpush1.bf16.msra.mxu0 %v5390_v26  ;;  %v4358_v26 = vld [vmem:[%s6079_s4 + $0x50] ss:$12 sps:$4 sm:$0xff]  }
 0x486   : > { %2726 = vmatprep.subr.bf16.mxu0 %v5400_v51  ;;  %v4359_v51 = vld [vmem:[%s6079_s4 + $0x38] ss:$12 sps:$4 sm:$0xff]  }
 0x487   : > { %4108 = vmatpush3.bf16.msra.mxu1 %v4355_v43 }
 0x488   : > { %4109 = vmatprep.subr.bf16.mxu1 %v6105_v16 }
 0x489   : > { %2727 = vmatpush1.bf16.msra.mxu0 %v5406_v41  ;;  %v4360_v41 = vld [vmem:[%s6079_s4 + $0x20] ss:$12 sps:$4 sm:$0xff]  }
 0x48a   : > { %2728 = vmatprep.subr.bf16.mxu0 %v5416_v35  ;;  %v4361_v35 = vld [vmem:[%s6079_s4 + $0x8] ss:$12 sps:$4 sm:$0xff]  }
 0x48d   : > { %2729 = vmatpush1.bf16.msra.mxu0 %v5422_v49 }
 0x48e   : > { %2730 = vmatprep.subr.bf16.mxu0 %v5432_v9 }
 0x491   : > { %2731 = vmatpush1.bf16.msra.mxu0 %v5438_v12 }
 0x492   : > { %2732 = vmatprep.subr.bf16.mxu0 %v5448_v23 }
 0x495   : > { %2733 = vmatpush1.bf16.msra.mxu0 %v5454_v34 }
 0x496   : > { %2734 = vmatprep.subr.bf16.mxu0 %v5464_v33  ;;  %v6112_v33 = vcombine.low %v5209_v10, %v5270_v38 }
 0x499   : > { %2735 = vmatpush1.bf16.msra.mxu0 %v5470_v8  ;;  %v4356_v8 = vld [vmem:[%s6079_s4 + $0x80] ss:$12 sps:$4 sm:$0xff]  }
 0x49a   : > { %2736 = vmatprep.subr.bf16.mxu0 %v5480_v28  ;;  %4110 = vmatpush3.bf16.msra.mxu1 %v4356_v8 }
 0x49b   : > { %4111 = vmatprep.subr.bf16.mxu1 %v6105_v16 }
 0x49d   : > { %2737 = vmatpush1.bf16.msra.mxu0 %v5486_v56  ;;  %v4357_v56 = vld [vmem:[%s6079_s4 + $0x68] ss:$12 sps:$4 sm:$0xff]  }
 0x49e   : > { %4112 = vmatpush3.bf16.msra.mxu1 %v4357_v56  ;;  %3013 = vmatprep.subr.bf16.mxu0 %v4364_v18  ;;  %v5778_v56 = vld [vmem:[%s6079_s4 + $0x94] ss:$12 sps:$4 sm:$0xff]  }
 0x49f   : > { %4113 = vmatprep.subr.bf16.mxu1 %v6105_v16 }
 0x4a2   : > { %4114 = vmatpush3.bf16.msra.mxu1 %v4358_v26  ;;  %v5784_v26 = vld [vmem:[%s6079_s4 + $0x90] ss:$12 sps:$4 sm:$0xff]  }
 0x4a3   : > { %4115 = vmatprep.subr.bf16.mxu1 %v6105_v16 }
 0x4a6   : > { %4116 = vmatpush3.bf16.msra.mxu1 %v4359_v51  ;;  %v4369_v51 = vld [vmem:[%s6079_s4 + $0x98] ss:$12 sps:$4 sm:$0xff]  }
 0x4a7   : > { %4117 = vmatprep.subr.bf16.mxu1 %v6105_v16 }
 0x4aa   : > { %4118 = vmatpush3.bf16.msra.mxu1 %v4360_v41  ;;  %v5794_v41 = vld [vmem:[%s6079_s4 + $0x7c] ss:$12 sps:$4 sm:$0xff]  }
 0x4ab   : > { %4119 = vmatprep.subr.bf16.mxu1 %v6105_v16 }
 0x4ae   : > { %4120 = vmatpush3.bf16.msra.mxu1 %v4361_v35  ;;  %v5800_v35 = vld [vmem:[%s6079_s4 + $0x78] ss:$12 sps:$4 sm:$0xff]  }
 0x4af   : > { %4125 = vmatprep.subr.bf16.mxu1 %v6105_v16 }
 0x540   : > { %v2465_v49 = vpop.f32.mrf.mxu0  ;;  %v2506_v9 = vpop.f32.mrf.mxu1 }
 0x541   : > { %v2466_v12 = vadd.f32 %v2465_v49, %v5118_v0  ;;  %v2507_v46 = vadd.f32 %v2506_v9, %v5347_v5  ;;  %v4373_v49 = vld [vmem:[%s6079_s4 + $0x80] ss:$12 sps:$4 sm:$0xff]   ;;  %v5810_v9 = vld [vmem:[%s6079_s4 + $0x64] ss:$12 sps:$4 sm:$0xff]  }
 0x542   : > { %v2467_v23 = vpop.f32.mrf.mxu0  ;;  %v4103_v34 = vpop.f32.mrf.mxu1 }
 0x543   : > { %v2512_v28 = vadd.f32 %v2466_v12, %v6112_v33  ;;  %v2468_v1 = vadd.f32 %v2467_v23, %v5261_v55  ;;  %v5816_v12 = vld [vmem:[%s6079_s4 + $0x60] ss:$12 sps:$4 sm:$0xff]   ;;  %v4377_v23 = vld [vmem:[%s6079_s4 + $0x68] ss:$12 sps:$4 sm:$0xff]  }
 0x544   : > { %v2469_v22 = vpop.f32.mrf.mxu0  ;;  %v2509_v25 = vpop.f32.mrf.mxu1  ;;  %v5825_v34 = vld [vmem:[%s6079_s4 + $0x4c] ss:$12 sps:$4 sm:$0xff]   ;;  %v5831_v33 = vld [vmem:[%s6079_s4 + $0x48] ss:$12 sps:$4 sm:$0xff]  }
 0x545   : > { %v3818_v50 = vmul.f32 -1.442695, %v2512_v28  ;;  %v2519_v53 = vadd.f32 %v2468_v1, %v6113_v20  ;;  %v4381_v28 = vld [vmem:[%s6079_s4 + $0x50] ss:$12 sps:$4 sm:$0xff]   ;;  %v5841_v22 = vld [vmem:[%s6079_s4 + $0x34] ss:$12 sps:$4 sm:$0xff]  }
 0x546   : > { %v2470_v4 = vpop.f32.mrf.mxu0  ;;  %v4104_v42 = vpop.f32.mrf.mxu1  ;;  %v5847_v25 = vld [vmem:[%s6079_s4 + $0x30] ss:$12 sps:$4 sm:$0xff]  }
 0x547   : > { %4442 = vpow2.f32 %v3818_v50  ;;  %v3819_v3 = vmul.f32 -1.442695, %v2519_v53  ;;  %v4385_v50 = vld [vmem:[%s6079_s4 + $0x38] ss:$12 sps:$4 sm:$0xff]   ;;  %v5857_v1 = vld [vmem:[%s6079_s4 + $0x1c] ss:$12 sps:$4 sm:$0xff]  }
 0x548   : > { %v5863_v4 = vld [vmem:[%s6079_s4 + $0x18] ss:$12 sps:$4 sm:$0xff]   ;;  %v4389_v42 = vld [vmem:[%s6079_s4 + $0x20] ss:$12 sps:$4 sm:$0xff]  }
 0x549   : > { %4444 = vpow2.f32 %v3819_v3  ;;  %v5873_v20 = vld [vmem:[%s6079_s4 + $0x4] ss:$12 sps:$4 sm:$0xff]   ;;  %v5879_v53 = vld [vmem:[%s6079_s4] ss:$12 sps:$4 sm:$0xff]   ;;  %v4393_v3 = vld [vmem:[%s6079_s4 + $0x8] ss:$12 sps:$4 sm:$0xff]  }
 0x554   : > { %v4443_v19 = vpop.eup %4442 }
 0x555   : > { %v2516_v11 = vadd.f32 1.0, %v4443_v19 }
 0x556   : > { %v4445_v24 = vpop.eup %4444 }
 0x557   : > { %4446 = vrcp.f32 %v2516_v11  ;;  %v2523_v36 = vadd.f32 1.0, %v4445_v24 }
 0x559   : > { %4448 = vrcp.f32 %v2523_v36 }
 0x564   : > { %v4447_v59 = vpop.eup %4446 }
 0x565   : > { %v2526_v7 = vmul.f32 %v4447_v59, %v2507_v46  ;;  %v6115_v59 = vcombine.high %v5209_v10, %v5270_v38 }
 0x566   : > { %v4449_v52 = vpop.eup %4448 }
 0x567   : > { %v2527_v6 = vadd.f32 %v2526_v7, %v6114_v17  ;;  %v2529_v37 = vsub.f32 1.0, %v4449_v52  ;;  %v2531_v29 = vmul.f32 %v4449_v52, %v5679_v15 }
 0x569   : > { %4450 = vtanh.f32 %v2527_v6 }
 0x576   : > { %v4451_v58 = vpop.eup %4450 }
 0x577   : > { %v2530_v27 = vmul.f32 %v4451_v58, %v2529_v37 }
 0x579   : > { %v2532_v63 = vadd.f32 %v2531_v29, %v2530_v27  ;;  %v6116_v29 = vcombine.high %v5287_v61, %v5290_v47 }
 0x57b   : > { %v5752_v57 = vsel %vm2541_vm12, %v2532_v63, %v5679_v15  ;;  %v2544_v32 = vsel %vm2541_vm12, %v2532_v63, 0.0  ;;  %v2553_v62 = vsel %vm2552_vm13, %v2532_v63, 0.0  ;;  %v5769_v15 = vld [vmem:[%s6079_s4 + $0xa8] ss:$12 sps:$4 sm:$0xff]  }
 0x57c   : > { %3820 = vst [vmem:[%s4784_s1 + $0x20] sm:$0xff] %v2544_v32  ;;  %v5756_v43 = vadd.f32 %v2553_v62, %v5683_v45  ;;  %v2561_v8 = vpack.c.bf16 %v5752_v57, %v5752_v57  ;;  %v4365_v45 = vld [vmem:[%s6079_s4 + $0xb0] ss:$12 sps:$4 sm:$0xff]  }
 0x57e   : > { %2755 = vmatmul.mubr.bf16.vlgmr.msra.gmra.mxu0 %v2561_v8  ;;  %4122 = vmatmul.mubr.bf16.vlgmr.msra.gmra.mxu1 %v2561_v8 }
 0x57f   : > { %3045 = vmatprep.mubr.bf16.mxu0 %v4609_v14  ;;  %4141 = vmatprep.mubr.msk.bf16.mxu1 %vm4611_vm5, %v6105_v16 }
 0x580   : > { %3014 = vmatpush1.bf16.msra.mxu0 %v5769_v15  ;;  %4126 = vmatpush3.bf16.msra.mxu1 %v4365_v45 }
 0x581   : > { %4127 = vmatprep.subr.bf16.mxu1 %v6105_v16  ;;  %3015 = vmatprep.subr.bf16.mxu0 %v5778_v56 }
 0x584   : > { %3016 = vmatpush1.bf16.msra.mxu0 %v5784_v26  ;;  %4128 = vmatpush3.bf16.msra.mxu1 %v4369_v51  ;;  %v6117_v51 = vcombine.high %v5276_v30, %v5279_v54 }
 0x585   : > { %4129 = vmatprep.subr.bf16.mxu1 %v6105_v16  ;;  %3017 = vmatprep.subr.bf16.mxu0 %v5794_v41 }
 0x588   : > { %3018 = vmatpush1.bf16.msra.mxu0 %v5800_v35  ;;  %4130 = vmatpush3.bf16.msra.mxu1 %v4373_v49 }
 0x589   : > { %4131 = vmatprep.subr.bf16.mxu1 %v6105_v16  ;;  %3019 = vmatprep.subr.bf16.mxu0 %v5810_v9 }
 0x58c   : > { %3020 = vmatpush1.bf16.msra.mxu0 %v5816_v12  ;;  %4132 = vmatpush3.bf16.msra.mxu1 %v4377_v23 }
 0x58d   : > { %3021 = vmatprep.subr.bf16.mxu0 %v5825_v34  ;;  %4133 = vmatprep.subr.bf16.mxu1 %v6105_v16 }
 0x590   : > { %3022 = vmatpush1.bf16.msra.mxu0 %v5831_v33  ;;  %4134 = vmatpush3.bf16.msra.mxu1 %v4381_v28 }
 0x591   : > { %3023 = vmatprep.subr.bf16.mxu0 %v5841_v22  ;;  %4135 = vmatprep.subr.bf16.mxu1 %v6105_v16 }
 0x594   : > { %3024 = vmatpush1.bf16.msra.mxu0 %v5847_v25  ;;  %4136 = vmatpush3.bf16.msra.mxu1 %v4385_v50 }
 0x595   : > { %3025 = vmatprep.subr.bf16.mxu0 %v5857_v1  ;;  %4137 = vmatprep.subr.bf16.mxu1 %v6105_v16 }
 0x598   : > { %3026 = vmatpush1.bf16.msra.mxu0 %v5863_v4  ;;  %4138 = vmatpush3.bf16.msra.mxu1 %v4389_v42  ;;  %v2842_v42 = vpop.permute.xlu0 %2841 }
 0x599   : > { %3027 = vmatprep.subr.bf16.mxu0 %v5873_v20  ;;  %4139 = vmatprep.subr.bf16.mxu1 %v6105_v16  ;;  %vm2843_vm15 = vcmp.eq.s32.totalorder %v2842_v42, 1 }
 0x59c   : > { %3028 = vmatpush1.bf16.msra.mxu0 %v5879_v53  ;;  %4140 = vmatpush3.bf16.msra.mxu1 %v4393_v3 }
 0x59d   : > { %3304 = vmatprep.subr.bf16.mxu0 %v4364_v18  ;;  %4145 = vmatprep.subr.bf16.mxu1 %v6105_v16 }
 0x63e   : > { %v2756_v19 = vpop.f32.mrf.mxu0  ;;  %v2797_v11 = vpop.f32.mrf.mxu1 }
 0x63f   : > { %v2757_v24 = vadd.f32 %v2756_v19, %v5118_v0  ;;  %v2798_v38 = vadd.f32 %v2797_v11, %v5347_v5 }
 0x640   : > { %v2758_v36 = vpop.f32.mrf.mxu0  ;;  %v4123_v46 = vpop.f32.mrf.mxu1 }
 0x641   : > { %v2803_v7 = vadd.f32 %v2757_v24, %v6115_v59  ;;  %v2759_v37 = vadd.f32 %v2758_v36, %v5261_v55 }
 0x642   : > { %v2760_v17 = vpop.f32.mrf.mxu0  ;;  %v2800_v6 = vpop.f32.mrf.mxu1 }
 0x643   : > { %v3845_v52 = vmul.f32 -1.442695, %v2803_v7  ;;  %v2810_v21 = vadd.f32 %v2759_v37, %v6116_v29 }
 0x644   : > { %v2761_v58 = vpop.f32.mrf.mxu0  ;;  %v4124_v27 = vpop.f32.mrf.mxu1 }
 0x645   : > { %4452 = vpow2.f32 %v3845_v52  ;;  %v3846_v63 = vmul.f32 -1.442695, %v2810_v21  ;;  %v6120_v21 = vcombine.low %v5318_v39, %v5321_v2 }
 0x647   : > { %4454 = vpow2.f32 %v3846_v63 }
 0x652   : > { %v4453_v32 = vpop.eup %4452 }
 0x653   : > { %v2807_v62 = vadd.f32 1.0, %v4453_v32 }
 0x654   : > { %v4455_v8 = vpop.eup %4454 }
 0x655   : > { %4456 = vrcp.f32 %v2807_v62  ;;  %v2814_v10 = vadd.f32 1.0, %v4455_v8 }
 0x657   : > { %4458 = vrcp.f32 %v2814_v10 }
 0x662   : > { %v4457_v18 = vpop.eup %4456 }
 0x663   : > { %v2817_v45 = vmul.f32 %v4457_v18, %v2798_v38  ;;  %v3133_v18 = vpop.permute.xlu1 %3132 }
 0x664   : > { %v4459_v61 = vpop.eup %4458  ;;  %vm3134_vm0 = vcmp.eq.s32.totalorder %v3133_v18, 1 }
 0x665   : > { %v2818_v49 = vadd.f32 %v2817_v45, %v6117_v51  ;;  %v2820_v47 = vsub.f32 1.0, %v4459_v61  ;;  %v2822_v50 = vmul.f32 %v4459_v61, %v5752_v57 }
 0x667   : > { %4460 = vtanh.f32 %v2818_v49 }
 0x674   : > { %v4461_v23 = vpop.eup %4460 }
 0x675   : > { %v2821_v28 = vmul.f32 %v4461_v23, %v2820_v47 }
 0x677   : > { %v2823_v3 = vadd.f32 %v2822_v50, %v2821_v28 }
 0x679   : > { %v5903_v19 = vsel %vm2832_vm14, %v2823_v3, %v5752_v57  ;;  %v2835_v11 = vsel %vm2832_vm14, %v2823_v3, 0.0  ;;  %v2844_v24 = vsel %vm2843_vm15, %v2823_v3, 0.0  ;;  %v4396_v57 = vld [vmem:[%s6079_s4 + $0x80] ss:$12 sps:$4 sm:$0xff]  }
 0x67a   : > { %3847 = vst [vmem:[%s4784_s1 + $0x28] sm:$0xff] %v2835_v11  ;;  %v5907_v30 = vadd.f32 %v2844_v24, %v5756_v43  ;;  %v2852_v54 = vpack.c.bf16 %v5903_v19, %v5903_v19  ;;  %v4397_v43 = vld [vmem:[%s6079_s4 + $0x68] ss:$12 sps:$4 sm:$0xff]  }
 0x67c   : > { %3046 = vmatmul.mubr.bf16.vlgmr.msra.gmra.mxu0 %v2852_v54  ;;  %4142 = vmatmul.mubr.bf16.vlgmr.msra.gmra.mxu1 %v2852_v54 }
 0x67d   : > { %3305 = vmatpush1.bf16.msra.mxu0 %v5769_v15  ;;  %3336 = vmatprep.mubr.bf16.mxu0 %v4609_v14  ;;  %v4394_v14 = vld [vmem:[%s6079_s4 + $0xb0] ss:$12 sps:$4 sm:$0xff]  }
 0x67e   : > { %3306 = vmatprep.subr.bf16.mxu0 %v5778_v56  ;;  %4161 = vmatprep.mubr.msk.bf16.mxu1 %vm4611_vm5, %v6105_v16  ;;  %v4398_v15 = vld [vmem:[%s6079_s4 + $0x50] ss:$12 sps:$4 sm:$0xff]   ;;  %v4399_v56 = vld [vmem:[%s6079_s4 + $0x38] ss:$12 sps:$4 sm:$0xff]   ;;  %vm3123_vm5 = vcmp.eq.s32.totalorder %v5527_v31, 1  ;;  %v6121_v31 = vcombine.high %v5309_v48, %v5312_v13 }
 0x67f   : > { %4146 = vmatpush3.bf16.msra.mxu1 %v4394_v14 }
 0x680   : > { %4147 = vmatprep.subr.bf16.mxu1 %v6105_v16 }
 0x681   : > { %3307 = vmatpush1.bf16.msra.mxu0 %v5784_v26  ;;  %v4400_v26 = vld [vmem:[%s6079_s4 + $0x20] ss:$12 sps:$4 sm:$0xff]  }
 0x682   : > { %3308 = vmatprep.subr.bf16.mxu0 %v5794_v41  ;;  %v4401_v41 = vld [vmem:[%s6079_s4 + $0x8] ss:$12 sps:$4 sm:$0xff]  }
 0x683   : > { %4148 = vmatpush3.bf16.msra.mxu1 %v4395_v40 }
 0x684   : > { %4149 = vmatprep.subr.bf16.mxu1 %v6105_v16 }
 0x685   : > { %3309 = vmatpush1.bf16.msra.mxu0 %v5800_v35 }
 0x686   : > { %3310 = vmatprep.subr.bf16.mxu0 %v5810_v9 }
 0x687   : > { %4150 = vmatpush3.bf16.msra.mxu1 %v4396_v57 }
 0x688   : > { %4151 = vmatprep.subr.bf16.mxu1 %v6105_v16 }
 0x689   : > { %3311 = vmatpush1.bf16.msra.mxu0 %v5816_v12 }
 0x68a   : > { %3312 = vmatprep.subr.bf16.mxu0 %v5825_v34 }
 0x68b   : > { %4152 = vmatpush3.bf16.msra.mxu1 %v4397_v43  ;;  %v6122_v43 = vcombine.high %v5327_v44, %v5330_v60 }
 0x68c   : > { %4153 = vmatprep.subr.bf16.mxu1 %v6105_v16 }
 0x68d   : > { %3313 = vmatpush1.bf16.msra.mxu0 %v5831_v33 }
 0x68e   : > { %3314 = vmatprep.subr.bf16.mxu0 %v5841_v22  ;;  %v6118_v22 = vcombine.low %v5309_v48, %v5312_v13 }
 0x68f   : > { %4154 = vmatpush3.bf16.msra.mxu1 %v4398_v15 }
 0x690   : > { %4155 = vmatprep.subr.bf16.mxu1 %v6105_v16 }
 0x691   : > { %3315 = vmatpush1.bf16.msra.mxu0 %v5847_v25 }
 0x692   : > { %3316 = vmatprep.subr.bf16.mxu0 %v5857_v1 }
 0x693   : > { %4156 = vmatpush3.bf16.msra.mxu1 %v4399_v56 }
 0x694   : > { %4157 = vmatprep.subr.bf16.mxu1 %v6105_v16 }
 0x695   : > { %3317 = vmatpush1.bf16.msra.mxu0 %v5863_v4 }
 0x696   : > { %3318 = vmatprep.subr.bf16.mxu0 %v5873_v20 }
 0x697   : > { %4158 = vmatpush3.bf16.msra.mxu1 %v4400_v26 }
 0x698   : > { %4159 = vmatprep.subr.bf16.mxu1 %v6105_v16  ;;  %v6119_v16 = vcombine.low %v5327_v44, %v5330_v60 }
 0x699   : > { %3319 = vmatpush1.bf16.msra.mxu0 %v5879_v53 }
 0x69b   : > { %4160 = vmatpush3.bf16.msra.mxu1 %v4401_v41 }
 0x73c   : > { %v3047_v35 = vpop.f32.mrf.mxu0  ;;  %v3088_v9 = vpop.f32.mrf.mxu1 }
 0x73d   : > { %v3048_v12 = vadd.f32 %v3047_v35, %v5118_v0  ;;  %v3089_v58 = vadd.f32 %v3088_v9, %v5347_v5 }
 0x73e   : > { %v3049_v34 = vpop.f32.mrf.mxu0  ;;  %v4143_v33 = vpop.f32.mrf.mxu1 }
 0x73f   : > { %v3094_v25 = vadd.f32 %v3048_v12, %v6118_v22  ;;  %v3050_v53 = vadd.f32 %v3049_v34, %v5261_v55  ;;  %v3424_v33 = vpop.permute.xlu0 %3423  ;;  %v3413_v22 = vpop.permute.xlu1 %3412 }
 0x740   : > { %v3051_v1 = vpop.f32.mrf.mxu0  ;;  %v3091_v4 = vpop.f32.mrf.mxu1  ;;  %vm3425_vm1 = vcmp.eq.s32.totalorder %v3424_v33, 1  ;;  %vm3414_vm2 = vcmp.eq.s32.totalorder %v3413_v22, 1 }
 0x741   : > { %v3872_v20 = vmul.f32 -1.442695, %v3094_v25  ;;  %v3101_v59 = vadd.f32 %v3050_v53, %v6119_v16 }
 0x742   : > { %v3052_v36 = vpop.f32.mrf.mxu0  ;;  %v4144_v46 = vpop.f32.mrf.mxu1 }
 0x743   : > { %4462 = vpow2.f32 %v3872_v20  ;;  %v3873_v7 = vmul.f32 -1.442695, %v3101_v59 }
 0x745   : > { %4464 = vpow2.f32 %v3873_v7 }
 0x750   : > { %v4463_v17 = vpop.eup %4462 }
 0x751   : > { %v3098_v6 = vadd.f32 1.0, %v4463_v17 }
 0x752   : > { %v4465_v52 = vpop.eup %4464 }
 0x753   : > { %4466 = vrcp.f32 %v3098_v6  ;;  %v3105_v37 = vadd.f32 1.0, %v4465_v52 }
 0x755   : > { %4468 = vrcp.f32 %v3105_v37 }
 0x760   : > { %v4467_v27 = vpop.eup %4466 }
 0x761   : > { %v3108_v29 = vmul.f32 %v4467_v27, %v3089_v58 }
 0x762   : > { %v4469_v32 = vpop.eup %4468 }
 0x763   : > { %v3109_v63 = vadd.f32 %v3108_v29, %v6120_v21  ;;  %v3111_v62 = vsub.f32 1.0, %v4469_v32  ;;  %v3113_v38 = vmul.f32 %v4469_v32, %v5903_v19 }
 0x765   : > { %4470 = vtanh.f32 %v3109_v63 }
 0x772   : > { %v4471_v8 = vpop.eup %4470 }
 0x773   : > { %v3112_v10 = vmul.f32 %v4471_v8, %v3111_v62 }
 0x775   : > { %v3114_v45 = vadd.f32 %v3113_v38, %v3112_v10 }
 0x777   : > { %v3124_v51 = vsel %vm3123_vm5, %v3114_v45, %v5903_v19  ;;  %v3126_v49 = vsel %vm3123_vm5, %v3114_v45, 0.0  ;;  %v3135_v61 = vsel %vm3134_vm0, %v3114_v45, 0.0 }
 0x778   : > { %3874 = vst [vmem:[%s4784_s1 + $0x30] sm:$0xff] %v3126_v49  ;;  %v3136_v47 = vadd.f32 %v3135_v61, %v5907_v30  ;;  %v3143_v23 = vpack.c.bf16 %v3124_v51, %v3124_v51 }
 0x77a   : > { %3337 = vmatmul.mubr.bf16.vlgmr.msra.gmra.mxu0 %v3143_v23  ;;  %4162 = vmatmul.mubr.bf16.vlgmr.msra.gmra.mxu1 %v3143_v23 }
 0x83a   : > { %v3338_v28 = vpop.f32.mrf.mxu0  ;;  %v3379_v50 = vpop.f32.mrf.mxu1 }
 0x83b   : > { %v3339_v42 = vadd.f32 %v3338_v28, %v5118_v0  ;;  %v3380_v13 = vadd.f32 %v3379_v50, %v5347_v5 }
 0x83c   : > { %v3340_v3 = vpop.f32.mrf.mxu0  ;;  %v4163_v11 = vpop.f32.mrf.mxu1 }
 0x83d   : > { %v3385_v24 = vadd.f32 %v3339_v42, %v6121_v31  ;;  %v3341_v40 = vadd.f32 %v3340_v3, %v5261_v55  ;;  %v6123_v55 = vcombine.high %v5318_v39, %v5321_v2 }
 0x83e   : > { %v3342_v54 = vpop.f32.mrf.mxu0  ;;  %v3382_v19 = vpop.f32.mrf.mxu1 }
 0x83f   : > { %v3899_v14 = vmul.f32 -1.442695, %v3385_v24  ;;  %v3392_v15 = vadd.f32 %v3341_v40, %v6122_v43 }
 0x840   : > { %v3343_v57 = vpop.f32.mrf.mxu0  ;;  %v4164_v30 = vpop.f32.mrf.mxu1 }
 0x841   : > { %4472 = vpow2.f32 %v3899_v14  ;;  %v3900_v56 = vmul.f32 -1.442695, %v3392_v15 }
 0x843   : > { %4474 = vpow2.f32 %v3900_v56 }
 0x84e   : > { %v4473_v0 = vpop.eup %4472 }
 0x84f   : > { %v3389_v26 = vadd.f32 1.0, %v4473_v0 }
 0x850   : > { %v4475_v41 = vpop.eup %4474 }
 0x851   : > { %4476 = vrcp.f32 %v3389_v26  ;;  %v3396_v48 = vadd.f32 1.0, %v4475_v41 }
 0x853   : > { %4478 = vrcp.f32 %v3396_v48 }
 0x85e   : > { %v4477_v35 = vpop.eup %4476 }
 0x85f   : > { %v3399_v9 = vmul.f32 %v4477_v35, %v3380_v13 }
 0x860   : > { %v4479_v44 = vpop.eup %4478 }
 0x861   : > { %v3400_v12 = vadd.f32 %v3399_v9, %v6123_v55  ;;  %v3402_v60 = vsub.f32 1.0, %v4479_v44  ;;  %v3404_v1 = vmul.f32 %v4479_v44, %v3124_v51 }
 0x863   : > { %4480 = vtanh.f32 %v3400_v12 }
 0x870   : > { %v4481_v34 = vpop.eup %4480 }
 0x871   : > { %v3403_v25 = vmul.f32 %v4481_v34, %v3402_v60 }
 0x873   : > { %v3405_v4 = vadd.f32 %v3404_v1, %v3403_v25 }
 0x875   : > { %v3415_v5 = vsel %vm3414_vm2, %v3405_v4, %v3124_v51  ;;  %v3417_v20 = vsel %vm3414_vm2, %v3405_v4, 0.0  ;;  %v3426_v53 = vsel %vm3425_vm1, %v3405_v4, 0.0 }
 0x876   : > { %3416 = vst [vmem:[#allocation2] sm:$0xff] %v3415_v5  ;;  %3901 = vst [vmem:[%s4784_s1 + $0x38] sm:$0xff] %v3417_v20  ;;  %v3427_v36 = vadd.f32 %v3426_v53, %v3136_v47 }
 0x878   : > { %3428 = vst [vmem:[#allocation3] sm:$0xff] %v3427_v36 }
 0x879 PF: > { %p3902_p0 = scmp.lt.s32.totalorder %s4789_s12, %s4792_s22 }
 0x87b   : > { %3432 = sbr.rel (%p3902_p0) target bundleno = 2181 (0x885), region = 94 }
 0x880   : > { %v4614_v2 = vmov 0.0  }
 0x881   : > { %3433 = vst [vmem:[%s4784_s1] sm:$0xff] %v4614_v2  ;;  %3434 = vst [vmem:[%s4784_s1 + $0x8] sm:$0xff] %v4614_v2 }
 0x882   : > { %3435 = vst [vmem:[%s4784_s1 + $0x10] sm:$0xff] %v4614_v2  ;;  %3436 = vst [vmem:[%s4784_s1 + $0x18] sm:$0xff] %v4614_v2 }
 0x883   : > { %3437 = vst [vmem:[%s4784_s1 + $0x20] sm:$0xff] %v4614_v2  ;;  %3438 = vst [vmem:[%s4784_s1 + $0x28] sm:$0xff] %v4614_v2 }
 0x884   : > { %3439 = vst [vmem:[%s4784_s1 + $0x30] sm:$0xff] %v4614_v2  ;;  %3440 = vst [vmem:[%s4784_s1 + $0x38] sm:$0xff] %v4614_v2 }
 0x885 PF: > { %p3903_p1 = scmp.ne.s32.totalorder %s4589_s14, 1 }
 0x886   : > { %s6124_s12 = scalar_lea.vmem (!%p3903_p1), [#allocation9], %s4773_s19 }
 0x887   : > { %3444 = sbr.rel (%p3903_p1) target bundleno = 2190 (0x88e), region = 98 }
 0x88c   : > { %v3445_v39 = vld [vmem:[#allocation3] sm:$0xff] }
 0x88d   : > { %3446 = vst [vmem:[%s6124_s12] sm:$0xff] %v3445_v39 }
 0x88e PF: > { %s6125_s22 = sand.u32 1, %s4573_s11   ;;  %3458 = sbr.rel (!%p4736_p12) target bundleno = 2199 (0x897), region = 102  ;;  %v3506_v46 = vld [vmem:[%s4784_s1] sm:$0xff] (%p4736_p12)  ;;  %v3508_v16 = vld [vmem:[%s4784_s1 + $0x8] sm:$0xff] (%p4736_p12)  ;;  %v3510_v59 = vld [vmem:[%s4784_s1 + $0x10] sm:$0xff] (%p4736_p12) }
 0x88f   : > { %s6005_s26 = scalar_lea.sflag [#allocation10], %s6125_s22  ;;  %s3917_s29 = sshll.u32 (%p4736_p12), %s4589_s14, 4  ;;  %v3512_v7 = vld [vmem:[%s4784_s1 + $0x18] sm:$0xff] (%p4736_p12)  ;;  %v3514_v17 = vld [vmem:[%s4784_s1 + $0x20] sm:$0xff] (%p4736_p12)  ;;  %v3516_v6 = vld [vmem:[%s4784_s1 + $0x28] sm:$0xff] (%p4736_p12) }
 0x890   : > { %s3461_s25 = sadd.s32 (%p4736_p12), %s4593_s15, %s3917_s29  ;;  %v3518_v52 = vld [vmem:[%s4784_s1 + $0x30] sm:$0xff] (%p4736_p12)  ;;  %v3520_v37 = vld [vmem:[%s4784_s1 + $0x38] sm:$0xff] (%p4736_p12) }
 0x891   : > { %s3908_s27 = sshll.u32 (%p4736_p12), %s3461_s25, 3 }
 0x892   : > { %s3463_s23 = scalar_lea.vmem (%p4736_p12), %s6082_s7, %s3908_s27 }
 0x893   : > { %3507 = vst [vmem:[%s3463_s23] sm:$0xff] %v3506_v46  ;;  %3509 = vst [vmem:[%s3463_s23 + $0x10] sm:$0xff] %v3508_v16 }
 0x894   : > { %3511 = vst [vmem:[%s3463_s23 + $0x20] sm:$0xff] %v3510_v59  ;;  %3513 = vst [vmem:[%s3463_s23 + $0x30] sm:$0xff] %v3512_v7 }
 0x895   : > { %3515 = vst [vmem:[%s3463_s23 + $0x40] sm:$0xff] %v3514_v17  ;;  %3517 = vst [vmem:[%s3463_s23 + $0x50] sm:$0xff] %v3516_v6 }
 0x896   : > { %3519 = vst [vmem:[%s3463_s23 + $0x60] sm:$0xff] %v3518_v52  ;;  %3521 = vst [vmem:[%s3463_s23 + $0x70] sm:$0xff] %v3520_v37 }
 0x897 PF: > { %s3909_s14 = sshll.u32 %s4593_s15, 7  ;;  %s6126_s9 = scalar_lea.vmem [#allocation9], %s4773_s19 }
 0x898   : > { %s3534_s17 = sshll.u32 %s6126_s9, 4  ;;  %s3532_s30 = scalar_lea.hbm %s6083_s8, %s3909_s14  ;;  %s3535_s17 = int_to_ptr.vmem [resolvable:$true] %s3534_s17 }
 0x899   : > { %s4495_s3 = scalar_lea.vmem %s3535_s17, 128  ;;  %s4615_s12 = smov [#allocation9]  }
 0x89a   : > { %p4496_p12 = scmp.ne.s32.totalorder %s3535_s17, %s4495_s3  ;;  %s4499_s22 = sshll.u32 %s4615_s12, 4  ;;  %s4500_s22 = int_to_ptr.vmem [resolvable:$false] %s4499_s22 }
 0x89b   : > { %s4501_s29 = scalar_lea.vmem %s4500_s22, 256  ;;  %p4502_p5 = scmp.lt.s32.totalorder %s3535_s17, %s4500_s22 }
 0x89c   : > { %p4497_p2 = pnand %p4496_p12, %p4740_p13  ;;  %p4503_p6 = scmp.lt.s32.totalorder %s4501_s29, %s4495_s3 }
 0x89e   : > { %p4498_p3 = pneg %p4497_p2  ;;  %p4504_p7 = por %p4503_p6, %p4502_p5 }
 0x8a0   : > { %p4505_p8 = pnand %p4504_p7, %p4498_p3 }
 0x8a2   : > { %4508 = shalt.err (!%p4505_p8)
}
 0x8a3   : > { %s4509_s15 = scalar_lea.hbm %s3532_s30, 128  ;;  %s4513_s27 = scalar_lea.hbm %s6083_s8, 256 }
 0x8a4   : > { %p4510_p9 = scmp.ne.s32.totalorder %s3532_s30, %s4509_s15  ;;  %p4514_p0 = scmp.lt.s32.totalorder %s3532_s30, %s6083_s8 }
 0x8a5   : > { %p4515_p1 = scmp.lt.s32.totalorder %s4513_s27, %s4509_s15 }
 0x8a6   : > { %p4511_p10 = pnand %p4510_p9, %p4740_p13 }
 0x8a7   : > { %p4516_p12 = por %p4515_p1, %p4514_p0 }
 0x8a8   : > { %p4512_p11 = pneg %p4511_p10 }
 0x8aa   : > { %p4517_p2 = pnand %p4516_p12, %p4512_p11 }
 0x8ac   : > { %4520 = shalt.err (!%p4517_p2)
}
 0x8ad   : > { %4166 = dma.vmem_to_hbm [thread:$0]  (%p4740_p13), %s3535_s17, 128, %s3532_s30, %s6005_s26  }
 0x8ae PF: > { %p4172_p3 = scmp.ge.s32.totalorder %s4605_s18, 2  ;;  %s3553_s23 = sand.u32 1, %s4569_s10  }
 0x8af   : > { %s3554_s14 = scalar_lea.sflag [#allocation10], %s3553_s23 }
 0x8b0   : > { %p4169_p5 = pnand %p4172_p3, %p4754_p4 }
 0x8b2   : > { %p4170_p6 = pneg %p4169_p5 }
 0x8b4   : > { %4564 = dma.done.wait (%p4170_p6), %s3554_s14, 128  }
 0x8b5   : > { %4566 = vsyncadd (%p4170_p6), %s3554_s14, 4294967168  ;;  %s28_s18 = sadd.s32 1, %s4605_s18   ;;  %s6127_s28 = sld [smem:[#allocation16_spill]] }
 0x8b6   : > { %p25_p7 = scmp.ge.s32.totalorder %s28_s18, 6   ;;  %s6128_s26 = sld [smem:[#allocation17_spill]] }
 0x8b7   : > { %s6129_s15 = sld [smem:[#allocation13_spill]]  ;;  %s6132_s10 = smov %s4573_s11 }
 0x8b8   : > { %s6130_s9 = sld [smem:[#allocation14_spill]]  ;;  %s6133_s11 = smov %s4577_s0 }
 0x8b9   : > { %s6131_s17 = sld [smem:[#allocation15_spill]]  ;;  %s6135_s12 = smov %s4585_s13 }
 0x8ba   : > { %s6137_s14 = smov %s4597_s16  ;;  %27 = sbr.rel (!%p25_p7) target bundleno = 22 (0x16), region = 205 }
 0x8bb   : > { %s6134_s0 = smov %s6127_s28 }
 0x8bc   : > { %s6136_s13 = smov %s6128_s26 }
 0x8be   : > { %s6138_s16 = smov %s6130_s9 }
 0x8bf   :  { %3559 = vsyncpa [#allocation10], 1 }
 0x8c0   :  { %3561 = vsyncpa [#allocation10 + $0x1], 1 }

</bundles_post_ra>
